<compile_context>
chip_gen: v5e
topology: v5e:2x2
jax: 0.10.0
libtpu: 0.0.40
codegen_flags: <defaults>
</compile_context>

<pallas_src>
import functools

import jax
import jax.numpy as jnp
from jax.experimental import pallas as pl
from jax.experimental.pallas import tpu as pltpu


def _round_up(x, m):
    return (x + m - 1) // m * m


def _pick_chunk(tm, cout_p, budget_bytes=64 * 1024):
    """Largest multiple-of-8 divisor of tm whose f32 accumulator fits budget."""
    target = max(8, budget_bytes // (cout_p * 4))
    best, c = 8, 8
    while c <= tm:
        if tm % c == 0 and c <= target:
            best = c
        c += 8
    return best


# ---------------------------------------------------------------------------
# Pallas kernel: fused im2col + matmul + bias over one tile of output pixels
# ---------------------------------------------------------------------------
def _conv_taps_kernel(xm_ref, xt_ref, w_ref, b_ref, o_ref, win_ref, *,
                      tm, tail, ch, k, wp, cout_p):
    # xm_ref : (tm, Cin)          main pixel tile (flattened padded NHWC)
    # xt_ref : (tail, Cin)        first `tail` rows of the next tile
    # w_ref  : (k*k, Cin, Cout_p) per-tap weights (lane-dense Cout_p)
    # b_ref  : (1, Cout_p)        bias (f32)
    # o_ref  : (tm, Cout_p)       output tile (f32)
    # win_ref: (tm + tail, Cin)   VMEM window covering every tap shift
    win_ref[0:tm, :] = xm_ref[...]
    win_ref[tm:tm + tail, :] = xt_ref[...]

    # Hoist small operands (a (Cin, Cout_p) tap weight is only a few vregs).
    w_taps = [w_ref[t] for t in range(k * k)]
    bias = b_ref[...]

    # Chunked accumulation: the (ch, Cout_p) accumulator stays in vregs across
    # the k*k-tap MXU loop; output stores are aligned and lane-dense.
    for c in range(tm // ch):
        base = c * ch
        acc = jnp.zeros((ch, cout_p), jnp.float32)
        for t in range(k * k):                       # static tap loop == fused im2col
            off = (t // k) * wp + (t % k) + base     # flattened-row shift of tap
            acc = acc + jnp.dot(win_ref[off:off + ch, :], w_taps[t],
                                preferred_element_type=jnp.float32)
        o_ref[base:base + ch, :] = (acc + bias).astype(o_ref.dtype)


def _fused_conv_dense(xflat, w_taps, bias_p, *, k, wp, tm):
    """Dense (stride-1) conv over flattened pixels.

    xflat: (M_real, Cin), w_taps: (k*k, Cin, Cout_p), bias_p: (1, Cout_p).
    Returns (M_real, Cout_p) float32.
    """
    m_real, cin = xflat.shape
    cout_p = w_taps.shape[-1]

    max_off = (k - 1) * wp + (k - 1)                 # largest tap shift
    tm = _round_up(max(tm, max_off), 8)              # window must fit in one tile
    # smallest sublane-aligned tail that covers max_off and divides tm
    tail = next(t for t in range(8, tm + 1, 8) if t >= max_off and tm % t == 0)
    ratio = tm // tail
    ch = _pick_chunk(tm, cout_p)                     # register-resident chunk rows

    g = pl.cdiv(m_real, tm)                          # grid steps (parallel axis)
    m_in = g * tm + tail                             # rows the kernel may read
    xpad = jnp.pad(xflat, ((0, m_in - m_real), (0, 0)))

    kern = functools.partial(_conv_taps_kernel, tm=tm, tail=tail, ch=ch,
                             k=k, wp=wp, cout_p=cout_p)
    flops = 2 * g * tm * (k * k) * cin * cout_p
    bytes_accessed = (xpad.size * xpad.dtype.itemsize
                      + w_taps.size * w_taps.dtype.itemsize
                      + g * tm * cout_p * 4)

    out = pl.pallas_call(
        kern,
        out_shape=jax.ShapeDtypeStruct((g * tm, cout_p), jnp.float32),
        grid_spec=pltpu.PrefetchScalarGridSpec(
            num_scalar_prefetch=0,
            grid=(g,),
            in_specs=[
                pl.BlockSpec((tm, cin), lambda i: (i, 0)),                 # main
                pl.BlockSpec((tail, cin), lambda i: ((i + 1) * ratio, 0)), # tail
                pl.BlockSpec((k * k, cin, cout_p), lambda i: (0, 0, 0)),   # W
                pl.BlockSpec((1, cout_p), lambda i: (0, 0)),               # bias
            ],
            out_specs=pl.BlockSpec((tm, cout_p), lambda i: (i, 0)),
            scratch_shapes=[pltpu.VMEM((tm + tail, cin), xpad.dtype)],
        ),
        compiler_params=pltpu.CompilerParams(
            dimension_semantics=("parallel",)),
        cost_estimate=pl.CostEstimate(flops=flops, transcendentals=0,
                                      bytes_accessed=bytes_accessed),
    )(xpad, xpad, w_taps, bias_p)

    return out[:m_real]


# ---------------------------------------------------------------------------
# ConvLayer forward: ReflectionPad2d(k//2) -> Conv2d(stride, bias)
# ---------------------------------------------------------------------------
@functools.partial(jax.jit,
                   static_argnames=("kernel_size", "stride", "tm",
                                    "compute_dtype"))
def conv_layer_forward(x, weight, bias, *, kernel_size, stride, tm=512,
                       compute_dtype=None):
    """x: (N, Cin, H, W) NCHW.  weight: (Cout, Cin, k, k).  bias: (Cout,) or None."""
    k = kernel_size
    s = stride
    pad = k // 2
    n, cin, h, w = x.shape
    cout = weight.shape[0]
    assert pad < h and pad < w, "ReflectionPad2d requires pad < spatial dims"

    cdt = compute_dtype if compute_dtype is not None else x.dtype

    # plain-JAX glue: NCHW -> NHWC, reflection pad, flatten pixels
    x_nhwc = jnp.transpose(x, (0, 2, 3, 1))
    xp = jnp.pad(x_nhwc, ((0, 0), (pad, pad), (pad, pad), (0, 0)),
                 mode="reflect")
    hp, wp = h + 2 * pad, w + 2 * pad
    ho = (hp - k) // s + 1
    wo = (wp - k) // s + 1
    xflat = xp.reshape(n * hp * wp, cin).astype(cdt)

    # weights: (Cout, Cin, kh, kw) -> (k*k, Cin, Cout_pad); lane-dense Cout
    cout_p = _round_up(cout, 128)
    w_taps = jnp.transpose(weight, (2, 3, 1, 0)).reshape(k * k, cin, cout)
    w_taps = jnp.pad(w_taps, ((0, 0), (0, 0), (0, cout_p - cout))).astype(cdt)
    if bias is None:
        bias_p = jnp.zeros((1, cout_p), jnp.float32)
    else:
        bias_p = jnp.pad(bias.astype(jnp.float32),
                         (0, cout_p - cout)).reshape(1, cout_p)

    # fused conv (dense / stride-1 form), hot path in Pallas
    out_flat = _fused_conv_dense(xflat, w_taps, bias_p, k=k, wp=wp, tm=tm)

    # back to NCHW, subsample for stride, drop channel padding
    # TODO(synk): stride>1 computes the dense result and subsamples (exact but
    # s^2 extra compute); a gather-style index_map would avoid that.
    out = out_flat.reshape(n, hp, wp, cout_p)
    out = out[:, : (ho - 1) * s + 1 : s, : (wo - 1) * s + 1 : s, :cout]
    # TODO(synk): keep NHWC end-to-end when the next layer consumes NHWC; this
    # transpose only preserves the PyTorch NCHW interface.
    out = jnp.transpose(out, (0, 3, 1, 2)).astype(x.dtype)
    return out


# ---------------------------------------------------------------------------
# Demo / correctness check
# ---------------------------------------------------------------------------
if __name__ == "__main__":
    key = jax.random.PRNGKey(0)
    k_x, k_w, k_b = jax.random.split(key, 3)

    # ConvLayer(in_channels=4, out_channels=8, kernel_size=3, stride, bias=True)
    N, Cin, H, W = 2, 4, 16, 16
    Cout, ksize = 8, 3

    x = jax.random.normal(k_x, (N, Cin, H, W), dtype=jnp.float32)
    weight = 0.1 * jax.random.normal(k_w, (Cout, Cin, ksize, ksize),
                                     dtype=jnp.float32)
    bias = 0.1 * jax.random.normal(k_b, (Cout,), dtype=jnp.float32)

    for stride in (1, 2):
        out = conv_layer_forward(x, weight, bias,
                                 kernel_size=ksize, stride=stride)
        out = jax.block_until_ready(out)

        # Reference: reflection pad + conv via lax (pure-JAX semantics check).
        xp_ref = jnp.pad(x, ((0, 0), (0, 0), (1, 1), (1, 1)), mode="reflect")
        ref = jax.lax.conv_general_dilated(
            xp_ref, weight, window_strides=(stride, stride), padding="VALID",
            dimension_numbers=("NCHW", "OIHW", "NCHW"))
        ref = ref + bias.reshape(1, Cout, 1, 1)

        assert out.shape == ref.shape, (out.shape, ref.shape)
        err = float(jnp.max(jnp.abs(out - ref)))
        assert err < 1e-4, err

    print("KERNEL_OK")
</pallas_src>

<mosaic_0001>
module attributes {stable_mosaic.version = 11 : i64} {
  func.func @_conv_taps_kernel(%arg0: i32, %arg1: memref<512x4xf32, #tpu.memory_space<vmem>>, %arg2: memref<64x4xf32, #tpu.memory_space<vmem>>, %arg3: memref<9x4x128xf32, #tpu.memory_space<vmem>>, %arg4: memref<1x128xf32, #tpu.memory_space<vmem>>, %arg5: memref<512x128xf32, #tpu.memory_space<vmem>>, %arg6: memref<576x4xf32, #tpu.memory_space<vmem>>) attributes {dimension_semantics = [#tpu.dimension_semantics<parallel>], iteration_bounds = array<i64: 2>, scalar_prefetch = 0 : i64, scratch_operands = 1 : i64, tpu.core_type = #tpu.core_type<tc>, window_params = [{transform_indices = @transform_0, window_bounds = array<i64: 512, 4>}, {transform_indices = @transform_1, window_bounds = array<i64: 64, 4>}, {pipeline_mode = #tpu.pipeline_mode<synchronous>, transform_indices = @transform_2, window_bounds = array<i64: 9, 4, 128>}, {pipeline_mode = #tpu.pipeline_mode<synchronous>, transform_indices = @transform_3, window_bounds = array<i64: 1, 128>}, {transform_indices = @transform_4, window_bounds = array<i64: 512, 128>}]} {
    %c0 = arith.constant 0 : index
    %c0_0 = arith.constant 0 : index
    %0 = vector.load %arg1[%c0, %c0_0] : memref<512x4xf32, #tpu.memory_space<vmem>>, vector<512x4xf32>
    %c0_1 = arith.constant 0 : index
    %c0_2 = arith.constant 0 : index
    %1 = vector.load %arg6[%c0_1, %c0_2] : memref<576x4xf32, #tpu.memory_space<vmem>>, vector<512x4xf32>
    tpu.vector_store %arg6[%c0_1, %c0_2], %0 {strides = array<i32>} : memref<576x4xf32, #tpu.memory_space<vmem>>, vector<512x4xf32>,
    %c0_3 = arith.constant 0 : index
    %c0_4 = arith.constant 0 : index
    %2 = vector.load %arg2[%c0_3, %c0_4] : memref<64x4xf32, #tpu.memory_space<vmem>>, vector<64x4xf32>
    %c512 = arith.constant 512 : index
    %c0_5 = arith.constant 0 : index
    %3 = vector.load %arg6[%c512, %c0_5] : memref<576x4xf32, #tpu.memory_space<vmem>>, vector<64x4xf32>
    tpu.vector_store %arg6[%c512, %c0_5], %2 {strides = array<i32>} : memref<576x4xf32, #tpu.memory_space<vmem>>, vector<64x4xf32>,
    %c0_6 = arith.constant 0 : index
    %c0_7 = arith.constant 0 : index
    %c0_8 = arith.constant 0 : index
    %4 = vector.load %arg3[%c0_6, %c0_7, %c0_8] : memref<9x4x128xf32, #tpu.memory_space<vmem>>, vector<1x4x128xf32>
    %5 = vector.shape_cast %4 : vector<1x4x128xf32> to vector<4x128xf32>
    %c1 = arith.constant 1 : index
    %c0_9 = arith.constant 0 : index
    %c0_10 = arith.constant 0 : index
    %6 = vector.load %arg3[%c1, %c0_9, %c0_10] : memref<9x4x128xf32, #tpu.memory_space<vmem>>, vector<1x4x128xf32>
    %7 = vector.shape_cast %6 : vector<1x4x128xf32> to vector<4x128xf32>
    %c2 = arith.constant 2 : index
    %c0_11 = arith.constant 0 : index
    %c0_12 = arith.constant 0 : index
    %8 = vector.load %arg3[%c2, %c0_11, %c0_12] : memref<9x4x128xf32, #tpu.memory_space<vmem>>, vector<1x4x128xf32>
    %9 = vector.shape_cast %8 : vector<1x4x128xf32> to vector<4x128xf32>
    %c3 = arith.constant 3 : index
    %c0_13 = arith.constant 0 : index
    %c0_14 = arith.constant 0 : index
    %10 = vector.load %arg3[%c3, %c0_13, %c0_14] : memref<9x4x128xf32, #tpu.memory_space<vmem>>, vector<1x4x128xf32>
    %11 = vector.shape_cast %10 : vector<1x4x128xf32> to vector<4x128xf32>
    %c4 = arith.constant 4 : index
    %c0_15 = arith.constant 0 : index
    %c0_16 = arith.constant 0 : index
    %12 = vector.load %arg3[%c4, %c0_15, %c0_16] : memref<9x4x128xf32, #tpu.memory_space<vmem>>, vector<1x4x128xf32>
    %13 = vector.shape_cast %12 : vector<1x4x128xf32> to vector<4x128xf32>
    %c5 = arith.constant 5 : index
    %c0_17 = arith.constant 0 : index
    %c0_18 = arith.constant 0 : index
    %14 = vector.load %arg3[%c5, %c0_17, %c0_18] : memref<9x4x128xf32, #tpu.memory_space<vmem>>, vector<1x4x128xf32>
    %15 = vector.shape_cast %14 : vector<1x4x128xf32> to vector<4x128xf32>
    %c6 = arith.constant 6 : index
    %c0_19 = arith.constant 0 : index
    %c0_20 = arith.constant 0 : index
    %16 = vector.load %arg3[%c6, %c0_19, %c0_20] : memref<9x4x128xf32, #tpu.memory_space<vmem>>, vector<1x4x128xf32>
    %17 = vector.shape_cast %16 : vector<1x4x128xf32> to vector<4x128xf32>
    %c7 = arith.constant 7 : index
    %c0_21 = arith.constant 0 : index
    %c0_22 = arith.constant 0 : index
    %18 = vector.load %arg3[%c7, %c0_21, %c0_22] : memref<9x4x128xf32, #tpu.memory_space<vmem>>, vector<1x4x128xf32>
    %19 = vector.shape_cast %18 : vector<1x4x128xf32> to vector<4x128xf32>
    %c8 = arith.constant 8 : index
    %c0_23 = arith.constant 0 : index
    %c0_24 = arith.constant 0 : index
    %20 = vector.load %arg3[%c8, %c0_23, %c0_24] : memref<9x4x128xf32, #tpu.memory_space<vmem>>, vector<1x4x128xf32>
    %21 = vector.shape_cast %20 : vector<1x4x128xf32> to vector<4x128xf32>
    %c0_25 = arith.constant 0 : index
    %c0_26 = arith.constant 0 : index
    %22 = vector.load %arg4[%c0_25, %c0_26] : memref<1x128xf32, #tpu.memory_space<vmem>>, vector<1x128xf32>
    %cst = arith.constant 0.000000e+00 : f32
    %23 = vector.broadcast %cst : f32 to vector<128x128xf32>
    %c0_27 = arith.constant 0 : index
    %c0_28 = arith.constant 0 : index
    %24 = vector.load %arg6[%c0_27, %c0_28] : memref<576x4xf32, #tpu.memory_space<vmem>>, vector<128x4xf32>
    %cst_29 = arith.constant dense<0.000000e+00> : vector<128x128xf32>
    %25 = tpu.matmul %24, %5, %cst_29 {dimension_numbers = #tpu.dot_dimension_numbers<[1], [0], [0], [1], [0, 0, 1, 1], [], []>} : vector<128x4xf32>, vector<4x128xf32>, vector<128x128xf32> -> vector<128x128xf32>
    %26 = arith.addf %23, %25 : vector<128x128xf32>
    %c1_30 = arith.constant 1 : index
    %c0_31 = arith.constant 0 : index
    %27 = vector.load %arg6[%c1_30, %c0_31] : memref<576x4xf32, #tpu.memory_space<vmem>>, vector<128x4xf32>
    %cst_32 = arith.constant dense<0.000000e+00> : vector<128x128xf32>
    %28 = tpu.matmul %27, %7, %cst_32 {dimension_numbers = #tpu.dot_dimension_numbers<[1], [0], [0], [1], [0, 0, 1, 1], [], []>} : vector<128x4xf32>, vector<4x128xf32>, vector<128x128xf32> -> vector<128x128xf32>
    %29 = arith.addf %26, %28 : vector<128x128xf32>
    %c2_33 = arith.constant 2 : index
    %c0_34 = arith.constant 0 : index
    %30 = vector.load %arg6[%c2_33, %c0_34] : memref<576x4xf32, #tpu.memory_space<vmem>>, vector<128x4xf32>
    %cst_35 = arith.constant dense<0.000000e+00> : vector<128x128xf32>
    %31 = tpu.matmul %30, %9, %cst_35 {dimension_numbers = #tpu.dot_dimension_numbers<[1], [0], [0], [1], [0, 0, 1, 1], [], []>} : vector<128x4xf32>, vector<4x128xf32>, vector<128x128xf32> -> vector<128x128xf32>
    %32 = arith.addf %29, %31 : vector<128x128xf32>
    %c18 = arith.constant 18 : index
    %c0_36 = arith.constant 0 : index
    %33 = vector.load %arg6[%c18, %c0_36] : memref<576x4xf32, #tpu.memory_space<vmem>>, vector<128x4xf32>
    %cst_37 = arith.constant dense<0.000000e+00> : vector<128x128xf32>
    %34 = tpu.matmul %33, %11, %cst_37 {dimension_numbers = #tpu.dot_dimension_numbers<[1], [0], [0], [1], [0, 0, 1, 1], [], []>} : vector<128x4xf32>, vector<4x128xf32>, vector<128x128xf32> -> vector<128x128xf32>
    %35 = arith.addf %32, %34 : vector<128x128xf32>
    %c19 = arith.constant 19 : index
    %c0_38 = arith.constant 0 : index
    %36 = vector.load %arg6[%c19, %c0_38] : memref<576x4xf32, #tpu.memory_space<vmem>>, vector<128x4xf32>
    %cst_39 = arith.constant dense<0.000000e+00> : vector<128x128xf32>
    %37 = tpu.matmul %36, %13, %cst_39 {dimension_numbers = #tpu.dot_dimension_numbers<[1], [0], [0], [1], [0, 0, 1, 1], [], []>} : vector<128x4xf32>, vector<4x128xf32>, vector<128x128xf32> -> vector<128x128xf32>
    %38 = arith.addf %35, %37 : vector<128x128xf32>
    %c20 = arith.constant 20 : index
    %c0_40 = arith.constant 0 : index
    %39 = vector.load %arg6[%c20, %c0_40] : memref<576x4xf32, #tpu.memory_space<vmem>>, vector<128x4xf32>
    %cst_41 = arith.constant dense<0.000000e+00> : vector<128x128xf32>
    %40 = tpu.matmul %39, %15, %cst_41 {dimension_numbers = #tpu.dot_dimension_numbers<[1], [0], [0], [1], [0, 0, 1, 1], [], []>} : vector<128x4xf32>, vector<4x128xf32>, vector<128x128xf32> -> vector<128x128xf32>
    %41 = arith.addf %38, %40 : vector<128x128xf32>
    %c36 = arith.constant 36 : index
    %c0_42 = arith.constant 0 : index
    %42 = vector.load %arg6[%c36, %c0_42] : memref<576x4xf32, #tpu.memory_space<vmem>>, vector<128x4xf32>
    %cst_43 = arith.constant dense<0.000000e+00> : vector<128x128xf32>
    %43 = tpu.matmul %42, %17, %cst_43 {dimension_numbers = #tpu.dot_dimension_numbers<[1], [0], [0], [1], [0, 0, 1, 1], [], []>} : vector<128x4xf32>, vector<4x128xf32>, vector<128x128xf32> -> vector<128x128xf32>
    %44 = arith.addf %41, %43 : vector<128x128xf32>
    %c37 = arith.constant 37 : index
    %c0_44 = arith.constant 0 : index
    %45 = vector.load %arg6[%c37, %c0_44] : memref<576x4xf32, #tpu.memory_space<vmem>>, vector<128x4xf32>
    %cst_45 = arith.constant dense<0.000000e+00> : vector<128x128xf32>
    %46 = tpu.matmul %45, %19, %cst_45 {dimension_numbers = #tpu.dot_dimension_numbers<[1], [0], [0], [1], [0, 0, 1, 1], [], []>} : vector<128x4xf32>, vector<4x128xf32>, vector<128x128xf32> -> vector<128x128xf32>
    %47 = arith.addf %44, %46 : vector<128x128xf32>
    %c38 = arith.constant 38 : index
    %c0_46 = arith.constant 0 : index
    %48 = vector.load %arg6[%c38, %c0_46] : memref<576x4xf32, #tpu.memory_space<vmem>>, vector<128x4xf32>
    %cst_47 = arith.constant dense<0.000000e+00> : vector<128x128xf32>
    %49 = tpu.matmul %48, %21, %cst_47 {dimension_numbers = #tpu.dot_dimension_numbers<[1], [0], [0], [1], [0, 0, 1, 1], [], []>} : vector<128x4xf32>, vector<4x128xf32>, vector<128x128xf32> -> vector<128x128xf32>
    %50 = arith.addf %47, %49 : vector<128x128xf32>
    %51 = vector.broadcast %22 : vector<1x128xf32> to vector<128x128xf32>
    %52 = arith.addf %50, %51 : vector<128x128xf32>
    %c0_48 = arith.constant 0 : index
    %c0_49 = arith.constant 0 : index
    %53 = vector.load %arg5[%c0_48, %c0_49] : memref<512x128xf32, #tpu.memory_space<vmem>>, vector<128x128xf32>
    tpu.vector_store %arg5[%c0_48, %c0_49], %52 {strides = array<i32>} : memref<512x128xf32, #tpu.memory_space<vmem>>, vector<128x128xf32>,
    %cst_50 = arith.constant 0.000000e+00 : f32
    %54 = vector.broadcast %cst_50 : f32 to vector<128x128xf32>
    %c128 = arith.constant 128 : index
    %c0_51 = arith.constant 0 : index
    %55 = vector.load %arg6[%c128, %c0_51] : memref<576x4xf32, #tpu.memory_space<vmem>>, vector<128x4xf32>
    %cst_52 = arith.constant dense<0.000000e+00> : vector<128x128xf32>
    %56 = tpu.matmul %55, %5, %cst_52 {dimension_numbers = #tpu.dot_dimension_numbers<[1], [0], [0], [1], [0, 0, 1, 1], [], []>} : vector<128x4xf32>, vector<4x128xf32>, vector<128x128xf32> -> vector<128x128xf32>
    %57 = arith.addf %54, %56 : vector<128x128xf32>
    %c129 = arith.constant 129 : index
    %c0_53 = arith.constant 0 : index
    %58 = vector.load %arg6[%c129, %c0_53] : memref<576x4xf32, #tpu.memory_space<vmem>>, vector<128x4xf32>
    %cst_54 = arith.constant dense<0.000000e+00> : vector<128x128xf32>
    %59 = tpu.matmul %58, %7, %cst_54 {dimension_numbers = #tpu.dot_dimension_numbers<[1], [0], [0], [1], [0, 0, 1, 1], [], []>} : vector<128x4xf32>, vector<4x128xf32>, vector<128x128xf32> -> vector<128x128xf32>
    %60 = arith.addf %57, %59 : vector<128x128xf32>
    %c130 = arith.constant 130 : index
    %c0_55 = arith.constant 0 : index
    %61 = vector.load %arg6[%c130, %c0_55] : memref<576x4xf32, #tpu.memory_space<vmem>>, vector<128x4xf32>
    %cst_56 = arith.constant dense<0.000000e+00> : vector<128x128xf32>
    %62 = tpu.matmul %61, %9, %cst_56 {dimension_numbers = #tpu.dot_dimension_numbers<[1], [0], [0], [1], [0, 0, 1, 1], [], []>} : vector<128x4xf32>, vector<4x128xf32>, vector<128x128xf32> -> vector<128x128xf32>
    %63 = arith.addf %60, %62 : vector<128x128xf32>
    %c146 = arith.constant 146 : index
    %c0_57 = arith.constant 0 : index
    %64 = vector.load %arg6[%c146, %c0_57] : memref<576x4xf32, #tpu.memory_space<vmem>>, vector<128x4xf32>
    %cst_58 = arith.constant dense<0.000000e+00> : vector<128x128xf32>
    %65 = tpu.matmul %64, %11, %cst_58 {dimension_numbers = #tpu.dot_dimension_numbers<[1], [0], [0], [1], [0, 0, 1, 1], [], []>} : vector<128x4xf32>, vector<4x128xf32>, vector<128x128xf32> -> vector<128x128xf32>
    %66 = arith.addf %63, %65 : vector<128x128xf32>
    %c147 = arith.constant 147 : index
    %c0_59 = arith.constant 0 : index
    %67 = vector.load %arg6[%c147, %c0_59] : memref<576x4xf32, #tpu.memory_space<vmem>>, vector<128x4xf32>
    %cst_60 = arith.constant dense<0.000000e+00> : vector<128x128xf32>
    %68 = tpu.matmul %67, %13, %cst_60 {dimension_numbers = #tpu.dot_dimension_numbers<[1], [0], [0], [1], [0, 0, 1, 1], [], []>} : vector<128x4xf32>, vector<4x128xf32>, vector<128x128xf32> -> vector<128x128xf32>
    %69 = arith.addf %66, %68 : vector<128x128xf32>
    %c148 = arith.constant 148 : index
    %c0_61 = arith.constant 0 : index
    %70 = vector.load %arg6[%c148, %c0_61] : memref<576x4xf32, #tpu.memory_space<vmem>>, vector<128x4xf32>
    %cst_62 = arith.constant dense<0.000000e+00> : vector<128x128xf32>
    %71 = tpu.matmul %70, %15, %cst_62 {dimension_numbers = #tpu.dot_dimension_numbers<[1], [0], [0], [1], [0, 0, 1, 1], [], []>} : vector<128x4xf32>, vector<4x128xf32>, vector<128x128xf32> -> vector<128x128xf32>
    %72 = arith.addf %69, %71 : vector<128x128xf32>
    %c164 = arith.constant 164 : index
    %c0_63 = arith.constant 0 : index
    %73 = vector.load %arg6[%c164, %c0_63] : memref<576x4xf32, #tpu.memory_space<vmem>>, vector<128x4xf32>
    %cst_64 = arith.constant dense<0.000000e+00> : vector<128x128xf32>
    %74 = tpu.matmul %73, %17, %cst_64 {dimension_numbers = #tpu.dot_dimension_numbers<[1], [0], [0], [1], [0, 0, 1, 1], [], []>} : vector<128x4xf32>, vector<4x128xf32>, vector<128x128xf32> -> vector<128x128xf32>
    %75 = arith.addf %72, %74 : vector<128x128xf32>
    %c165 = arith.constant 165 : index
    %c0_65 = arith.constant 0 : index
    %76 = vector.load %arg6[%c165, %c0_65] : memref<576x4xf32, #tpu.memory_space<vmem>>, vector<128x4xf32>
    %cst_66 = arith.constant dense<0.000000e+00> : vector<128x128xf32>
    %77 = tpu.matmul %76, %19, %cst_66 {dimension_numbers = #tpu.dot_dimension_numbers<[1], [0], [0], [1], [0, 0, 1, 1], [], []>} : vector<128x4xf32>, vector<4x128xf32>, vector<128x128xf32> -> vector<128x128xf32>
    %78 = arith.addf %75, %77 : vector<128x128xf32>
    %c166 = arith.constant 166 : index
    %c0_67 = arith.constant 0 : index
    %79 = vector.load %arg6[%c166, %c0_67] : memref<576x4xf32, #tpu.memory_space<vmem>>, vector<128x4xf32>
    %cst_68 = arith.constant dense<0.000000e+00> : vector<128x128xf32>
    %80 = tpu.matmul %79, %21, %cst_68 {dimension_numbers = #tpu.dot_dimension_numbers<[1], [0], [0], [1], [0, 0, 1, 1], [], []>} : vector<128x4xf32>, vector<4x128xf32>, vector<128x128xf32> -> vector<128x128xf32>
    %81 = arith.addf %78, %80 : vector<128x128xf32>
    %82 = vector.broadcast %22 : vector<1x128xf32> to vector<128x128xf32>
    %83 = arith.addf %81, %82 : vector<128x128xf32>
    %c128_69 = arith.constant 128 : index
    %c0_70 = arith.constant 0 : index
    %84 = vector.load %arg5[%c128_69, %c0_70] : memref<512x128xf32, #tpu.memory_space<vmem>>, vector<128x128xf32>
    tpu.vector_store %arg5[%c128_69, %c0_70], %83 {strides = array<i32>} : memref<512x128xf32, #tpu.memory_space<vmem>>, vector<128x128xf32>,
    %cst_71 = arith.constant 0.000000e+00 : f32
    %85 = vector.broadcast %cst_71 : f32 to vector<128x128xf32>
    %c256 = arith.constant 256 : index
    %c0_72 = arith.constant 0 : index
    %86 = vector.load %arg6[%c256, %c0_72] : memref<576x4xf32, #tpu.memory_space<vmem>>, vector<128x4xf32>
    %cst_73 = arith.constant dense<0.000000e+00> : vector<128x128xf32>
    %87 = tpu.matmul %86, %5, %cst_73 {dimension_numbers = #tpu.dot_dimension_numbers<[1], [0], [0], [1], [0, 0, 1, 1], [], []>} : vector<128x4xf32>, vector<4x128xf32>, vector<128x128xf32> -> vector<128x128xf32>
    %88 = arith.addf %85, %87 : vector<128x128xf32>
    %c257 = arith.constant 257 : index
    %c0_74 = arith.constant 0 : index
    %89 = vector.load %arg6[%c257, %c0_74] : memref<576x4xf32, #tpu.memory_space<vmem>>, vector<128x4xf32>
    %cst_75 = arith.constant dense<0.000000e+00> : vector<128x128xf32>
    %90 = tpu.matmul %89, %7, %cst_75 {dimension_numbers = #tpu.dot_dimension_numbers<[1], [0], [0], [1], [0, 0, 1, 1], [], []>} : vector<128x4xf32>, vector<4x128xf32>, vector<128x128xf32> -> vector<128x128xf32>
    %91 = arith.addf %88, %90 : vector<128x128xf32>
    %c258 = arith.constant 258 : index
    %c0_76 = arith.constant 0 : index
    %92 = vector.load %arg6[%c258, %c0_76] : memref<576x4xf32, #tpu.memory_space<vmem>>, vector<128x4xf32>
    %cst_77 = arith.constant dense<0.000000e+00> : vector<128x128xf32>
    %93 = tpu.matmul %92, %9, %cst_77 {dimension_numbers = #tpu.dot_dimension_numbers<[1], [0], [0], [1], [0, 0, 1, 1], [], []>} : vector<128x4xf32>, vector<4x128xf32>, vector<128x128xf32> -> vector<128x128xf32>
    %94 = arith.addf %91, %93 : vector<128x128xf32>
    %c274 = arith.constant 274 : index
    %c0_78 = arith.constant 0 : index
    %95 = vector.load %arg6[%c274, %c0_78] : memref<576x4xf32, #tpu.memory_space<vmem>>, vector<128x4xf32>
    %cst_79 = arith.constant dense<0.000000e+00> : vector<128x128xf32>
    %96 = tpu.matmul %95, %11, %cst_79 {dimension_numbers = #tpu.dot_dimension_numbers<[1], [0], [0], [1], [0, 0, 1, 1], [], []>} : vector<128x4xf32>, vector<4x128xf32>, vector<128x128xf32> -> vector<128x128xf32>
    %97 = arith.addf %94, %96 : vector<128x128xf32>
    %c275 = arith.constant 275 : index
    %c0_80 = arith.constant 0 : index
    %98 = vector.load %arg6[%c275, %c0_80] : memref<576x4xf32, #tpu.memory_space<vmem>>, vector<128x4xf32>
    %cst_81 = arith.constant dense<0.000000e+00> : vector<128x128xf32>
    %99 = tpu.matmul %98, %13, %cst_81 {dimension_numbers = #tpu.dot_dimension_numbers<[1], [0], [0], [1], [0, 0, 1, 1], [], []>} : vector<128x4xf32>, vector<4x128xf32>, vector<128x128xf32> -> vector<128x128xf32>
    %100 = arith.addf %97, %99 : vector<128x128xf32>
    %c276 = arith.constant 276 : index
    %c0_82 = arith.constant 0 : index
    %101 = vector.load %arg6[%c276, %c0_82] : memref<576x4xf32, #tpu.memory_space<vmem>>, vector<128x4xf32>
    %cst_83 = arith.constant dense<0.000000e+00> : vector<128x128xf32>
    %102 = tpu.matmul %101, %15, %cst_83 {dimension_numbers = #tpu.dot_dimension_numbers<[1], [0], [0], [1], [0, 0, 1, 1], [], []>} : vector<128x4xf32>, vector<4x128xf32>, vector<128x128xf32> -> vector<128x128xf32>
    %103 = arith.addf %100, %102 : vector<128x128xf32>
    %c292 = arith.constant 292 : index
    %c0_84 = arith.constant 0 : index
    %104 = vector.load %arg6[%c292, %c0_84] : memref<576x4xf32, #tpu.memory_space<vmem>>, vector<128x4xf32>
    %cst_85 = arith.constant dense<0.000000e+00> : vector<128x128xf32>
    %105 = tpu.matmul %104, %17, %cst_85 {dimension_numbers = #tpu.dot_dimension_numbers<[1], [0], [0], [1], [0, 0, 1, 1], [], []>} : vector<128x4xf32>, vector<4x128xf32>, vector<128x128xf32> -> vector<128x128xf32>
    %106 = arith.addf %103, %105 : vector<128x128xf32>
    %c293 = arith.constant 293 : index
    %c0_86 = arith.constant 0 : index
    %107 = vector.load %arg6[%c293, %c0_86] : memref<576x4xf32, #tpu.memory_space<vmem>>, vector<128x4xf32>
    %cst_87 = arith.constant dense<0.000000e+00> : vector<128x128xf32>
    %108 = tpu.matmul %107, %19, %cst_87 {dimension_numbers = #tpu.dot_dimension_numbers<[1], [0], [0], [1], [0, 0, 1, 1], [], []>} : vector<128x4xf32>, vector<4x128xf32>, vector<128x128xf32> -> vector<128x128xf32>
    %109 = arith.addf %106, %108 : vector<128x128xf32>
    %c294 = arith.constant 294 : index
    %c0_88 = arith.constant 0 : index
    %110 = vector.load %arg6[%c294, %c0_88] : memref<576x4xf32, #tpu.memory_space<vmem>>, vector<128x4xf32>
    %cst_89 = arith.constant dense<0.000000e+00> : vector<128x128xf32>
    %111 = tpu.matmul %110, %21, %cst_89 {dimension_numbers = #tpu.dot_dimension_numbers<[1], [0], [0], [1], [0, 0, 1, 1], [], []>} : vector<128x4xf32>, vector<4x128xf32>, vector<128x128xf32> -> vector<128x128xf32>
    %112 = arith.addf %109, %111 : vector<128x128xf32>
    %113 = vector.broadcast %22 : vector<1x128xf32> to vector<128x128xf32>
    %114 = arith.addf %112, %113 : vector<128x128xf32>
    %c256_90 = arith.constant 256 : index
    %c0_91 = arith.constant 0 : index
    %115 = vector.load %arg5[%c256_90, %c0_91] : memref<512x128xf32, #tpu.memory_space<vmem>>, vector<128x128xf32>
    tpu.vector_store %arg5[%c256_90, %c0_91], %114 {strides = array<i32>} : memref<512x128xf32, #tpu.memory_space<vmem>>, vector<128x128xf32>,
    %cst_92 = arith.constant 0.000000e+00 : f32
    %116 = vector.broadcast %cst_92 : f32 to vector<128x128xf32>
    %c384 = arith.constant 384 : index
    %c0_93 = arith.constant 0 : index
    %117 = vector.load %arg6[%c384, %c0_93] : memref<576x4xf32, #tpu.memory_space<vmem>>, vector<128x4xf32>
    %cst_94 = arith.constant dense<0.000000e+00> : vector<128x128xf32>
    %118 = tpu.matmul %117, %5, %cst_94 {dimension_numbers = #tpu.dot_dimension_numbers<[1], [0], [0], [1], [0, 0, 1, 1], [], []>} : vector<128x4xf32>, vector<4x128xf32>, vector<128x128xf32> -> vector<128x128xf32>
    %119 = arith.addf %116, %118 : vector<128x128xf32>
    %c385 = arith.constant 385 : index
    %c0_95 = arith.constant 0 : index
    %120 = vector.load %arg6[%c385, %c0_95] : memref<576x4xf32, #tpu.memory_space<vmem>>, vector<128x4xf32>
    %cst_96 = arith.constant dense<0.000000e+00> : vector<128x128xf32>
    %121 = tpu.matmul %120, %7, %cst_96 {dimension_numbers = #tpu.dot_dimension_numbers<[1], [0], [0], [1], [0, 0, 1, 1], [], []>} : vector<128x4xf32>, vector<4x128xf32>, vector<128x128xf32> -> vector<128x128xf32>
    %122 = arith.addf %119, %121 : vector<128x128xf32>
    %c386 = arith.constant 386 : index
    %c0_97 = arith.constant 0 : index
    %123 = vector.load %arg6[%c386, %c0_97] : memref<576x4xf32, #tpu.memory_space<vmem>>, vector<128x4xf32>
    %cst_98 = arith.constant dense<0.000000e+00> : vector<128x128xf32>
    %124 = tpu.matmul %123, %9, %cst_98 {dimension_numbers = #tpu.dot_dimension_numbers<[1], [0], [0], [1], [0, 0, 1, 1], [], []>} : vector<128x4xf32>, vector<4x128xf32>, vector<128x128xf32> -> vector<128x128xf32>
    %125 = arith.addf %122, %124 : vector<128x128xf32>
    %c402 = arith.constant 402 : index
    %c0_99 = arith.constant 0 : index
    %126 = vector.load %arg6[%c402, %c0_99] : memref<576x4xf32, #tpu.memory_space<vmem>>, vector<128x4xf32>
    %cst_100 = arith.constant dense<0.000000e+00> : vector<128x128xf32>
    %127 = tpu.matmul %126, %11, %cst_100 {dimension_numbers = #tpu.dot_dimension_numbers<[1], [0], [0], [1], [0, 0, 1, 1], [], []>} : vector<128x4xf32>, vector<4x128xf32>, vector<128x128xf32> -> vector<128x128xf32>
    %128 = arith.addf %125, %127 : vector<128x128xf32>
    %c403 = arith.constant 403 : index
    %c0_101 = arith.constant 0 : index
    %129 = vector.load %arg6[%c403, %c0_101] : memref<576x4xf32, #tpu.memory_space<vmem>>, vector<128x4xf32>
    %cst_102 = arith.constant dense<0.000000e+00> : vector<128x128xf32>
    %130 = tpu.matmul %129, %13, %cst_102 {dimension_numbers = #tpu.dot_dimension_numbers<[1], [0], [0], [1], [0, 0, 1, 1], [], []>} : vector<128x4xf32>, vector<4x128xf32>, vector<128x128xf32> -> vector<128x128xf32>
    %131 = arith.addf %128, %130 : vector<128x128xf32>
    %c404 = arith.constant 404 : index
    %c0_103 = arith.constant 0 : index
    %132 = vector.load %arg6[%c404, %c0_103] : memref<576x4xf32, #tpu.memory_space<vmem>>, vector<128x4xf32>
    %cst_104 = arith.constant dense<0.000000e+00> : vector<128x128xf32>
    %133 = tpu.matmul %132, %15, %cst_104 {dimension_numbers = #tpu.dot_dimension_numbers<[1], [0], [0], [1], [0, 0, 1, 1], [], []>} : vector<128x4xf32>, vector<4x128xf32>, vector<128x128xf32> -> vector<128x128xf32>
    %134 = arith.addf %131, %133 : vector<128x128xf32>
    %c420 = arith.constant 420 : index
    %c0_105 = arith.constant 0 : index
    %135 = vector.load %arg6[%c420, %c0_105] : memref<576x4xf32, #tpu.memory_space<vmem>>, vector<128x4xf32>
    %cst_106 = arith.constant dense<0.000000e+00> : vector<128x128xf32>
    %136 = tpu.matmul %135, %17, %cst_106 {dimension_numbers = #tpu.dot_dimension_numbers<[1], [0], [0], [1], [0, 0, 1, 1], [], []>} : vector<128x4xf32>, vector<4x128xf32>, vector<128x128xf32> -> vector<128x128xf32>
    %137 = arith.addf %134, %136 : vector<128x128xf32>
    %c421 = arith.constant 421 : index
    %c0_107 = arith.constant 0 : index
    %138 = vector.load %arg6[%c421, %c0_107] : memref<576x4xf32, #tpu.memory_space<vmem>>, vector<128x4xf32>
    %cst_108 = arith.constant dense<0.000000e+00> : vector<128x128xf32>
    %139 = tpu.matmul %138, %19, %cst_108 {dimension_numbers = #tpu.dot_dimension_numbers<[1], [0], [0], [1], [0, 0, 1, 1], [], []>} : vector<128x4xf32>, vector<4x128xf32>, vector<128x128xf32> -> vector<128x128xf32>
    %140 = arith.addf %137, %139 : vector<128x128xf32>
    %c422 = arith.constant 422 : index
    %c0_109 = arith.constant 0 : index
    %141 = vector.load %arg6[%c422, %c0_109] : memref<576x4xf32, #tpu.memory_space<vmem>>, vector<128x4xf32>
    %cst_110 = arith.constant dense<0.000000e+00> : vector<128x128xf32>
    %142 = tpu.matmul %141, %21, %cst_110 {dimension_numbers = #tpu.dot_dimension_numbers<[1], [0], [0], [1], [0, 0, 1, 1], [], []>} : vector<128x4xf32>, vector<4x128xf32>, vector<128x128xf32> -> vector<128x128xf32>
    %143 = arith.addf %140, %142 : vector<128x128xf32>
    %144 = vector.broadcast %22 : vector<1x128xf32> to vector<128x128xf32>
    %145 = arith.addf %143, %144 : vector<128x128xf32>
    %c384_111 = arith.constant 384 : index
    %c0_112 = arith.constant 0 : index
    %146 = vector.load %arg5[%c384_111, %c0_112] : memref<512x128xf32, #tpu.memory_space<vmem>>, vector<128x128xf32>
    tpu.vector_store %arg5[%c384_111, %c0_112], %145 {strides = array<i32>} : memref<512x128xf32, #tpu.memory_space<vmem>>, vector<128x128xf32>,
    return
  }
  func.func @transform_0(%arg0: i32) -> (i32, i32) {
    %c0_i32 = arith.constant 0 : i32
    %c0_i32_0 = arith.constant 0 : i32
    return %arg0, %c0_i32 : i32, i32
  }
  func.func @transform_1(%arg0: i32) -> (i32, i32) {
    %c1_i32 = arith.constant 1 : i32
    %0 = arith.addi %arg0, %c1_i32 : i32
    %c8_i32 = arith.constant 8 : i32
    %1 = arith.muli %0, %c8_i32 : i32
    %c0_i32 = arith.constant 0 : i32
    %c0_i32_0 = arith.constant 0 : i32
    return %1, %c0_i32 : i32, i32
  }
  func.func @transform_2(%arg0: i32) -> (i32, i32, i32) {
    %c0_i32 = arith.constant 0 : i32
    %c0_i32_0 = arith.constant 0 : i32
    %c0_i32_1 = arith.constant 0 : i32
    %c0_i32_2 = arith.constant 0 : i32
    return %c0_i32, %c0_i32_0, %c0_i32_1 : i32, i32, i32
  }
  func.func @transform_3(%arg0: i32) -> (i32, i32) {
    %c0_i32 = arith.constant 0 : i32
    %c0_i32_0 = arith.constant 0 : i32
    %c0_i32_1 = arith.constant 0 : i32
    return %c0_i32, %c0_i32_0 : i32, i32
  }
  func.func @transform_4(%arg0: i32) -> (i32, i32) {
    %c0_i32 = arith.constant 0 : i32
    %c0_i32_0 = arith.constant 0 : i32
    return %arg0, %c0_i32 : i32, i32
  }
}

</mosaic_0001>

<bundles_post_ra>
// kernel: conv_layer_forward.1
= control target key start
LH: loop header
LB: loop body
LE: loop exit
PB: predicated region body
PF: predicated region fallthrough
CT: control target
= control target key end

     0   :  { %s6445_s15 = smov 0   ;;  %s8029_s0 = inlined_call_operand.vmem [shape: f32[1088,4], index: 0, kind: input, shape index: {}, may-alias: {0,1}]   ;;  %s8030_s1 = inlined_call_operand.vmem [shape: f32[1088,4], index: 1, kind: input, shape index: {}, may-alias: {0,1}]   ;;  %s8031_s2 = inlined_call_operand.vmem [shape: f32[9,4,128], index: 2, kind: input, shape index: {}]   ;;  %s8032_s3 = inlined_call_operand.vmem [shape: f32[1,128], index: 3, kind: input, shape index: {}]   ;;  %s8033_s4 = inlined_call_operand.vmem [shape: f32[1024,128], index: 4, kind: output, shape index: {}]  }
   0x1 LB: > { %s5739_s16 = sadd.s32 4294967295, %s6418_s15   ;;  %p5745_p0 = scmp.ge.s32.totalorder %s6418_s15, 1  ;;  %s6418_s15 = sphi %s6445_s15, %s14_s15  }
   0x2   : > { %p190_p1 = scmp.lt.s32.totalorder %s6418_s15, 3 }
   0x4   : > { %p191_p2 = pnand %p5745_p0, %p190_p1 }
   0x5   : > { %s6461_s21 = sshll.u32 (!%p191_p2), %s5739_s16, 6 }
   0x6   : > { %194 = sbr.rel (%p191_p2) target bundleno = 1310 (0x51e), region = 36  ;;  %p232_p3 = scmp.lt.s32.totalorder (!%p191_p2), %s6461_s21, 135 }
   0x7   : > { %p252_p4 = scmp.lt.s32.totalorder (!%p191_p2), %s6461_s21, 127  ;;  %s6383_s10 = sadd.s32 (!%p191_p2), 64, %s6461_s21 }
   0x8   : > { %p244_p5 = scmp.lt.s32.totalorder (!%p191_p2), %s6383_s10, 135 }
   0xb   : > { %v6456_v0 = vld [vmem:[%s8031_s2 + $0x4] sm:$0xf]  ;;  %vm500_vm0 = vcmask 1043456   ;;  %v5754_v1 = vld [vmem:[%s8031_s2 + $0x8] sm:$0xf]  ;;  %s233_s6 = scalar_select %p232_p3, %s6461_s21, 135 }
   0xc   : > { %5761 = vmatpush.msk.msra.mxu0 %vm500_vm0, %v6456_v0  ;;  %5795 = vmatpush.msk.msra.mxu2 %vm500_vm0, %v5754_v1  ;;  %v6469_v2 = vld [vmem:[%s8031_s2 + $0xc] sm:$0xf]  ;;  %v6475_v3 = vld [vmem:[%s8031_s2 + $0x18] sm:$0xf]  ;;  %v6484_v4 = vld [vmem:[%s8031_s2] sm:$0xf] }
   0xd   : > { %5812 = vmatpush.msk.msra.mxu3 %vm500_vm0, %v6469_v2  ;;  %v6489_v5 = vld [vmem:[%s8031_s2 + $0x10] sm:$0xf]  ;;  %v6494_v6 = vld [vmem:[%s8031_s2 + $0x1c] sm:$0xf]  ;;  %5778 = vmatpush.msk.msra.mxu1 %vm500_vm0, %v6484_v4  ;;  %v6504_v7 = vld [vmem:[%s8031_s2 + $0x14] sm:$0xf] }
   0xe   : > { %5863 = vmatpush.msk.msrb.mxu2 %vm500_vm0, %v6475_v3  ;;  %5829 = vmatpush.msk.msrb.mxu0 %vm500_vm0, %v6489_v5  ;;  %s5747_s9 = sshll.u32 %s233_s6, 3  ;;  %vm321_vm1 = vcmask 31744   ;;  %s8035_s10 = smov (!%p244_p5, %s6383_s10), 135 }
   0xf   : > { %5880 = vmatpush.msk.msrb.mxu3 %vm500_vm0, %v6494_v6  ;;  %5846 = vmatpush.msk.msrb.mxu1 %vm500_vm0, %v6504_v7  ;;  %s6513_s12 = scalar_lea.vmem %s8029_s0, %s5747_s9 }
  0x10   : > { %v257_v8 = vld [vmem:[%s6513_s12] sm:$0xff]  ;;  %v258_v9 = vld [vmem:[%s6513_s12 + $0x8] sm:$0xff]  ;;  %v259_v10 = vld [vmem:[%s6513_s12 + $0x10] sm:$0xff]  ;;  %s253_s16 = scalar_select %p252_p4, %s6461_s21, 127 }
  0x11   : > { %322 = vst.msk [vmem:[#allocation2] sm:$0xff] %vm321_vm1, %v257_v8  ;;  %v260_v11 = vld [vmem:[%s6513_s12 + $0x18] sm:$0xff]  ;;  %v261_v12 = vld [vmem:[%s6513_s12 + $0x20] sm:$0xff]  ;;  %v262_v13 = vld [vmem:[%s6513_s12 + $0x28] sm:$0xff]  ;;  %s5750_s21 = sshll.u32 %s8035_s10, 3 }
  0x12   : > { %323 = vst.msk [vmem:[#allocation2 + $0x8] sm:$0xff] %vm321_vm1, %v258_v9  ;;  %v263_v14 = vld [vmem:[%s6513_s12 + $0x30] sm:$0xff]  ;;  %v264_v15 = vld [vmem:[%s6513_s12 + $0x38] sm:$0xff]  ;;  %v265_v20 = vld [vmem:[%s6513_s12 + $0x40] sm:$0xff]  ;;  %s5752_s17 = sshll.u32 %s253_s16, 3  ;;  %s7649_s13 = scalar_lea.vmem %s8030_s1, %s5750_s21 }
  0x13   : > { %324 = vst.msk [vmem:[#allocation2 + $0x10] sm:$0xff] %vm321_vm1, %v259_v10  ;;  %v266_v25 = vld [vmem:[%s6513_s12 + $0x48] sm:$0xff]  ;;  %v267_v29 = vld [vmem:[%s6513_s12 + $0x50] sm:$0xff]  ;;  %v268_v33 = vld [vmem:[%s6513_s12 + $0x58] sm:$0xff]  ;;  %s6948_s23 = scalar_lea.vmem %s8033_s4, %s5752_s17 }
  0x14   : > { %325 = vst.msk [vmem:[#allocation2 + $0x18] sm:$0xff] %vm321_vm1, %v260_v11  ;;  %v269_v37 = vld [vmem:[%s6513_s12 + $0x60] sm:$0xff]  ;;  %v270_v41 = vld [vmem:[%s6513_s12 + $0x68] sm:$0xff]  ;;  %v271_v45 = vld [vmem:[%s6513_s12 + $0x70] sm:$0xff] }
  0x15   : > { %326 = vst.msk [vmem:[#allocation2 + $0x20] sm:$0xff] %vm321_vm1, %v261_v12  ;;  %v272_v49 = vld [vmem:[%s6513_s12 + $0x78] sm:$0xff]  ;;  %v273_v53 = vld [vmem:[%s6513_s12 + $0x80] sm:$0xff]  ;;  %v274_v57 = vld [vmem:[%s6513_s12 + $0x88] sm:$0xff] }
  0x16   : > { %327 = vst.msk [vmem:[#allocation2 + $0x28] sm:$0xff] %vm321_vm1, %v262_v13  ;;  %v275_v61 = vld [vmem:[%s6513_s12 + $0x90] sm:$0xff]  ;;  %v6613_v11 = vld [vmem:[%s8031_s2 + $0x20] sm:$0xf] }
  0x17   : > { %328 = vst.msk [vmem:[#allocation2 + $0x30] sm:$0xff] %vm321_vm1, %v263_v14 }
  0x18   : > { %v420_v16 = vld [vmem:[#allocation2] sm:$0xff]  ;;  %329 = vst.msk [vmem:[#allocation2 + $0x38] sm:$0xff] %vm321_vm1, %v264_v15 }
  0x19   : > { %v436_v17 = vld [vmem:[#allocation2 + $0x1] sm:$0xff]  ;;  %5779 = vmatmul.msk.f32.vlgmr.msra.gmra.mxu1 %vm321_vm1, %v420_v16  ;;  %330 = vst.msk [vmem:[#allocation2 + $0x40] sm:$0xff] %vm321_vm1, %v265_v20 }
  0x1a   : > { %v685_v18 = vld [vmem:[#allocation2 + $0x2] sm:$0xff]  ;;  %5762 = vmatmul.msk.f32.vlgmr.msra.gmra.mxu0 %vm321_vm1, %v436_v17  ;;  %5914 = vmatpush.msk.msra.mxu1 %vm500_vm0, %v6456_v0  ;;  %v686_v23 = vld [vmem:[#allocation2 + $0xa] sm:$0xff]  ;;  %331 = vst.msk [vmem:[#allocation2 + $0x48] sm:$0xff] %vm321_vm1, %v266_v25 }
  0x1b   : > { %5796 = vmatmul.msk.f32.vlgmr.msra.gmra.mxu2 %vm321_vm1, %v685_v18  ;;  %v833_v19 = vld [vmem:[#allocation2 + $0x12] sm:$0xff]  ;;  %v421_v21 = vld [vmem:[#allocation2 + $0x8] sm:$0xff]  ;;  %332 = vst.msk [vmem:[#allocation2 + $0x50] sm:$0xff] %vm321_vm1, %v267_v29  ;;  %5897 = vmatpush.msk.msra.mxu0 %vm500_vm0, %v6613_v11 }
  0x1c   : > { %5931 = vmatpush.msk.msra.mxu2 %vm500_vm0, %v6484_v4  ;;  %5813 = vmatmul.msk.f32.vlgmr.msra.gmra.mxu3 %vm321_vm1, %v833_v19  ;;  %v437_v22 = vld [vmem:[#allocation2 + $0x9] sm:$0xff]  ;;  %v834_v24 = vld [vmem:[#allocation2 + $0x1a] sm:$0xff]  ;;  %v438_v27 = vld [vmem:[#allocation2 + $0x11] sm:$0xff]  ;;  %333 = vst.msk [vmem:[#allocation2 + $0x58] sm:$0xff] %vm321_vm1, %v268_v33 }
  0x1d   : > { %5948 = vmatpush.msk.msra.mxu3 %vm500_vm0, %v5754_v1  ;;  %v422_v26 = vld [vmem:[#allocation2 + $0x10] sm:$0xff]  ;;  %v835_v28 = vld [vmem:[#allocation2 + $0x22] sm:$0xff]  ;;  %v423_v30 = vld [vmem:[#allocation2 + $0x18] sm:$0xff]  ;;  %334 = vst.msk [vmem:[#allocation2 + $0x60] sm:$0xff] %vm321_vm1, %v269_v37 }
  0x1e   : > { %v439_v31 = vld [vmem:[#allocation2 + $0x19] sm:$0xff]  ;;  %v836_v32 = vld [vmem:[#allocation2 + $0x2a] sm:$0xff]  ;;  %v440_v35 = vld [vmem:[#allocation2 + $0x21] sm:$0xff]  ;;  %335 = vst.msk [vmem:[#allocation2 + $0x68] sm:$0xff] %vm321_vm1, %v270_v41 }
  0x1f   : > { %v424_v34 = vld [vmem:[#allocation2 + $0x20] sm:$0xff]  ;;  %v837_v36 = vld [vmem:[#allocation2 + $0x32] sm:$0xff]  ;;  %v425_v38 = vld [vmem:[#allocation2 + $0x28] sm:$0xff]  ;;  %336 = vst.msk [vmem:[#allocation2 + $0x70] sm:$0xff] %vm321_vm1, %v271_v45 }
  0x20   : > { %v441_v39 = vld [vmem:[#allocation2 + $0x29] sm:$0xff]  ;;  %v838_v40 = vld [vmem:[#allocation2 + $0x3a] sm:$0xff]  ;;  %v442_v43 = vld [vmem:[#allocation2 + $0x31] sm:$0xff]  ;;  %337 = vst.msk [vmem:[#allocation2 + $0x78] sm:$0xff] %vm321_vm1, %v272_v49 }
  0x21   : > { %5780 = vmatmul.msk.f32.gmra.mxu1 %vm321_vm1, %v421_v21  ;;  %v426_v42 = vld [vmem:[#allocation2 + $0x30] sm:$0xff]  ;;  %v839_v44 = vld [vmem:[#allocation2 + $0x42] sm:$0xff]  ;;  %v427_v46 = vld [vmem:[#allocation2 + $0x38] sm:$0xff]  ;;  %338 = vst.msk [vmem:[#allocation2 + $0x80] sm:$0xff] %vm321_vm1, %v273_v53 }
  0x22   : > { %5763 = vmatmul.msk.f32.gmra.mxu0 %vm321_vm1, %v437_v22  ;;  %v443_v47 = vld [vmem:[#allocation2 + $0x39] sm:$0xff]  ;;  %v840_v48 = vld [vmem:[#allocation2 + $0x4a] sm:$0xff]  ;;  %v444_v51 = vld [vmem:[#allocation2 + $0x41] sm:$0xff]  ;;  %339 = vst.msk [vmem:[#allocation2 + $0x88] sm:$0xff] %vm321_vm1, %v274_v57 }
  0x23   : > { %5797 = vmatmul.msk.f32.gmra.mxu2 %vm321_vm1, %v686_v23  ;;  %v428_v50 = vld [vmem:[#allocation2 + $0x40] sm:$0xff]  ;;  %v841_v52 = vld [vmem:[#allocation2 + $0x52] sm:$0xff]  ;;  %v429_v54 = vld [vmem:[#allocation2 + $0x48] sm:$0xff]  ;;  %340 = vst.msk [vmem:[#allocation2 + $0x90] sm:$0xff] %vm321_vm1, %v275_v61 }
  0x24   : > { %5814 = vmatmul.msk.f32.gmra.mxu3 %vm321_vm1, %v834_v24  ;;  %v445_v55 = vld [vmem:[#allocation2 + $0x49] sm:$0xff]  ;;  %v842_v56 = vld [vmem:[#allocation2 + $0x5a] sm:$0xff]  ;;  %v446_v59 = vld [vmem:[#allocation2 + $0x51] sm:$0xff] }
  0x25   : > { %v430_v58 = vld [vmem:[#allocation2 + $0x50] sm:$0xff]  ;;  %v843_v60 = vld [vmem:[#allocation2 + $0x62] sm:$0xff]  ;;  %v431_v62 = vld [vmem:[#allocation2 + $0x58] sm:$0xff] }
  0x26   : > { %v447_v63 = vld [vmem:[#allocation2 + $0x59] sm:$0xff]  ;;  %v844_v1 = vld [vmem:[#allocation2 + $0x6a] sm:$0xff]  ;;  %v448_v9 = vld [vmem:[#allocation2 + $0x61] sm:$0xff] }
  0x27   : > { %v432_v8 = vld [vmem:[#allocation2 + $0x60] sm:$0xff]  ;;  %v845_v10 = vld [vmem:[#allocation2 + $0x72] sm:$0xff]  ;;  %v433_v12 = vld [vmem:[#allocation2 + $0x68] sm:$0xff] }
  0x28   : > { %v449_v13 = vld [vmem:[#allocation2 + $0x69] sm:$0xff]  ;;  %v846_v14 = vld [vmem:[#allocation2 + $0x7a] sm:$0xff]  ;;  %v450_v16 = vld [vmem:[#allocation2 + $0x71] sm:$0xff] }
  0x29   : > { %5781 = vmatmul.msk.f32.gmra.mxu1 %vm321_vm1, %v422_v26  ;;  %v434_v15 = vld [vmem:[#allocation2 + $0x70] sm:$0xff]  ;;  %v6621_v17 = vld [vmem:[#allocation2 + $0x82] sm:$0xff]  ;;  %v435_v18 = vld [vmem:[#allocation2 + $0x78] sm:$0xff] }
  0x2a   : > { %5764 = vmatmul.msk.f32.gmra.mxu0 %vm321_vm1, %v438_v27  ;;  %v6628_v20 = vld [vmem:[#allocation2 + $0x8a] sm:$0xff]  ;;  %v1129_v22 = vld [vmem:[#allocation2 + $0x14] sm:$0xff]  ;;  %v1428_v53 = vld [vmem:[#allocation2 + $0x3d] sm:$0xff] }
  0x2b   : > { %5798 = vmatmul.msk.f32.gmra.mxu2 %vm321_vm1, %v833_v19  ;;  %v451_v19 = vld [vmem:[#allocation2 + $0x79] sm:$0xff]  ;;  %v1277_v25 = vld [vmem:[#allocation2 + $0x24] sm:$0xff] }
  0x2c   : > { %5815 = vmatmul.msk.f32.gmra.mxu3 %vm321_vm1, %v835_v28  ;;  %v1425_v26 = vld [vmem:[#allocation2 + $0x25] sm:$0xff]  ;;  %v1279_v41 = vld [vmem:[#allocation2 + $0x34] sm:$0xff] }
  0x2d   : > { %v1281_v61 = vld [vmem:[#allocation2 + $0x44] sm:$0xff] }
  0x31   : > { %5782 = vmatmul.msk.f32.gmra.mxu1 %vm321_vm1, %v423_v30 }
  0x32   : > { %5765 = vmatmul.msk.f32.gmra.mxu0 %vm321_vm1, %v439_v31  ;;  %v1130_v31 = vld [vmem:[#allocation2 + $0x1c] sm:$0xff] }
  0x33   : > { %5799 = vmatmul.msk.f32.gmra.mxu2 %vm321_vm1, %v834_v24  ;;  %v981_v24 = vld [vmem:[#allocation2 + $0x13] sm:$0xff] }
  0x34   : > { %5816 = vmatmul.msk.f32.gmra.mxu3 %vm321_vm1, %v836_v32 }
  0x39   : > { %5783 = vmatmul.msk.f32.gmra.mxu1 %vm321_vm1, %v424_v34  ;;  %v982_v34 = vld [vmem:[#allocation2 + $0x1b] sm:$0xff] }
  0x3a   : > { %5766 = vmatmul.msk.f32.gmra.mxu0 %vm321_vm1, %v440_v35 }
  0x3b   : > { %5800 = vmatmul.msk.f32.gmra.mxu2 %vm321_vm1, %v835_v28 }
  0x3c   : > { %5817 = vmatmul.msk.f32.gmra.mxu3 %vm321_vm1, %v837_v36 }
  0x41   : > { %5784 = vmatmul.msk.f32.gmra.mxu1 %vm321_vm1, %v425_v38 }
  0x42   : > { %5767 = vmatmul.msk.f32.gmra.mxu0 %vm321_vm1, %v441_v39 }
  0x43   : > { %5801 = vmatmul.msk.f32.gmra.mxu2 %vm321_vm1, %v836_v32 }
  0x44   : > { %5818 = vmatmul.msk.f32.gmra.mxu3 %vm321_vm1, %v838_v40 }
  0x49   : > { %5785 = vmatmul.msk.f32.gmra.mxu1 %vm321_vm1, %v426_v42 }
  0x4a   : > { %5768 = vmatmul.msk.f32.gmra.mxu0 %vm321_vm1, %v442_v43  ;;  %v1427_v43 = vld [vmem:[#allocation2 + $0x35] sm:$0xff] }
  0x4b   : > { %5802 = vmatmul.msk.f32.gmra.mxu2 %vm321_vm1, %v837_v36 }
  0x4c   : > { %5819 = vmatmul.msk.f32.gmra.mxu3 %vm321_vm1, %v839_v44 }
  0x51   : > { %5786 = vmatmul.msk.f32.gmra.mxu1 %vm321_vm1, %v427_v46 }
  0x52   : > { %5769 = vmatmul.msk.f32.gmra.mxu0 %vm321_vm1, %v443_v47 }
  0x53   : > { %5803 = vmatmul.msk.f32.gmra.mxu2 %vm321_vm1, %v838_v40  ;;  %v983_v40 = vld [vmem:[#allocation2 + $0x23] sm:$0xff] }
  0x54   : > { %5820 = vmatmul.msk.f32.gmra.mxu3 %vm321_vm1, %v840_v48 }
  0x59   : > { %5787 = vmatmul.msk.f32.gmra.mxu1 %vm321_vm1, %v428_v50  ;;  %v984_v50 = vld [vmem:[#allocation2 + $0x2b] sm:$0xff] }
  0x5a   : > { %5770 = vmatmul.msk.f32.gmra.mxu0 %vm321_vm1, %v444_v51  ;;  %v1280_v51 = vld [vmem:[#allocation2 + $0x3c] sm:$0xff] }
  0x5b   : > { %5804 = vmatmul.msk.f32.gmra.mxu2 %vm321_vm1, %v839_v44 }
  0x5c   : > { %5821 = vmatmul.msk.f32.gmra.mxu3 %vm321_vm1, %v841_v52 }
  0x61   : > { %5788 = vmatmul.msk.f32.gmra.mxu1 %vm321_vm1, %v429_v54 }
  0x62   : > { %5771 = vmatmul.msk.f32.gmra.mxu0 %vm321_vm1, %v445_v55 }
  0x63   : > { %5805 = vmatmul.msk.f32.gmra.mxu2 %vm321_vm1, %v840_v48 }
  0x64   : > { %5822 = vmatmul.msk.f32.gmra.mxu3 %vm321_vm1, %v842_v56 }
  0x69   : > { %5789 = vmatmul.msk.f32.gmra.mxu1 %vm321_vm1, %v430_v58 }
  0x6a   : > { %5772 = vmatmul.msk.f32.gmra.mxu0 %vm321_vm1, %v446_v59 }
  0x6b   : > { %5806 = vmatmul.msk.f32.gmra.mxu2 %vm321_vm1, %v841_v52 }
  0x6c   : > { %5823 = vmatmul.msk.f32.gmra.mxu3 %vm321_vm1, %v843_v60 }
  0x71   : > { %5790 = vmatmul.msk.f32.gmra.mxu1 %vm321_vm1, %v431_v62 }
  0x72   : > { %5773 = vmatmul.msk.f32.gmra.mxu0 %vm321_vm1, %v447_v63  ;;  %v1429_v63 = vld [vmem:[#allocation2 + $0x45] sm:$0xff] }
  0x73   : > { %5807 = vmatmul.msk.f32.gmra.mxu2 %vm321_vm1, %v842_v56 }
  0x74   : > { %5824 = vmatmul.msk.f32.gmra.mxu3 %vm321_vm1, %v844_v1 }
  0x79   : > { %5791 = vmatmul.msk.f32.gmra.mxu1 %vm321_vm1, %v432_v8 }
  0x7a   : > { %5774 = vmatmul.msk.f32.gmra.mxu0 %vm321_vm1, %v448_v9 }
  0x7b   : > { %5808 = vmatmul.msk.f32.gmra.mxu2 %vm321_vm1, %v843_v60  ;;  %v985_v60 = vld [vmem:[#allocation2 + $0x33] sm:$0xff] }
  0x7c   : > { %5825 = vmatmul.msk.f32.gmra.mxu3 %vm321_vm1, %v845_v10 }
  0x81   : > { %5792 = vmatmul.msk.f32.gmra.mxu1 %vm321_vm1, %v433_v12 }
  0x82   : > { %5775 = vmatmul.msk.f32.gmra.mxu0 %vm321_vm1, %v449_v13 }
  0x83   : > { %5809 = vmatmul.msk.f32.gmra.mxu2 %vm321_vm1, %v844_v1 }
  0x84   : > { %5826 = vmatmul.msk.f32.gmra.mxu3 %vm321_vm1, %v846_v14 }
  0x89   : > { %5793 = vmatmul.msk.f32.gmra.mxu1 %vm321_vm1, %v434_v15  ;;  %v1282_v15 = vld [vmem:[#allocation2 + $0x4c] sm:$0xff] }
  0x8a   : > { %5776 = vmatmul.msk.f32.gmra.mxu0 %vm321_vm1, %v450_v16 }
  0x8b   : > { %5810 = vmatmul.msk.f32.gmra.mxu2 %vm321_vm1, %v845_v10 }
  0x8c   : > { %5827 = vmatmul.msk.f32.gmra.mxu3 %vm321_vm1, %v6621_v17 }
  0x91   : > { %5794 = vmatmul.msk.f32.gmra.mxu1 %vm321_vm1, %v435_v18  ;;  %v1430_v18 = vld [vmem:[#allocation2 + $0x4d] sm:$0xff] }
  0x92   : > { %5777 = vmatmul.msk.f32.gmra.mxu0 %vm321_vm1, %v451_v19 }
  0x93   : > { %5811 = vmatmul.msk.f32.gmra.mxu2 %vm321_vm1, %v846_v14  ;;  %v986_v14 = vld [vmem:[#allocation2 + $0x3b] sm:$0xff] }
  0x94   : > { %5828 = vmatmul.msk.f32.gmra.mxu3 %vm321_vm1, %v6628_v20 }
  0x96   : > { %v637_v21 = vpop.f32.mrf.mxu1 }
  0x97   : > { %v521_v23 = vpop.f32.mrf.mxu0 }
  0x98   : > { %v638_v27 = vadd.f32 %v637_v21, %v521_v23 }
  0x99   : > { %5847 = vmatmul.msk.f32.vlgmr.msrb.gmra.mxu1 %vm321_vm1, %v1129_v22 }
  0x9a   : > { %5830 = vmatmul.msk.f32.vlgmr.msrb.gmra.mxu0 %vm321_vm1, %v981_v24  ;;  %5982 = vmatpush.msk.msrb.mxu1 %vm500_vm0, %v6489_v5 }
  0x9b   : > { %5864 = vmatmul.msk.f32.vlgmr.msrb.gmra.mxu2 %vm321_vm1, %v1277_v25  ;;  %5965 = vmatpush.msk.msrb.mxu0 %vm500_vm0, %v6469_v2  ;;  %v1426_v2 = vld [vmem:[#allocation2 + $0x2d] sm:$0xff] }
  0x9c   : > { %5999 = vmatpush.msk.msrb.mxu2 %vm500_vm0, %v6504_v7  ;;  %5881 = vmatmul.msk.f32.vlgmr.msrb.gmra.mxu3 %vm321_vm1, %v1425_v26  ;;  %v1278_v7 = vld [vmem:[#allocation2 + $0x2c] sm:$0xff]  ;;  %v987_v26 = vld [vmem:[#allocation2 + $0x43] sm:$0xff] }
  0x9d   : > { %6016 = vmatpush.msk.msrb.mxu3 %vm500_vm0, %v6475_v3 }
  0x9e   : > { %v769_v28 = vpop.f32.mrf.mxu2  ;;  %v640_v30 = vpop.f32.mrf.mxu1 }
  0x9f   : > { %v817_v29 = vadd.f32 %v769_v28, %v638_v27  ;;  %v917_v32 = vpop.f32.mrf.mxu3  ;;  %v524_v33 = vpop.f32.mrf.mxu0  ;;  %v1283_v27 = vld [vmem:[#allocation2 + $0x54] sm:$0xff] }
  0xa0   : > { %v641_v5 = vadd.f32 %v640_v30, %v524_v33 }
  0xa1   : > { %v6647_v35 = vadd.f32 %v917_v32, %v817_v29  ;;  %5848 = vmatmul.msk.f32.gmra.mxu1 %vm321_vm1, %v1130_v31  ;;  %v1431_v29 = vld [vmem:[#allocation2 + $0x55] sm:$0xff] }
  0xa2   : > { %5831 = vmatmul.msk.f32.gmra.mxu0 %vm321_vm1, %v982_v34 }
  0xa3   : > { %5865 = vmatmul.msk.f32.gmra.mxu2 %vm321_vm1, %v1278_v7 }
  0xa4   : > { %5882 = vmatmul.msk.f32.gmra.mxu3 %vm321_vm1, %v1426_v2  ;;  %v988_v2 = vld [vmem:[#allocation2 + $0x4b] sm:$0xff] }
  0xa6   : > { %v772_v3 = vpop.f32.mrf.mxu2  ;;  %v643_v37 = vpop.f32.mrf.mxu1 }
  0xa7   : > { %v818_v36 = vadd.f32 %v772_v3, %v641_v5  ;;  %v920_v38 = vpop.f32.mrf.mxu3  ;;  %v527_v39 = vpop.f32.mrf.mxu0  ;;  %v1284_v5 = vld [vmem:[#allocation2 + $0x5c] sm:$0xff] }
  0xa8   : > { %v644_v44 = vadd.f32 %v643_v37, %v527_v39 }
  0xa9   : > { %v6653_v42 = vadd.f32 %v920_v38, %v818_v36  ;;  %5849 = vmatmul.msk.f32.gmra.mxu1 %vm321_vm1, %v1277_v25  ;;  %v1432_v36 = vld [vmem:[#allocation2 + $0x5d] sm:$0xff] }
  0xaa   : > { %5832 = vmatmul.msk.f32.gmra.mxu0 %vm321_vm1, %v983_v40 }
  0xab   : > { %5866 = vmatmul.msk.f32.gmra.mxu2 %vm321_vm1, %v1279_v41 }
  0xac   : > { %5883 = vmatmul.msk.f32.gmra.mxu3 %vm321_vm1, %v1427_v43 }
  0xae   : > { %v775_v45 = vpop.f32.mrf.mxu2  ;;  %v646_v47 = vpop.f32.mrf.mxu1 }
  0xaf   : > { %v819_v46 = vadd.f32 %v775_v45, %v644_v44  ;;  %v923_v48 = vpop.f32.mrf.mxu3  ;;  %v530_v49 = vpop.f32.mrf.mxu0  ;;  %v989_v44 = vld [vmem:[#allocation2 + $0x53] sm:$0xff]  ;;  %v1285_v45 = vld [vmem:[#allocation2 + $0x64] sm:$0xff] }
  0xb0   : > { %v647_v54 = vadd.f32 %v646_v47, %v530_v49  ;;  %v1433_v47 = vld [vmem:[#allocation2 + $0x65] sm:$0xff] }
  0xb1   : > { %v6659_v52 = vadd.f32 %v923_v48, %v819_v46  ;;  %5850 = vmatmul.msk.f32.gmra.mxu1 %vm321_vm1, %v1278_v7 }
  0xb2   : > { %5833 = vmatmul.msk.f32.gmra.mxu0 %vm321_vm1, %v984_v50 }
  0xb3   : > { %5867 = vmatmul.msk.f32.gmra.mxu2 %vm321_vm1, %v1280_v51 }
  0xb4   : > { %5884 = vmatmul.msk.f32.gmra.mxu3 %vm321_vm1, %v1428_v53 }
  0xb6   : > { %v778_v55 = vpop.f32.mrf.mxu2  ;;  %v649_v57 = vpop.f32.mrf.mxu1 }
  0xb7   : > { %v820_v56 = vadd.f32 %v778_v55, %v647_v54  ;;  %v926_v58 = vpop.f32.mrf.mxu3  ;;  %v533_v59 = vpop.f32.mrf.mxu0  ;;  %v990_v55 = vld [vmem:[#allocation2 + $0x5b] sm:$0xff] }
  0xb8   : > { %v650_v1 = vadd.f32 %v649_v57, %v533_v59  ;;  %v276_v59 = vld [vmem:[%s6513_s12 + $0x98] sm:$0xff] }
  0xb9   : > { %v6665_v62 = vadd.f32 %v926_v58, %v820_v56  ;;  %5851 = vmatmul.msk.f32.gmra.mxu1 %vm321_vm1, %v1279_v41  ;;  %v1286_v56 = vld [vmem:[#allocation2 + $0x6c] sm:$0xff]  ;;  %341 = vst.msk [vmem:[#allocation2 + $0x98] sm:$0xff] %vm321_vm1, %v276_v59 }
  0xba   : > { %5834 = vmatmul.msk.f32.gmra.mxu0 %vm321_vm1, %v985_v60  ;;  %v1434_v58 = vld [vmem:[#allocation2 + $0x6d] sm:$0xff] }
  0xbb   : > { %5868 = vmatmul.msk.f32.gmra.mxu2 %vm321_vm1, %v1281_v61 }
  0xbc   : > { %5885 = vmatmul.msk.f32.gmra.mxu3 %vm321_vm1, %v1429_v63 }
  0xbe   : > { %v781_v8 = vpop.f32.mrf.mxu2  ;;  %v652_v10 = vpop.f32.mrf.mxu1 }
  0xbf   : > { %v821_v9 = vadd.f32 %v781_v8, %v650_v1  ;;  %v929_v12 = vpop.f32.mrf.mxu3  ;;  %v536_v13 = vpop.f32.mrf.mxu0 }
  0xc0   : > { %v653_v19 = vadd.f32 %v652_v10, %v536_v13  ;;  %v991_v10 = vld [vmem:[#allocation2 + $0x63] sm:$0xff]  ;;  %v6729_v59 = vld [vmem:[#allocation2 + $0x94] sm:$0xff] }
  0xc1   : > { %v6671_v16 = vadd.f32 %v929_v12, %v821_v9  ;;  %5852 = vmatmul.msk.f32.gmra.mxu1 %vm321_vm1, %v1280_v51  ;;  %v1287_v12 = vld [vmem:[#allocation2 + $0x74] sm:$0xff] }
  0xc2   : > { %5835 = vmatmul.msk.f32.gmra.mxu0 %vm321_vm1, %v986_v14  ;;  %v1435_v14 = vld [vmem:[#allocation2 + $0x75] sm:$0xff] }
  0xc3   : > { %5869 = vmatmul.msk.f32.gmra.mxu2 %vm321_vm1, %v1282_v15 }
  0xc4   : > { %5886 = vmatmul.msk.f32.gmra.mxu3 %vm321_vm1, %v1430_v18 }
  0xc6   : > { %v784_v21 = vpop.f32.mrf.mxu2  ;;  %v655_v23 = vpop.f32.mrf.mxu1 }
  0xc7   : > { %v822_v22 = vadd.f32 %v784_v21, %v653_v19  ;;  %v932_v24 = vpop.f32.mrf.mxu3  ;;  %v539_v25 = vpop.f32.mrf.mxu0 }
  0xc8   : > { %v656_v30 = vadd.f32 %v655_v23, %v539_v25  ;;  %v992_v25 = vld [vmem:[#allocation2 + $0x6b] sm:$0xff] }
  0xc9   : > { %v6677_v28 = vadd.f32 %v932_v24, %v822_v22  ;;  %5853 = vmatmul.msk.f32.gmra.mxu1 %vm321_vm1, %v1281_v61 }
  0xca   : > { %5836 = vmatmul.msk.f32.gmra.mxu0 %vm321_vm1, %v987_v26  ;;  %v1288_v26 = vld [vmem:[#allocation2 + $0x7c] sm:$0xff] }
  0xcb   : > { %5870 = vmatmul.msk.f32.gmra.mxu2 %vm321_vm1, %v1283_v27 }
  0xcc   : > { %5887 = vmatmul.msk.f32.gmra.mxu3 %vm321_vm1, %v1431_v29  ;;  %v1436_v29 = vld [vmem:[#allocation2 + $0x7d] sm:$0xff] }
  0xce   : > { %v787_v31 = vpop.f32.mrf.mxu2  ;;  %v658_v33 = vpop.f32.mrf.mxu1 }
  0xcf   : > { %v823_v32 = vadd.f32 %v787_v31, %v656_v30  ;;  %v935_v34 = vpop.f32.mrf.mxu3  ;;  %v542_v7 = vpop.f32.mrf.mxu0 }
  0xd0   : > { %v659_v37 = vadd.f32 %v658_v33, %v542_v7 }
  0xd1   : > { %v6683_v3 = vadd.f32 %v935_v34, %v823_v32  ;;  %5854 = vmatmul.msk.f32.gmra.mxu1 %vm321_vm1, %v1282_v15  ;;  %v277_v15 = vld [vmem:[%s6513_s12 + $0xa0] sm:$0xff] }
  0xd2   : > { %5837 = vmatmul.msk.f32.gmra.mxu0 %vm321_vm1, %v988_v2  ;;  %342 = vst.msk [vmem:[#allocation2 + $0xa0] sm:$0xff] %vm321_vm1, %v277_v15  ;;  %v993_v2 = vld [vmem:[#allocation2 + $0x73] sm:$0xff] }
  0xd3   : > { %5871 = vmatmul.msk.f32.gmra.mxu2 %vm321_vm1, %v1284_v5 }
  0xd4   : > { %5888 = vmatmul.msk.f32.gmra.mxu3 %vm321_vm1, %v1432_v36 }
  0xd6   : > { %v790_v38 = vpop.f32.mrf.mxu2  ;;  %v661_v40 = vpop.f32.mrf.mxu1 }
  0xd7   : > { %v824_v39 = vadd.f32 %v790_v38, %v659_v37  ;;  %v938_v41 = vpop.f32.mrf.mxu3  ;;  %v545_v43 = vpop.f32.mrf.mxu0  ;;  %v1437_v37 = vld [vmem:[#allocation2 + $0x85] sm:$0xff] }
  0xd8   : > { %v662_v48 = vadd.f32 %v661_v40, %v545_v43 }
  0xd9   : > { %v6689_v46 = vadd.f32 %v938_v41, %v824_v39  ;;  %5855 = vmatmul.msk.f32.gmra.mxu1 %vm321_vm1, %v1283_v27  ;;  %v6738_v15 = vld [vmem:[#allocation2 + $0x9c] sm:$0xff] }
  0xda   : > { %5838 = vmatmul.msk.f32.gmra.mxu0 %vm321_vm1, %v989_v44 }
  0xdb   : > { %5872 = vmatmul.msk.f32.gmra.mxu2 %vm321_vm1, %v1285_v45 }
  0xdc   : > { %5889 = vmatmul.msk.f32.gmra.mxu3 %vm321_vm1, %v1433_v47  ;;  %v1290_v47 = vld [vmem:[#allocation2 + $0x8c] sm:$0xff] }
  0xde   : > { %v793_v49 = vpop.f32.mrf.mxu2  ;;  %v664_v51 = vpop.f32.mrf.mxu1 }
  0xdf   : > { %v825_v50 = vadd.f32 %v793_v49, %v662_v48  ;;  %v941_v53 = vpop.f32.mrf.mxu3  ;;  %v548_v54 = vpop.f32.mrf.mxu0  ;;  %v1438_v49 = vld [vmem:[#allocation2 + $0x8d] sm:$0xff] }
  0xe0   : > { %v665_v60 = vadd.f32 %v664_v51, %v548_v54 }
  0xe1   : > { %v6695_v57 = vadd.f32 %v941_v53, %v825_v50  ;;  %5856 = vmatmul.msk.f32.gmra.mxu1 %vm321_vm1, %v1284_v5  ;;  %v1289_v5 = vld [vmem:[#allocation2 + $0x84] sm:$0xff] }
  0xe2   : > { %5839 = vmatmul.msk.f32.gmra.mxu0 %vm321_vm1, %v990_v55 }
  0xe3   : > { %5873 = vmatmul.msk.f32.gmra.mxu2 %vm321_vm1, %v1286_v56 }
  0xe4   : > { %5890 = vmatmul.msk.f32.gmra.mxu3 %vm321_vm1, %v1434_v58  ;;  %v995_v58 = vld [vmem:[#allocation2 + $0x83] sm:$0xff] }
  0xe6   : > { %v796_v61 = vpop.f32.mrf.mxu2  ;;  %v667_v1 = vpop.f32.mrf.mxu1 }
  0xe7   : > { %v826_v63 = vadd.f32 %v796_v61, %v665_v60  ;;  %v944_v8 = vpop.f32.mrf.mxu3  ;;  %v551_v9 = vpop.f32.mrf.mxu0  ;;  %v1439_v61 = vld [vmem:[#allocation2 + $0x95] sm:$0xff] }
  0xe8   : > { %v668_v18 = vadd.f32 %v667_v1, %v551_v9 }
  0xe9   : > { %v6703_v13 = vadd.f32 %v944_v8, %v826_v63  ;;  %5857 = vmatmul.msk.f32.gmra.mxu1 %vm321_vm1, %v1285_v45  ;;  %v994_v45 = vld [vmem:[#allocation2 + $0x7b] sm:$0xff] }
  0xea   : > { %5840 = vmatmul.msk.f32.gmra.mxu0 %vm321_vm1, %v991_v10 }
  0xeb   : > { %5874 = vmatmul.msk.f32.gmra.mxu2 %vm321_vm1, %v1287_v12 }
  0xec   : > { %5891 = vmatmul.msk.f32.gmra.mxu3 %vm321_vm1, %v1435_v14  ;;  %v996_v14 = vld [vmem:[#allocation2 + $0x8b] sm:$0xff] }
  0xee   : > { %v799_v19 = vpop.f32.mrf.mxu2  ;;  %v670_v22 = vpop.f32.mrf.mxu1 }
  0xef   : > { %v827_v21 = vadd.f32 %v799_v19, %v668_v18  ;;  %v947_v23 = vpop.f32.mrf.mxu3  ;;  %v554_v24 = vpop.f32.mrf.mxu0  ;;  %v1440_v19 = vld [vmem:[#allocation2 + $0x9d] sm:$0xff] }
  0xf0   : > { %v671_v30 = vadd.f32 %v670_v22, %v554_v24 }
  0xf1   : > { %v6711_v27 = vadd.f32 %v947_v23, %v827_v21  ;;  %5858 = vmatmul.msk.f32.gmra.mxu1 %vm321_vm1, %v1286_v56  ;;  %v278_v21 = vld [vmem:[%s6513_s12 + $0xa8] sm:$0xff] }
  0xf2   : > { %5841 = vmatmul.msk.f32.gmra.mxu0 %vm321_vm1, %v992_v25  ;;  %343 = vst.msk [vmem:[#allocation2 + $0xa8] sm:$0xff] %vm321_vm1, %v278_v21 }
  0xf3   : > { %5875 = vmatmul.msk.f32.gmra.mxu2 %vm321_vm1, %v1288_v26 }
  0xf4   : > { %5892 = vmatmul.msk.f32.gmra.mxu3 %vm321_vm1, %v1436_v29 }
  0xf6   : > { %v802_v31 = vpop.f32.mrf.mxu2  ;;  %v673_v33 = vpop.f32.mrf.mxu1 }
  0xf7   : > { %v828_v32 = vadd.f32 %v802_v31, %v671_v30  ;;  %v950_v34 = vpop.f32.mrf.mxu3  ;;  %v557_v7 = vpop.f32.mrf.mxu0  ;;  %v1573_v31 = vld [vmem:[#allocation2 + $0x26] sm:$0xff] }
  0xf8   : > { %v674_v38 = vadd.f32 %v673_v33, %v557_v7 }
  0xf9   : > { %v6717_v36 = vadd.f32 %v950_v34, %v828_v32  ;;  %5859 = vmatmul.msk.f32.gmra.mxu1 %vm321_vm1, %v1287_v12  ;;  %v1756_v32 = vld [vmem:[#allocation2 + $0x80] sm:$0xff] }
  0xfa   : > { %5842 = vmatmul.msk.f32.gmra.mxu0 %vm321_vm1, %v993_v2  ;;  %v279_v2 = vld [vmem:[%s6513_s12 + $0xb0] sm:$0xff] }
  0xfb   : > { %5876 = vmatmul.msk.f32.gmra.mxu2 %vm321_vm1, %v1289_v5  ;;  %344 = vst.msk [vmem:[#allocation2 + $0xb0] sm:$0xff] %vm321_vm1, %v279_v2 }
  0xfc   : > { %5893 = vmatmul.msk.f32.gmra.mxu3 %vm321_vm1, %v1437_v37 }
  0xfe   : > { %v805_v39 = vpop.f32.mrf.mxu2  ;;  %v676_v41 = vpop.f32.mrf.mxu1 }
  0xff   : > { %v829_v40 = vadd.f32 %v805_v39, %v674_v38  ;;  %v953_v43 = vpop.f32.mrf.mxu3  ;;  %v560_v44 = vpop.f32.mrf.mxu0  ;;  %v1773_v38 = vld [vmem:[#allocation2 + $0x89] sm:$0xff] }
 0x100   : > { %v677_v50 = vadd.f32 %v676_v41, %v560_v44 }
 0x101   : > { %v6723_v48 = vadd.f32 %v953_v43, %v829_v40  ;;  %5860 = vmatmul.msk.f32.gmra.mxu1 %vm321_vm1, %v1288_v26  ;;  %v1772_v26 = vld [vmem:[#allocation2 + $0x81] sm:$0xff]  ;;  %v1574_v40 = vld [vmem:[#allocation2 + $0x2e] sm:$0xff] }
 0x102   : > { %5843 = vmatmul.msk.f32.gmra.mxu0 %vm321_vm1, %v994_v45 }
 0x103   : > { %5877 = vmatmul.msk.f32.gmra.mxu2 %vm321_vm1, %v1290_v47 }
 0x104   : > { %5894 = vmatmul.msk.f32.gmra.mxu3 %vm321_vm1, %v1438_v49 }
 0x106   : > { %v808_v51 = vpop.f32.mrf.mxu2  ;;  %v679_v54 = vpop.f32.mrf.mxu1 }
 0x107   : > { %v830_v53 = vadd.f32 %v808_v51, %v677_v50  ;;  %v956_v55 = vpop.f32.mrf.mxu3  ;;  %v563_v56 = vpop.f32.mrf.mxu0  ;;  %v1575_v50 = vld [vmem:[#allocation2 + $0x36] sm:$0xff] }
 0x108   : > { %v680_v63 = vadd.f32 %v679_v54, %v563_v56  ;;  %v1758_v51 = vld [vmem:[#allocation2 + $0x90] sm:$0xff]  ;;  %v281_v56 = vld [vmem:[%s6513_s12 + $0xc0] sm:$0xff] }
 0x109   : > { %v6731_v60 = vadd.f32 %v956_v55, %v830_v53  ;;  %5861 = vmatmul.msk.f32.gmra.mxu1 %vm321_vm1, %v1289_v5  ;;  %v6780_v55 = vld [vmem:[#allocation2 + $0x92] sm:$0xff]  ;;  %346 = vst.msk [vmem:[#allocation2 + $0xc0] sm:$0xff] %vm321_vm1, %v281_v56 }
 0x10a   : > { %5844 = vmatmul.msk.f32.gmra.mxu0 %vm321_vm1, %v995_v58 }
 0x10b   : > { %5878 = vmatmul.msk.f32.gmra.mxu2 %vm321_vm1, %v6729_v59 }
 0x10c   : > { %5895 = vmatmul.msk.f32.gmra.mxu3 %vm321_vm1, %v1439_v61 }
 0x10e   : > { %v811_v1 = vpop.f32.mrf.mxu2  ;;  %v682_v9 = vpop.f32.mrf.mxu1 }
 0x10f   : > { %v831_v8 = vadd.f32 %v811_v1, %v680_v63  ;;  %v959_v10 = vpop.f32.mrf.mxu3  ;;  %v566_v12 = vpop.f32.mrf.mxu0 }
 0x110   : > { %v683_v22 = vadd.f32 %v682_v9, %v566_v12  ;;  %v1576_v9 = vld [vmem:[#allocation2 + $0x3e] sm:$0xff] }
 0x111   : > { %v6740_v18 = vadd.f32 %v959_v10, %v831_v8  ;;  %5862 = vmatmul.msk.f32.gmra.mxu1 %vm321_vm1, %v1290_v47  ;;  %v1774_v47 = vld [vmem:[#allocation2 + $0x91] sm:$0xff] }
 0x112   : > { %5845 = vmatmul.msk.f32.gmra.mxu0 %vm321_vm1, %v996_v14  ;;  %v1759_v10 = vld [vmem:[#allocation2 + $0x98] sm:$0xff] }
 0x113   : > { %5879 = vmatmul.msk.f32.gmra.mxu2 %vm321_vm1, %v6738_v15 }
 0x114   : > { %5896 = vmatmul.msk.f32.gmra.mxu3 %vm321_vm1, %v1440_v19  ;;  %v6792_v19 = vld [vmem:[#allocation2 + $0x9a] sm:$0xff] }
 0x116   : > { %v814_v23 = vpop.f32.mrf.mxu2  ;;  %v1213_v25 = vpop.f32.mrf.mxu1 }
 0x117   : > { %v832_v24 = vadd.f32 %v814_v23, %v683_v22  ;;  %v962_v29 = vpop.f32.mrf.mxu3  ;;  %v1065_v30 = vpop.f32.mrf.mxu0  ;;  %v282_v22 = vld [vmem:[%s6513_s12 + $0xc8] sm:$0xff] }
 0x118   : > { %v1113_v34 = vadd.f32 %v1065_v30, %v6647_v35  ;;  %347 = vst.msk [vmem:[#allocation2 + $0xc8] sm:$0xff] %vm321_vm1, %v282_v22  ;;  %v1577_v30 = vld [vmem:[#allocation2 + $0x46] sm:$0xff] }
 0x119   : > { %v6749_v33 = vadd.f32 %v962_v29, %v832_v24  ;;  %5915 = vmatmul.msk.f32.vlgmr.msra.gmra.mxu1 %vm321_vm1, %v1772_v26 }
 0x11a   : > { %v1261_v7 = vadd.f32 %v1213_v25, %v1113_v34  ;;  %5898 = vmatmul.msk.f32.vlgmr.msra.gmra.mxu0 %vm321_vm1, %v1573_v31  ;;  %6050 = vmatpush.msk.msra.mxu1 %vm500_vm0, %v6613_v11  ;;  %v280_v11 = vld [vmem:[%s6513_s12 + $0xb8] sm:$0xff]  ;;  %v1760_v31 = vld [vmem:[#allocation2 + $0xa0] sm:$0xff] }
 0x11b   : > { %5932 = vmatmul.msk.f32.vlgmr.msra.gmra.mxu2 %vm321_vm1, %v1756_v32  ;;  %6033 = vmatpush.msk.msra.mxu0 %vm500_vm0, %v6494_v6  ;;  %v1757_v6 = vld [vmem:[#allocation2 + $0x88] sm:$0xff]  ;;  %345 = vst.msk [vmem:[#allocation2 + $0xb8] sm:$0xff] %vm321_vm1, %v280_v11 }
 0x11c   : > { %6067 = vmatpush.msk.msra.mxu2 %vm500_vm0, %v6456_v0  ;;  %5949 = vmatmul.msk.f32.vlgmr.msra.gmra.mxu3 %vm321_vm1, %v6621_v17  ;;  %v6816_v11 = vld [vmem:[#allocation2 + $0xaa] sm:$0xff] }
 0x11d   : > { %6084 = vmatpush.msk.msra.mxu3 %vm500_vm0, %v6484_v4 }
 0x11e   : > { %v1361_v35 = vpop.f32.mrf.mxu2  ;;  %v1216_v37 = vpop.f32.mrf.mxu1 }
 0x11f   : > { %v1409_v5 = vadd.f32 %v1361_v35, %v1261_v7  ;;  %v1509_v0 = vpop.f32.mrf.mxu3  ;;  %v1068_v39 = vpop.f32.mrf.mxu0  ;;  %v6804_v7 = vld [vmem:[#allocation2 + $0xa2] sm:$0xff]  ;;  %v283_v35 = vld [vmem:[%s6513_s12 + $0xd0] sm:$0xff] }
 0x120   : > { %v1114_v17 = vadd.f32 %v1068_v39, %v6653_v42  ;;  %348 = vst.msk [vmem:[#allocation2 + $0xd0] sm:$0xff] %vm321_vm1, %v283_v35  ;;  %v1764_v35 = vld [vmem:[#allocation2 + $0xc0] sm:$0xff] }
 0x121   : > { %v6767_v41 = vadd.f32 %v1509_v0, %v1409_v5  ;;  %5916 = vmatmul.msk.f32.gmra.mxu1 %vm321_vm1, %v1773_v38 }
 0x122   : > { %v1262_v43 = vadd.f32 %v1216_v37, %v1114_v17  ;;  %5899 = vmatmul.msk.f32.gmra.mxu0 %vm321_vm1, %v1574_v40  ;;  %v1578_v40 = vld [vmem:[#allocation2 + $0x4e] sm:$0xff] }
 0x123   : > { %5933 = vmatmul.msk.f32.gmra.mxu2 %vm321_vm1, %v1757_v6  ;;  %v1761_v6 = vld [vmem:[#allocation2 + $0xa8] sm:$0xff] }
 0x124   : > { %5950 = vmatmul.msk.f32.gmra.mxu3 %vm321_vm1, %v6628_v20 }
 0x126   : > { %v1364_v4 = vpop.f32.mrf.mxu2  ;;  %v1219_v45 = vpop.f32.mrf.mxu1 }
 0x127   : > { %v1410_v44 = vadd.f32 %v1364_v4, %v1262_v43  ;;  %v1512_v49 = vpop.f32.mrf.mxu3  ;;  %v1071_v42 = vpop.f32.mrf.mxu0 }
 0x128   : > { %v1115_v54 = vadd.f32 %v1071_v42, %v6659_v52  ;;  %v1775_v52 = vld [vmem:[#allocation2 + $0x99] sm:$0xff] }
 0x129   : > { %v6777_v53 = vadd.f32 %v1512_v49, %v1410_v44  ;;  %5917 = vmatmul.msk.f32.gmra.mxu1 %vm321_vm1, %v1774_v47  ;;  %v284_v44 = vld [vmem:[%s6513_s12 + $0xd8] sm:$0xff] }
 0x12a   : > { %v1263_v20 = vadd.f32 %v1219_v45, %v1115_v54  ;;  %5900 = vmatmul.msk.f32.gmra.mxu0 %vm321_vm1, %v1575_v50  ;;  %349 = vst.msk [vmem:[#allocation2 + $0xd8] sm:$0xff] %vm321_vm1, %v284_v44  ;;  %v1762_v54 = vld [vmem:[#allocation2 + $0xb0] sm:$0xff] }
 0x12b   : > { %5934 = vmatmul.msk.f32.gmra.mxu2 %vm321_vm1, %v1758_v51  ;;  %v1579_v51 = vld [vmem:[#allocation2 + $0x56] sm:$0xff]  ;;  %v1582_v44 = vld [vmem:[#allocation2 + $0x6e] sm:$0xff] }
 0x12c   : > { %5951 = vmatmul.msk.f32.gmra.mxu3 %vm321_vm1, %v6780_v55 }
 0x12e   : > { %v1367_v58 = vpop.f32.mrf.mxu2  ;;  %v1222_v63 = vpop.f32.mrf.mxu1 }
 0x12f   : > { %v1411_v61 = vadd.f32 %v1367_v58, %v1263_v20  ;;  %v1515_v1 = vpop.f32.mrf.mxu3  ;;  %v1074_v8 = vpop.f32.mrf.mxu0  ;;  %v6828_v58 = vld [vmem:[#allocation2 + $0xb2] sm:$0xff] }
 0x130   : > { %v1116_v14 = vadd.f32 %v1074_v8, %v6665_v62  ;;  %v1776_v62 = vld [vmem:[#allocation2 + $0xa1] sm:$0xff] }
 0x131   : > { %v6789_v12 = vadd.f32 %v1515_v1, %v1411_v61  ;;  %5918 = vmatmul.msk.f32.gmra.mxu1 %vm321_vm1, %v1775_v52 }
 0x132   : > { %v1264_v21 = vadd.f32 %v1222_v63, %v1116_v14  ;;  %5901 = vmatmul.msk.f32.gmra.mxu0 %vm321_vm1, %v1576_v9  ;;  %v285_v63 = vld [vmem:[%s6513_s12 + $0xe0] sm:$0xff] }
 0x133   : > { %5935 = vmatmul.msk.f32.gmra.mxu2 %vm321_vm1, %v1759_v10  ;;  %350 = vst.msk [vmem:[#allocation2 + $0xe0] sm:$0xff] %vm321_vm1, %v285_v63  ;;  %v1580_v14 = vld [vmem:[#allocation2 + $0x5e] sm:$0xff] }
 0x134   : > { %5952 = vmatmul.msk.f32.gmra.mxu3 %vm321_vm1, %v6792_v19 }
 0x136   : > { %v1370_v23 = vpop.f32.mrf.mxu2  ;;  %v1225_v25 = vpop.f32.mrf.mxu1 }
 0x137   : > { %v1412_v24 = vadd.f32 %v1370_v23, %v1264_v21  ;;  %v1518_v26 = vpop.f32.mrf.mxu3  ;;  %v1077_v29 = vpop.f32.mrf.mxu0  ;;  %v1763_v21 = vld [vmem:[#allocation2 + $0xb8] sm:$0xff] }
 0x138   : > { %v1117_v34 = vadd.f32 %v1077_v29, %v6671_v16  ;;  %v1777_v16 = vld [vmem:[#allocation2 + $0xa9] sm:$0xff] }
 0x139   : > { %v6801_v32 = vadd.f32 %v1518_v26, %v1412_v24  ;;  %5919 = vmatmul.msk.f32.gmra.mxu1 %vm321_vm1, %v1776_v62  ;;  %v6840_v24 = vld [vmem:[#allocation2 + $0xba] sm:$0xff]  ;;  %v286_v62 = vld [vmem:[%s6513_s12 + $0xe8] sm:$0xff] }
 0x13a   : > { %v1265_v2 = vadd.f32 %v1225_v25, %v1117_v34  ;;  %5902 = vmatmul.msk.f32.gmra.mxu0 %vm321_vm1, %v1577_v30  ;;  %351 = vst.msk [vmem:[#allocation2 + $0xe8] sm:$0xff] %vm321_vm1, %v286_v62  ;;  %v1783_v62 = vld [vmem:[#allocation2 + $0xd9] sm:$0xff] }
 0x13b   : > { %5936 = vmatmul.msk.f32.gmra.mxu2 %vm321_vm1, %v1760_v31 }
 0x13c   : > { %5953 = vmatmul.msk.f32.gmra.mxu3 %vm321_vm1, %v6804_v7 }
 0x13e   : > { %v1373_v5 = vpop.f32.mrf.mxu2  ;;  %v1228_v38 = vpop.f32.mrf.mxu1 }
 0x13f   : > { %v1413_v37 = vadd.f32 %v1373_v5, %v1265_v2  ;;  %v1521_v0 = vpop.f32.mrf.mxu3  ;;  %v1080_v39 = vpop.f32.mrf.mxu0  ;;  %v1581_v2 = vld [vmem:[#allocation2 + $0x66] sm:$0xff] }
 0x140   : > { %v1118_v43 = vadd.f32 %v1080_v39, %v6677_v28  ;;  %v1778_v28 = vld [vmem:[#allocation2 + $0xb1] sm:$0xff] }
 0x141   : > { %v6813_v17 = vadd.f32 %v1521_v0, %v1413_v37  ;;  %5920 = vmatmul.msk.f32.gmra.mxu1 %vm321_vm1, %v1777_v16  ;;  %v287_v0 = vld [vmem:[%s6513_s12 + $0xf0] sm:$0xff] }
 0x142   : > { %v1266_v4 = vadd.f32 %v1228_v38, %v1118_v43  ;;  %5903 = vmatmul.msk.f32.gmra.mxu0 %vm321_vm1, %v1578_v40  ;;  %v6852_v38 = vld [vmem:[#allocation2 + $0xc2] sm:$0xff]  ;;  %352 = vst.msk [vmem:[#allocation2 + $0xf0] sm:$0xff] %vm321_vm1, %v287_v0 }
 0x143   : > { %5937 = vmatmul.msk.f32.gmra.mxu2 %vm321_vm1, %v1761_v6  ;;  %v1784_v0 = vld [vmem:[#allocation2 + $0xe1] sm:$0xff] }
 0x144   : > { %5954 = vmatmul.msk.f32.gmra.mxu3 %vm321_vm1, %v6816_v11 }
 0x146   : > { %v1376_v45 = vpop.f32.mrf.mxu2  ;;  %v1231_v49 = vpop.f32.mrf.mxu1 }
 0x147   : > { %v1414_v47 = vadd.f32 %v1376_v45, %v1266_v4  ;;  %v1524_v42 = vpop.f32.mrf.mxu3  ;;  %v1083_v50 = vpop.f32.mrf.mxu0  ;;  %v1765_v45 = vld [vmem:[#allocation2 + $0xc8] sm:$0xff] }
 0x148   : > { %v1119_v56 = vadd.f32 %v1083_v50, %v6683_v3  ;;  %v1779_v3 = vld [vmem:[#allocation2 + $0xb9] sm:$0xff] }
 0x149   : > { %v6825_v20 = vadd.f32 %v1524_v42, %v1414_v47  ;;  %5921 = vmatmul.msk.f32.gmra.mxu1 %vm321_vm1, %v1778_v28  ;;  %v6864_v28 = vld [vmem:[#allocation2 + $0xca] sm:$0xff]  ;;  %v288_v50 = vld [vmem:[%s6513_s12 + $0xf8] sm:$0xff] }
 0x14a   : > { %v1267_v61 = vadd.f32 %v1231_v49, %v1119_v56  ;;  %5904 = vmatmul.msk.f32.gmra.mxu0 %vm321_vm1, %v1579_v51  ;;  %353 = vst.msk [vmem:[#allocation2 + $0xf8] sm:$0xff] %vm321_vm1, %v288_v50  ;;  %v1785_v50 = vld [vmem:[#allocation2 + $0xe9] sm:$0xff] }
 0x14b   : > { %5938 = vmatmul.msk.f32.gmra.mxu2 %vm321_vm1, %v1762_v54 }
 0x14c   : > { %5955 = vmatmul.msk.f32.gmra.mxu3 %vm321_vm1, %v6828_v58 }
 0x14e   : > { %v1379_v52 = vpop.f32.mrf.mxu2  ;;  %v1234_v8 = vpop.f32.mrf.mxu1 }
 0x14f   : > { %v1415_v1 = vadd.f32 %v1379_v52, %v1267_v61  ;;  %v1527_v9 = vpop.f32.mrf.mxu3  ;;  %v1086_v10 = vpop.f32.mrf.mxu0  ;;  %v1583_v52 = vld [vmem:[#allocation2 + $0x76] sm:$0xff] }
 0x150   : > { %v1120_v23 = vadd.f32 %v1086_v10, %v6689_v46  ;;  %v1780_v46 = vld [vmem:[#allocation2 + $0xc1] sm:$0xff] }
 0x151   : > { %v6837_v22 = vadd.f32 %v1527_v9, %v1415_v1  ;;  %5922 = vmatmul.msk.f32.gmra.mxu1 %vm321_vm1, %v1779_v3  ;;  %v1766_v1 = vld [vmem:[#allocation2 + $0xd0] sm:$0xff] }
 0x152   : > { %v1268_v25 = vadd.f32 %v1234_v8, %v1120_v23  ;;  %5905 = vmatmul.msk.f32.gmra.mxu0 %vm321_vm1, %v1580_v14  ;;  %v6876_v9 = vld [vmem:[#allocation2 + $0xd2] sm:$0xff]  ;;  %v289_v14 = vld [vmem:[%s6513_s12 + $0x100] sm:$0xff] }
 0x153   : > { %5939 = vmatmul.msk.f32.gmra.mxu2 %vm321_vm1, %v1763_v21  ;;  %354 = vst.msk [vmem:[#allocation2 + $0x100] sm:$0xff] %vm321_vm1, %v289_v14  ;;  %v1786_v14 = vld [vmem:[#allocation2 + $0xf1] sm:$0xff] }
 0x154   : > { %5956 = vmatmul.msk.f32.gmra.mxu3 %vm321_vm1, %v6840_v24 }
 0x156   : > { %v1382_v26 = vpop.f32.mrf.mxu2  ;;  %v1237_v30 = vpop.f32.mrf.mxu1 }
 0x157   : > { %v1416_v29 = vadd.f32 %v1382_v26, %v1268_v25  ;;  %v1530_v31 = vpop.f32.mrf.mxu3  ;;  %v1089_v34 = vpop.f32.mrf.mxu0 }
 0x158   : > { %v1121_v37 = vadd.f32 %v1089_v34, %v6695_v57  ;;  %v1781_v57 = vld [vmem:[#allocation2 + $0xc9] sm:$0xff]  ;;  %v6888_v34 = vld [vmem:[#allocation2 + $0xda] sm:$0xff] }
 0x159   : > { %v6849_v5 = vadd.f32 %v1530_v31, %v1416_v29  ;;  %5923 = vmatmul.msk.f32.gmra.mxu1 %vm321_vm1, %v1780_v46  ;;  %v1584_v29 = vld [vmem:[#allocation2 + $0x7e] sm:$0xff] }
 0x15a   : > { %v1269_v16 = vadd.f32 %v1237_v30, %v1121_v37  ;;  %5906 = vmatmul.msk.f32.gmra.mxu0 %vm321_vm1, %v1581_v2  ;;  %v1767_v30 = vld [vmem:[#allocation2 + $0xd8] sm:$0xff] }
 0x15b   : > { %5940 = vmatmul.msk.f32.gmra.mxu2 %vm321_vm1, %v1764_v35 }
 0x15c   : > { %5957 = vmatmul.msk.f32.gmra.mxu3 %vm321_vm1, %v6852_v38 }
 0x15e   : > { %v1385_v39 = vpop.f32.mrf.mxu2  ;;  %v1240_v6 = vpop.f32.mrf.mxu1 }
 0x15f   : > { %v1417_v40 = vadd.f32 %v1385_v39, %v1269_v16  ;;  %v1533_v43 = vpop.f32.mrf.mxu3  ;;  %v1092_v4 = vpop.f32.mrf.mxu0 }
 0x160   : > { %v1122_v49 = vadd.f32 %v1092_v4, %v6703_v13  ;;  %v1782_v13 = vld [vmem:[#allocation2 + $0xd1] sm:$0xff]  ;;  %v6898_v4 = vld [vmem:[#allocation2 + $0xe2] sm:$0xff] }
 0x161   : > { %v6861_v47 = vadd.f32 %v1533_v43, %v1417_v40  ;;  %5924 = vmatmul.msk.f32.gmra.mxu1 %vm321_vm1, %v1781_v57 }
 0x162   : > { %v1270_v42 = vadd.f32 %v1240_v6, %v1122_v49  ;;  %5907 = vmatmul.msk.f32.gmra.mxu0 %vm321_vm1, %v1582_v44  ;;  %v1585_v6 = vld [vmem:[#allocation2 + $0x86] sm:$0xff] }
 0x163   : > { %5941 = vmatmul.msk.f32.gmra.mxu2 %vm321_vm1, %v1765_v45 }
 0x164   : > { %5958 = vmatmul.msk.f32.gmra.mxu3 %vm321_vm1, %v6864_v28 }
 0x166   : > { %v1388_v51 = vpop.f32.mrf.mxu2  ;;  %v1243_v56 = vpop.f32.mrf.mxu1 }
 0x167   : > { %v1418_v54 = vadd.f32 %v1388_v51, %v1270_v42  ;;  %v1536_v61 = vpop.f32.mrf.mxu3  ;;  %v1095_v63 = vpop.f32.mrf.mxu0 }
 0x168   : > { %v1123_v3 = vadd.f32 %v1095_v63, %v6711_v27  ;;  %v6908_v63 = vld [vmem:[#allocation2 + $0xea] sm:$0xff] }
 0x169   : > { %v6873_v8 = vadd.f32 %v1536_v61, %v1418_v54  ;;  %5925 = vmatmul.msk.f32.gmra.mxu1 %vm321_vm1, %v1782_v13 }
 0x16a   : > { %v1271_v10 = vadd.f32 %v1243_v56, %v1123_v3  ;;  %5908 = vmatmul.msk.f32.gmra.mxu0 %vm321_vm1, %v1583_v52  ;;  %v1586_v56 = vld [vmem:[#allocation2 + $0x8e] sm:$0xff] }
 0x16b   : > { %5942 = vmatmul.msk.f32.gmra.mxu2 %vm321_vm1, %v1766_v1 }
 0x16c   : > { %5959 = vmatmul.msk.f32.gmra.mxu3 %vm321_vm1, %v6876_v9 }
 0x16e   : > { %v1391_v21 = vpop.f32.mrf.mxu2  ;;  %v1246_v25 = vpop.f32.mrf.mxu1 }
 0x16f   : > { %v1419_v23 = vadd.f32 %v1391_v21, %v1271_v10  ;;  %v1539_v27 = vpop.f32.mrf.mxu3  ;;  %v1098_v26 = vpop.f32.mrf.mxu0 }
 0x170   : > { %v1124_v31 = vadd.f32 %v1098_v26, %v6717_v36  ;;  %v1768_v36 = vld [vmem:[#allocation2 + $0xe0] sm:$0xff]  ;;  %v6918_v26 = vld [vmem:[#allocation2 + $0xf2] sm:$0xff] }
 0x171   : > { %v6885_v46 = vadd.f32 %v1539_v27, %v1419_v23  ;;  %5926 = vmatmul.msk.f32.gmra.mxu1 %vm321_vm1, %v1783_v62 }
 0x172   : > { %v1272_v2 = vadd.f32 %v1246_v25, %v1124_v31  ;;  %5909 = vmatmul.msk.f32.gmra.mxu0 %vm321_vm1, %v1584_v29  ;;  %v1770_v25 = vld [vmem:[#allocation2 + $0xf0] sm:$0xff] }
 0x173   : > { %5943 = vmatmul.msk.f32.gmra.mxu2 %vm321_vm1, %v1767_v30 }
 0x174   : > { %5960 = vmatmul.msk.f32.gmra.mxu3 %vm321_vm1, %v6888_v34 }
 0x176   : > { %v1394_v35 = vpop.f32.mrf.mxu2  ;;  %v1249_v16 = vpop.f32.mrf.mxu1 }
 0x177   : > { %v1420_v37 = vadd.f32 %v1394_v35, %v1272_v2  ;;  %v1542_v39 = vpop.f32.mrf.mxu3  ;;  %v1101_v40 = vpop.f32.mrf.mxu0  ;;  %v1787_v35 = vld [vmem:[#allocation2 + $0xf9] sm:$0xff] }
 0x178   : > { %v1125_v43 = vadd.f32 %v1101_v40, %v6723_v48  ;;  %v1769_v48 = vld [vmem:[#allocation2 + $0xe8] sm:$0xff] }
 0x179   : > { %v6895_v57 = vadd.f32 %v1542_v39, %v1420_v37  ;;  %5927 = vmatmul.msk.f32.gmra.mxu1 %vm321_vm1, %v1784_v0  ;;  %v1771_v0 = vld [vmem:[#allocation2 + $0xf8] sm:$0xff] }
 0x17a   : > { %v1273_v44 = vadd.f32 %v1249_v16, %v1125_v43  ;;  %5910 = vmatmul.msk.f32.gmra.mxu0 %vm321_vm1, %v1585_v6  ;;  %v1588_v16 = vld [vmem:[#allocation2 + $0x9e] sm:$0xff] }
 0x17b   : > { %5944 = vmatmul.msk.f32.gmra.mxu2 %vm321_vm1, %v1768_v36  ;;  %v6929_v6 = vld [vmem:[#allocation2 + $0xfa] sm:$0xff] }
 0x17c   : > { %5961 = vmatmul.msk.f32.gmra.mxu3 %vm321_vm1, %v6898_v4 }
 0x17e   : > { %v1397_v45 = vpop.f32.mrf.mxu2  ;;  %v1252_v42 = vpop.f32.mrf.mxu1 }
 0x17f   : > { %v1421_v49 = vadd.f32 %v1397_v45, %v1273_v44  ;;  %v1545_v51 = vpop.f32.mrf.mxu3  ;;  %v1104_v54 = vpop.f32.mrf.mxu0 }
 0x180   : > { %v1126_v61 = vadd.f32 %v1104_v54, %v6731_v60  ;;  %v1587_v60 = vld [vmem:[#allocation2 + $0x96] sm:$0xff] }
 0x181   : > { %v6905_v13 = vadd.f32 %v1545_v51, %v1421_v49  ;;  %5928 = vmatmul.msk.f32.gmra.mxu1 %vm321_vm1, %v1785_v50  ;;  %v2304_v49 = vld [vmem:[#allocation2 + $0x93] sm:$0xff] }
 0x182   : > { %v1274_v52 = vadd.f32 %v1252_v42, %v1126_v61  ;;  %5911 = vmatmul.msk.f32.gmra.mxu0 %vm321_vm1, %v1586_v56  ;;  %v2594_v56 = vld [vmem:[#allocation2 + $0xa4] sm:$0xff] }
 0x183   : > { %5945 = vmatmul.msk.f32.gmra.mxu2 %vm321_vm1, %v1769_v48  ;;  %v6394_v61 = vld [vmem:[%s8031_s2 + $0x8] sm:$0xf] }
 0x184   : > { %5962 = vmatmul.msk.f32.gmra.mxu3 %vm321_vm1, %v6908_v63 }
 0x186   : > { %v1400_v1 = vpop.f32.mrf.mxu2  ;;  %v1255_v10 = vpop.f32.mrf.mxu1 }
 0x187   : > { %v1422_v3 = vadd.f32 %v1400_v1, %v1274_v52  ;;  %v1548_v21 = vpop.f32.mrf.mxu3  ;;  %v1107_v23 = vpop.f32.mrf.mxu0  ;;  %v6396_v52 = vld [vmem:[%s8031_s2 + $0x14] sm:$0xf] }
 0x188   : > { %v1127_v27 = vadd.f32 %v1107_v23, %v6740_v18 }
 0x189   : > { %v6915_v62 = vadd.f32 %v1548_v21, %v1422_v3  ;;  %5929 = vmatmul.msk.f32.gmra.mxu1 %vm321_vm1, %v1786_v14 }
 0x18a   : > { %v1275_v29 = vadd.f32 %v1255_v10, %v1127_v27  ;;  %5912 = vmatmul.msk.f32.gmra.mxu0 %vm321_vm1, %v1587_v60  ;;  %v2305_v10 = vld [vmem:[#allocation2 + $0x9b] sm:$0xff] }
 0x18b   : > { %5946 = vmatmul.msk.f32.gmra.mxu2 %vm321_vm1, %v1770_v25  ;;  %v2595_v25 = vld [vmem:[#allocation2 + $0xac] sm:$0xff] }
 0x18c   : > { %5963 = vmatmul.msk.f32.gmra.mxu3 %vm321_vm1, %v6918_v26 }
 0x18e   : > { %v1403_v30 = vpop.f32.mrf.mxu2  ;;  %v1258_v2 = vpop.f32.mrf.mxu1 }
 0x18f   : > { %v1423_v31 = vadd.f32 %v1403_v30, %v1275_v29  ;;  %v1551_v37 = vpop.f32.mrf.mxu3  ;;  %v1110_v18 = vpop.f32.mrf.mxu0 }
 0x190   : > { %v1128_v40 = vadd.f32 %v1110_v18, %v6749_v33  ;;  %v6940_v33 = vld [vmem:[%s8032_s3] ss:$0 sm:$0xff] }
 0x191   : > { %v6926_v39 = vadd.f32 %v1551_v37, %v1423_v31  ;;  %5930 = vmatmul.msk.f32.gmra.mxu1 %vm321_vm1, %v1787_v35 }
 0x192   : > { %v1276_v36 = vadd.f32 %v1258_v2, %v1128_v40  ;;  %5913 = vmatmul.msk.f32.gmra.mxu0 %vm321_vm1, %v1588_v16  ;;  %v2306_v2 = vld [vmem:[#allocation2 + $0xa3] sm:$0xff]  ;;  %v2596_v16 = vld [vmem:[#allocation2 + $0xb4] sm:$0xff] }
 0x193   : > { %5947 = vmatmul.msk.f32.gmra.mxu2 %vm321_vm1, %v1771_v0 }
 0x194   : > { %5964 = vmatmul.msk.f32.gmra.mxu3 %vm321_vm1, %v6929_v6 }
 0x196   : > { %v1406_v43 = vpop.f32.mrf.mxu2  ;;  %v1853_v45 = vpop.f32.mrf.mxu1 }
 0x197   : > { %v1424_v44 = vadd.f32 %v1406_v43, %v1276_v36  ;;  %v1554_v42 = vpop.f32.mrf.mxu3  ;;  %v1657_v50 = vpop.f32.mrf.mxu0  ;;  %v2307_v36 = vld [vmem:[#allocation2 + $0xab] sm:$0xff] }
 0x198   : > { %v1705_v54 = vadd.f32 %v1657_v50, %v6767_v41  ;;  %v6393_v41 = vld [vmem:[%s8031_s2 + $0x10] sm:$0xf] }
 0x199   : > { %v6942_v51 = vadd.f32 %v1554_v42, %v1424_v44  ;;  %5983 = vmatmul.msk.f32.vlgmr.msrb.gmra.mxu1 %vm321_vm1, %v2304_v49  ;;  %v2597_v49 = vld [vmem:[#allocation2 + $0xbc] sm:$0xff] }
 0x19a   : > { %v1724_v48 = vadd.f32 %v6940_v33, %v1705_v54  ;;  %5966 = vmatmul.msk.f32.vlgmr.msrb.gmra.mxu0 %vm321_vm1, %v6780_v55  ;;  %v6395_v55 = vld [vmem:[%s8031_s2 + $0xc] sm:$0xf] }
 0x19b   : > { %6000 = vmatmul.msk.f32.vlgmr.msrb.gmra.mxu2 %vm321_vm1, %v6729_v59  ;;  %6101 = vmatpush.msk.msrb.mxu0 %vm500_vm0, %v6394_v61 }
 0x19c   : > { %6135 = vmatpush.msk.msrb.mxu2 %vm500_vm0, %v6393_v41  ;;  %1740 = vst [vmem:[%s6948_s23] sm:$0xff] %v1724_v48  ;;  %6017 = vmatmul.msk.f32.vlgmr.msrb.gmra.mxu3 %vm321_vm1, %v2594_v56 }
 0x19d   : > { %6118 = vmatpush.msk.msrb.mxu1 %vm500_vm0, %v6395_v55  ;;  %6152 = vmatpush.msk.msrb.mxu3 %vm500_vm0, %v6396_v52  ;;  %v2598_v55 = vld [vmem:[#allocation2 + $0xc4] sm:$0xff] }
 0x19e   : > { %v1966_v59 = vpop.f32.mrf.mxu2  ;;  %v1856_v3 = vpop.f32.mrf.mxu1 }
 0x19f   : > { %v1967_v1 = vadd.f32 %v1966_v59, %v1853_v45  ;;  %v2095_v14 = vpop.f32.mrf.mxu3  ;;  %v1660_v21 = vpop.f32.mrf.mxu0 }
 0x1a0   : > { %v1706_v60 = vadd.f32 %v1660_v21, %v6777_v53 }
 0x1a1   : > { %v6974_v23 = vadd.f32 %v2095_v14, %v1967_v1  ;;  %5984 = vmatmul.msk.f32.gmra.mxu1 %vm321_vm1, %v2305_v10 }
 0x1a2   : > { %v1725_v27 = vadd.f32 %v6940_v33, %v1706_v60  ;;  %5967 = vmatmul.msk.f32.gmra.mxu0 %vm321_vm1, %v6792_v19  ;;  %v2599_v60 = vld [vmem:[#allocation2 + $0xcc] sm:$0xff] }
 0x1a3   : > { %6001 = vmatmul.msk.f32.gmra.mxu2 %vm321_vm1, %v6738_v15 }
 0x1a4   : > { %1741 = vst [vmem:[%s6948_s23 + $0x8] sm:$0xff] %v1725_v27  ;;  %6018 = vmatmul.msk.f32.gmra.mxu3 %vm321_vm1, %v2595_v25 }
 0x1a6   : > { %v1969_v29 = vpop.f32.mrf.mxu2  ;;  %v1859_v31 = vpop.f32.mrf.mxu1 }
 0x1a7   : > { %v1970_v30 = vadd.f32 %v1969_v29, %v1856_v3  ;;  %v2098_v53 = vpop.f32.mrf.mxu3  ;;  %v1663_v35 = vpop.f32.mrf.mxu0  ;;  %v2309_v3 = vld [vmem:[#allocation2 + $0xbb] sm:$0xff] }
 0x1a8   : > { %v1707_v18 = vadd.f32 %v1663_v35, %v6789_v12  ;;  %v2600_v35 = vld [vmem:[#allocation2 + $0xd4] sm:$0xff] }
 0x1a9   : > { %v6985_v37 = vadd.f32 %v2098_v53, %v1970_v30  ;;  %5985 = vmatmul.msk.f32.gmra.mxu1 %vm321_vm1, %v2306_v2  ;;  %v2310_v30 = vld [vmem:[#allocation2 + $0xc3] sm:$0xff] }
 0x1aa   : > { %v1726_v19 = vadd.f32 %v6940_v33, %v1707_v18  ;;  %5968 = vmatmul.msk.f32.gmra.mxu0 %vm321_vm1, %v6804_v7 }
 0x1ab   : > { %6002 = vmatmul.msk.f32.gmra.mxu2 %vm321_vm1, %v2594_v56  ;;  %v2308_v56 = vld [vmem:[#allocation2 + $0xb3] sm:$0xff] }
 0x1ac   : > { %1742 = vst [vmem:[%s6948_s23 + $0x10] sm:$0xff] %v1726_v19  ;;  %6019 = vmatmul.msk.f32.gmra.mxu3 %vm321_vm1, %v2596_v16 }
 0x1ae   : > { %v1972_v15 = vpop.f32.mrf.mxu2  ;;  %v1862_v40 = vpop.f32.mrf.mxu1 }
 0x1af   : > { %v1973_v0 = vadd.f32 %v1972_v15, %v1859_v31  ;;  %v2101_v43 = vpop.f32.mrf.mxu3  ;;  %v1666_v12 = vpop.f32.mrf.mxu0  ;;  %v2311_v15 = vld [vmem:[#allocation2 + $0xcb] sm:$0xff] }
 0x1b0   : > { %v1708_v45 = vadd.f32 %v1666_v12, %v6801_v32  ;;  %v290_v12 = vld [vmem:[%s6513_s12 + $0x108] sm:$0xff] }
 0x1b1   : > { %v6995_v44 = vadd.f32 %v2101_v43, %v1973_v0  ;;  %5986 = vmatmul.msk.f32.gmra.mxu1 %vm321_vm1, %v2307_v36  ;;  %v2601_v43 = vld [vmem:[#allocation2 + $0xdc] sm:$0xff]  ;;  %355 = vst.msk [vmem:[#allocation2 + $0x108] sm:$0xff] %vm321_vm1, %v290_v12 }
 0x1b2   : > { %v1727_v7 = vadd.f32 %v6940_v33, %v1708_v45  ;;  %5969 = vmatmul.msk.f32.gmra.mxu0 %vm321_vm1, %v6816_v11 }
 0x1b3   : > { %6003 = vmatmul.msk.f32.gmra.mxu2 %vm321_vm1, %v2595_v25 }
 0x1b4   : > { %1743 = vst [vmem:[%s6948_s23 + $0x18] sm:$0xff] %v1727_v7  ;;  %6020 = vmatmul.msk.f32.gmra.mxu3 %vm321_vm1, %v2597_v49  ;;  %v2312_v7 = vld [vmem:[#allocation2 + $0xd3] sm:$0xff] }
 0x1b6   : > { %v1975_v42 = vpop.f32.mrf.mxu2  ;;  %v1865_v54 = vpop.f32.mrf.mxu1 }
 0x1b7   : > { %v1976_v50 = vadd.f32 %v1975_v42, %v1862_v40  ;;  %v2104_v48 = vpop.f32.mrf.mxu3  ;;  %v1669_v32 = vpop.f32.mrf.mxu0 }
 0x1b8   : > { %v1709_v61 = vadd.f32 %v1669_v32, %v6813_v17  ;;  %v291_v32 = vld [vmem:[%s6513_s12 + $0x110] sm:$0xff] }
 0x1b9   : > { %v7005_v41 = vadd.f32 %v2104_v48, %v1976_v50  ;;  %5987 = vmatmul.msk.f32.gmra.mxu1 %vm321_vm1, %v2308_v56  ;;  %v2602_v56 = vld [vmem:[#allocation2 + $0xe4] sm:$0xff]  ;;  %356 = vst.msk [vmem:[#allocation2 + $0x110] sm:$0xff] %vm321_vm1, %v291_v32 }
 0x1ba   : > { %v1728_v11 = vadd.f32 %v6940_v33, %v1709_v61  ;;  %5970 = vmatmul.msk.f32.gmra.mxu0 %vm321_vm1, %v6828_v58 }
 0x1bb   : > { %6004 = vmatmul.msk.f32.gmra.mxu2 %vm321_vm1, %v2596_v16 }
 0x1bc   : > { %1744 = vst [vmem:[%s6948_s23 + $0x20] sm:$0xff] %v1728_v11  ;;  %6021 = vmatmul.msk.f32.gmra.mxu3 %vm321_vm1, %v2598_v55  ;;  %v2313_v11 = vld [vmem:[#allocation2 + $0xdb] sm:$0xff] }
 0x1be   : > { %v1978_v59 = vpop.f32.mrf.mxu2  ;;  %v1868_v1 = vpop.f32.mrf.mxu1 }
 0x1bf   : > { %v1979_v52 = vadd.f32 %v1978_v59, %v1865_v54  ;;  %v2107_v10 = vpop.f32.mrf.mxu3  ;;  %v1672_v17 = vpop.f32.mrf.mxu0 }
 0x1c0   : > { %v1710_v21 = vadd.f32 %v1672_v17, %v6825_v20  ;;  %v292_v17 = vld [vmem:[%s6513_s12 + $0x118] sm:$0xff] }
 0x1c1   : > { %v7015_v14 = vadd.f32 %v2107_v10, %v1979_v52  ;;  %5988 = vmatmul.msk.f32.gmra.mxu1 %vm321_vm1, %v2309_v3  ;;  %v2603_v3 = vld [vmem:[#allocation2 + $0xec] sm:$0xff]  ;;  %357 = vst.msk [vmem:[#allocation2 + $0x118] sm:$0xff] %vm321_vm1, %v292_v17 }
 0x1c2   : > { %v1729_v58 = vadd.f32 %v6940_v33, %v1710_v21  ;;  %5971 = vmatmul.msk.f32.gmra.mxu0 %vm321_vm1, %v6840_v24 }
 0x1c3   : > { %6005 = vmatmul.msk.f32.gmra.mxu2 %vm321_vm1, %v2597_v49 }
 0x1c4   : > { %1745 = vst [vmem:[%s6948_s23 + $0x28] sm:$0xff] %v1729_v58  ;;  %6022 = vmatmul.msk.f32.gmra.mxu3 %vm321_vm1, %v2599_v60  ;;  %v2314_v58 = vld [vmem:[#allocation2 + $0xe3] sm:$0xff] }
 0x1c6   : > { %v1981_v25 = vpop.f32.mrf.mxu2  ;;  %v1871_v29 = vpop.f32.mrf.mxu1 }
 0x1c7   : > { %v1982_v27 = vadd.f32 %v1981_v25, %v1868_v1  ;;  %v2110_v31 = vpop.f32.mrf.mxu3  ;;  %v1675_v20 = vpop.f32.mrf.mxu0 }
 0x1c8   : > { %v1711_v53 = vadd.f32 %v1675_v20, %v6837_v22  ;;  %v293_v20 = vld [vmem:[%s6513_s12 + $0x120] sm:$0xff]  ;;  %v7118_v17 = vld [vmem:[#allocation2 + $0x114] sm:$0xff] }
 0x1c9   : > { %v7025_v2 = vadd.f32 %v2110_v31, %v1982_v27  ;;  %5989 = vmatmul.msk.f32.gmra.mxu1 %vm321_vm1, %v2310_v30  ;;  %v2604_v30 = vld [vmem:[#allocation2 + $0xf4] sm:$0xff]  ;;  %358 = vst.msk [vmem:[#allocation2 + $0x120] sm:$0xff] %vm321_vm1, %v293_v20 }
 0x1ca   : > { %v1730_v24 = vadd.f32 %v6940_v33, %v1711_v53  ;;  %5972 = vmatmul.msk.f32.gmra.mxu0 %vm321_vm1, %v6852_v38 }
 0x1cb   : > { %6006 = vmatmul.msk.f32.gmra.mxu2 %vm321_vm1, %v2598_v55 }
 0x1cc   : > { %1746 = vst [vmem:[%s6948_s23 + $0x30] sm:$0xff] %v1730_v24  ;;  %6023 = vmatmul.msk.f32.gmra.mxu3 %vm321_vm1, %v2600_v35  ;;  %v2315_v24 = vld [vmem:[#allocation2 + $0xeb] sm:$0xff] }
 0x1ce   : > { %v1984_v18 = vpop.f32.mrf.mxu2  ;;  %v1874_v19 = vpop.f32.mrf.mxu1 }
 0x1cf   : > { %v1985_v16 = vadd.f32 %v1984_v18, %v1871_v29  ;;  %v2113_v22 = vpop.f32.mrf.mxu3  ;;  %v1678_v0 = vpop.f32.mrf.mxu0 }
 0x1d0   : > { %v1712_v36 = vadd.f32 %v1678_v0, %v6849_v5 }
 0x1d1   : > { %v7035_v40 = vadd.f32 %v2113_v22, %v1985_v16  ;;  %5990 = vmatmul.msk.f32.gmra.mxu1 %vm321_vm1, %v2311_v15 }
 0x1d2   : > { %v1731_v38 = vadd.f32 %v6940_v33, %v1712_v36  ;;  %5973 = vmatmul.msk.f32.gmra.mxu0 %vm321_vm1, %v6864_v28 }
 0x1d3   : > { %6007 = vmatmul.msk.f32.gmra.mxu2 %vm321_vm1, %v2599_v60 }
 0x1d4   : > { %1747 = vst [vmem:[%s6948_s23 + $0x38] sm:$0xff] %v1731_v38  ;;  %6024 = vmatmul.msk.f32.gmra.mxu3 %vm321_vm1, %v2601_v43  ;;  %v2316_v38 = vld [vmem:[#allocation2 + $0xf3] sm:$0xff] }
 0x1d6   : > { %v1987_v45 = vpop.f32.mrf.mxu2  ;;  %v1877_v49 = vpop.f32.mrf.mxu1 }
 0x1d7   : > { %v1988_v5 = vadd.f32 %v1987_v45, %v1874_v19  ;;  %v2116_v42 = vpop.f32.mrf.mxu3  ;;  %v1681_v50 = vpop.f32.mrf.mxu0 }
 0x1d8   : > { %v1713_v28 = vadd.f32 %v1681_v50, %v6861_v47 }
 0x1d9   : > { %v7047_v54 = vadd.f32 %v2116_v42, %v1988_v5  ;;  %5991 = vmatmul.msk.f32.gmra.mxu1 %vm321_vm1, %v2312_v7 }
 0x1da   : > { %v1732_v48 = vadd.f32 %v6940_v33, %v1713_v28  ;;  %5974 = vmatmul.msk.f32.gmra.mxu0 %vm321_vm1, %v6876_v9  ;;  %v2317_v28 = vld [vmem:[#allocation2 + $0xfb] sm:$0xff] }
 0x1db   : > { %6008 = vmatmul.msk.f32.gmra.mxu2 %vm321_vm1, %v2600_v35 }
 0x1dc   : > { %1748 = vst [vmem:[%s6948_s23 + $0x40] sm:$0xff] %v1732_v48  ;;  %6025 = vmatmul.msk.f32.gmra.mxu3 %vm321_vm1, %v2602_v56 }
 0x1de   : > { %v1990_v61 = vpop.f32.mrf.mxu2  ;;  %v1880_v55 = vpop.f32.mrf.mxu1 }
 0x1df   : > { %v1991_v47 = vadd.f32 %v1990_v61, %v1877_v49  ;;  %v2119_v59 = vpop.f32.mrf.mxu3  ;;  %v1684_v52 = vpop.f32.mrf.mxu0  ;;  %v2606_v49 = vld [vmem:[#allocation2 + $0x104] sm:$0xff]  ;;  %v2607_v61 = vld [vmem:[#allocation2 + $0x10c] sm:$0xff] }
 0x1e0   : > { %v1714_v9 = vadd.f32 %v1684_v52, %v6873_v8 }
 0x1e1   : > { %v7059_v1 = vadd.f32 %v2119_v59, %v1991_v47  ;;  %5992 = vmatmul.msk.f32.gmra.mxu1 %vm321_vm1, %v2313_v11  ;;  %v2318_v59 = vld [vmem:[#allocation2 + $0x103] sm:$0xff] }
 0x1e2   : > { %v1733_v10 = vadd.f32 %v6940_v33, %v1714_v9  ;;  %5975 = vmatmul.msk.f32.gmra.mxu0 %vm321_vm1, %v6888_v34  ;;  %v7113_v9 = vld [vmem:[#allocation2 + $0x102] sm:$0xff] }
 0x1e3   : > { %6009 = vmatmul.msk.f32.gmra.mxu2 %vm321_vm1, %v2601_v43 }
 0x1e4   : > { %1749 = vst [vmem:[%s6948_s23 + $0x48] sm:$0xff] %v1733_v10  ;;  %6026 = vmatmul.msk.f32.gmra.mxu3 %vm321_vm1, %v2603_v3 }
 0x1e6   : > { %v1993_v21 = vpop.f32.mrf.mxu2  ;;  %v1883_v60 = vpop.f32.mrf.mxu1 }
 0x1e7   : > { %v1994_v8 = vadd.f32 %v1993_v21, %v1880_v55  ;;  %v2122_v25 = vpop.f32.mrf.mxu3  ;;  %v1687_v27 = vpop.f32.mrf.mxu0 }
 0x1e8   : > { %v1715_v34 = vadd.f32 %v1687_v27, %v6885_v46  ;;  %v7128_v27 = vld [vmem:[#allocation2 + $0x10a] sm:$0xff] }
 0x1e9   : > { %v7071_v29 = vadd.f32 %v2122_v25, %v1994_v8  ;;  %5993 = vmatmul.msk.f32.gmra.mxu1 %vm321_vm1, %v2314_v58 }
 0x1ea   : > { %v1734_v31 = vadd.f32 %v6940_v33, %v1715_v34  ;;  %5976 = vmatmul.msk.f32.gmra.mxu0 %vm321_vm1, %v6898_v4  ;;  %v2605_v4 = vld [vmem:[#allocation2 + $0xfc] sm:$0xff] }
 0x1eb   : > { %6010 = vmatmul.msk.f32.gmra.mxu2 %vm321_vm1, %v2602_v56 }
 0x1ec   : > { %1750 = vst [vmem:[%s6948_s23 + $0x50] sm:$0xff] %v1734_v31  ;;  %6027 = vmatmul.msk.f32.gmra.mxu3 %vm321_vm1, %v2604_v30  ;;  %v7133_v31 = vld [vmem:[#allocation2 + $0x11c] sm:$0xff] }
 0x1ee   : > { %v1996_v53 = vpop.f32.mrf.mxu2  ;;  %v1886_v46 = vpop.f32.mrf.mxu1 }
 0x1ef   : > { %v1997_v35 = vadd.f32 %v1996_v53, %v1883_v60  ;;  %v2125_v18 = vpop.f32.mrf.mxu3  ;;  %v1690_v16 = vpop.f32.mrf.mxu0  ;;  %v2319_v60 = vld [vmem:[#allocation2 + $0x10b] sm:$0xff] }
 0x1f0   : > { %v1716_v15 = vadd.f32 %v1690_v16, %v6895_v57  ;;  %v294_v53 = vld [vmem:[%s6513_s12 + $0x128] sm:$0xff] }
 0x1f1   : > { %v7083_v19 = vadd.f32 %v2125_v18, %v1997_v35  ;;  %5994 = vmatmul.msk.f32.gmra.mxu1 %vm321_vm1, %v2315_v24  ;;  %359 = vst.msk [vmem:[#allocation2 + $0x128] sm:$0xff] %vm321_vm1, %v294_v53  ;;  %v2884_v24 = vld [vmem:[#allocation2 + $0xa6] sm:$0xff]  ;;  %v2887_v53 = vld [vmem:[#allocation2 + $0xbe] sm:$0xff] }
 0x1f2   : > { %v1735_v22 = vadd.f32 %v6940_v33, %v1716_v15  ;;  %5977 = vmatmul.msk.f32.gmra.mxu0 %vm321_vm1, %v6908_v63  ;;  %v3077_v15 = vld [vmem:[#allocation2 + $0x101] sm:$0xff] }
 0x1f3   : > { %6011 = vmatmul.msk.f32.gmra.mxu2 %vm321_vm1, %v2603_v3 }
 0x1f4   : > { %1751 = vst [vmem:[%s6948_s23 + $0x58] sm:$0xff] %v1735_v22  ;;  %6028 = vmatmul.msk.f32.gmra.mxu3 %vm321_vm1, %v2605_v4 }
 0x1f6   : > { %v1999_v0 = vpop.f32.mrf.mxu2  ;;  %v1889_v43 = vpop.f32.mrf.mxu1 }
 0x1f7   : > { %v2000_v36 = vadd.f32 %v1999_v0, %v1886_v46  ;;  %v2128_v12 = vpop.f32.mrf.mxu3  ;;  %v1693_v57 = vpop.f32.mrf.mxu0  ;;  %v3061_v0 = vld [vmem:[#allocation2 + $0x100] sm:$0xff] }
 0x1f8   : > { %v1717_v5 = vadd.f32 %v1693_v57, %v6905_v13 }
 0x1f9   : > { %v7093_v45 = vadd.f32 %v2128_v12, %v2000_v36  ;;  %5995 = vmatmul.msk.f32.gmra.mxu1 %vm321_vm1, %v2316_v38  ;;  %v6397_v38 = vld [vmem:[%s8031_s2 + $0x20] sm:$0xf]  ;;  %v6398_v12 = vld [vmem:[%s8031_s2 + $0x18] sm:$0xf] }
 0x1fa   : > { %v1736_v63 = vadd.f32 %v6940_v33, %v1717_v5  ;;  %5978 = vmatmul.msk.f32.gmra.mxu0 %vm321_vm1, %v6918_v26  ;;  %v6400_v5 = vld [vmem:[%s8031_s2 + $0x4] sm:$0xf] }
 0x1fb   : > { %6012 = vmatmul.msk.f32.gmra.mxu2 %vm321_vm1, %v2604_v30 }
 0x1fc   : > { %1752 = vst [vmem:[%s6948_s23 + $0x60] sm:$0xff] %v1736_v63  ;;  %6029 = vmatmul.msk.f32.gmra.mxu3 %vm321_vm1, %v2606_v49 }
 0x1fe   : > { %v2002_v7 = vpop.f32.mrf.mxu2  ;;  %v1892_v50 = vpop.f32.mrf.mxu1 }
 0x1ff   : > { %v2003_v42 = vadd.f32 %v2002_v7, %v1889_v43  ;;  %v2131_v56 = vpop.f32.mrf.mxu3  ;;  %v1696_v13 = vpop.f32.mrf.mxu0  ;;  %v295_v43 = vld [vmem:[%s6513_s12 + $0x130] sm:$0xff] }
 0x200   : > { %v1718_v32 = vadd.f32 %v1696_v13, %v6915_v62  ;;  %360 = vst.msk [vmem:[#allocation2 + $0x130] sm:$0xff] %vm321_vm1, %v295_v43  ;;  %v2885_v7 = vld [vmem:[#allocation2 + $0xae] sm:$0xff]  ;;  %v2888_v43 = vld [vmem:[#allocation2 + $0xc6] sm:$0xff] }
 0x201   : > { %v7103_v48 = vadd.f32 %v2131_v56, %v2003_v42  ;;  %5996 = vmatmul.msk.f32.gmra.mxu1 %vm321_vm1, %v2317_v28  ;;  %v2740_v28 = vld [vmem:[#allocation2 + $0xad] sm:$0xff] }
 0x202   : > { %v1737_v26 = vadd.f32 %v6940_v33, %v1718_v32  ;;  %5979 = vmatmul.msk.f32.gmra.mxu0 %vm321_vm1, %v6929_v6  ;;  %v3078_v56 = vld [vmem:[#allocation2 + $0x109] sm:$0xff] }
 0x203   : > { %6013 = vmatmul.msk.f32.gmra.mxu2 %vm321_vm1, %v2605_v4 }
 0x204   : > { %1753 = vst [vmem:[%s6948_s23 + $0x68] sm:$0xff] %v1737_v26  ;;  %6030 = vmatmul.msk.f32.gmra.mxu3 %vm321_vm1, %v2607_v61 }
 0x206   : > { %v2005_v47 = vpop.f32.mrf.mxu2  ;;  %v1895_v11 = vpop.f32.mrf.mxu1 }
 0x207   : > { %v2006_v55 = vadd.f32 %v2005_v47, %v1892_v50  ;;  %v2134_v52 = vpop.f32.mrf.mxu3  ;;  %v1699_v62 = vpop.f32.mrf.mxu0  ;;  %v296_v47 = vld [vmem:[%s6513_s12 + $0x138] sm:$0xff] }
 0x208   : > { %v1719_v10 = vadd.f32 %v1699_v62, %v6926_v39  ;;  %361 = vst.msk [vmem:[#allocation2 + $0x138] sm:$0xff] %vm321_vm1, %v296_v47 }
 0x209   : > { %v7115_v3 = vadd.f32 %v2134_v52, %v2006_v55  ;;  %5997 = vmatmul.msk.f32.gmra.mxu1 %vm321_vm1, %v2318_v59  ;;  %v2886_v52 = vld [vmem:[#allocation2 + $0xb6] sm:$0xff] }
 0x20a   : > { %v1738_v6 = vadd.f32 %v6940_v33, %v1719_v10  ;;  %5980 = vmatmul.msk.f32.gmra.mxu0 %vm321_vm1, %v7113_v9  ;;  %v2741_v10 = vld [vmem:[#allocation2 + $0xb5] sm:$0xff] }
 0x20b   : > { %6014 = vmatmul.msk.f32.gmra.mxu2 %vm321_vm1, %v2606_v49 }
 0x20c   : > { %1754 = vst [vmem:[%s6948_s23 + $0x70] sm:$0xff] %v1738_v6  ;;  %6031 = vmatmul.msk.f32.gmra.mxu3 %vm321_vm1, %v7118_v17  ;;  %v3079_v6 = vld [vmem:[#allocation2 + $0x111] sm:$0xff] }
 0x20e   : > { %v2008_v21 = vpop.f32.mrf.mxu2  ;;  %v1898_v39 = vpop.f32.mrf.mxu1 }
 0x20f   : > { %v2009_v8 = vadd.f32 %v2008_v21, %v1895_v11  ;;  %v2137_v58 = vpop.f32.mrf.mxu3  ;;  %v1702_v25 = vpop.f32.mrf.mxu0 }
 0x210   : > { %v1720_v30 = vadd.f32 %v1702_v25, %v6942_v51 }
 0x211   : > { %v7130_v34 = vadd.f32 %v2137_v58, %v2009_v8  ;;  %5998 = vmatmul.msk.f32.gmra.mxu1 %vm321_vm1, %v2319_v60  ;;  %v297_v58 = vld [vmem:[%s6513_s12 + $0x140] sm:$0xff] }
 0x212   : > { %v1739_v20 = vadd.f32 %v6940_v33, %v1720_v30  ;;  %5981 = vmatmul.msk.f32.gmra.mxu0 %vm321_vm1, %v7128_v27  ;;  %v2739_v33 = vld [vmem:[#allocation2 + $0xa5] sm:$0xff]  ;;  %362 = vst.msk [vmem:[#allocation2 + $0x140] sm:$0xff] %vm321_vm1, %v297_v58 }
 0x213   : > { %6015 = vmatmul.msk.f32.gmra.mxu2 %vm321_vm1, %v2607_v61  ;;  %v3062_v61 = vld [vmem:[#allocation2 + $0x108] sm:$0xff] }
 0x214   : > { %1755 = vst [vmem:[%s6948_s23 + $0x78] sm:$0xff] %v1739_v20  ;;  %6032 = vmatmul.msk.f32.gmra.mxu3 %vm321_vm1, %v7133_v31 }
 0x216   : > { %v2011_v35 = vpop.f32.mrf.mxu2  ;;  %v2385_v46 = vpop.f32.mrf.mxu1 }
 0x217   : > { %v2012_v51 = vadd.f32 %v2011_v35, %v1898_v39  ;;  %v2140_v18 = vpop.f32.mrf.mxu3  ;;  %v2240_v16 = vpop.f32.mrf.mxu0  ;;  %v3063_v39 = vld [vmem:[#allocation2 + $0x110] sm:$0xff] }
 0x218   : > { %v2288_v22 = vadd.f32 %v2240_v16, %v6974_v23  ;;  %v6399_v23 = vld [vmem:[%s8031_s2 + $0x1c] sm:$0xf] }
 0x219   : > { %v7145_v4 = vadd.f32 %v2140_v18, %v2012_v51  ;;  %6051 = vmatmul.msk.f32.vlgmr.msra.gmra.mxu1 %vm321_vm1, %v2884_v24  ;;  %v2742_v51 = vld [vmem:[#allocation2 + $0xbd] sm:$0xff] }
 0x21a   : > { %v2433_v36 = vadd.f32 %v2385_v46, %v2288_v22  ;;  %6034 = vmatmul.msk.f32.vlgmr.msra.gmra.mxu0 %vm321_vm1, %v2739_v33  ;;  %6186 = vmatpush.msk.msra.mxu1 %vm500_vm0, %v6399_v23  ;;  %v3080_v46 = vld [vmem:[#allocation2 + $0x119] sm:$0xff]  ;;  %v3081_v23 = vld [vmem:[#allocation2 + $0x121] sm:$0xff] }
 0x21b   : > { %6068 = vmatmul.msk.f32.vlgmr.msra.gmra.mxu2 %vm321_vm1, %v3077_v15  ;;  %6169 = vmatpush.msk.msra.mxu0 %vm500_vm0, %v6398_v12  ;;  %v3064_v16 = vld [vmem:[#allocation2 + $0x118] sm:$0xff]  ;;  %v298_v15 = vld [vmem:[%s6513_s12 + $0x148] sm:$0xff] }
 0x21c   : > { %6203 = vmatpush.msk.msra.mxu2 %vm500_vm0, %v6397_v38  ;;  %6085 = vmatmul.msk.f32.vlgmr.msra.gmra.mxu3 %vm321_vm1, %v3061_v0  ;;  %363 = vst.msk [vmem:[#allocation2 + $0x148] sm:$0xff] %vm321_vm1, %v298_v15  ;;  %v2743_v12 = vld [vmem:[#allocation2 + $0xc5] sm:$0xff] }
 0x21d   : > { %6220 = vmatpush.msk.msra.mxu3 %vm500_vm0, %v6400_v5 }
 0x21e   : > { %v2530_v57 = vpop.f32.mrf.mxu2  ;;  %v2388_v63 = vpop.f32.mrf.mxu1 }
 0x21f   : > { %v2578_v49 = vadd.f32 %v2530_v57, %v2433_v36  ;;  %v2675_v42 = vpop.f32.mrf.mxu3  ;;  %v2243_v50 = vpop.f32.mrf.mxu0 }
 0x220   : > { %v2289_v32 = vadd.f32 %v2243_v50, %v6985_v37 }
 0x221   : > { %v7170_v13 = vadd.f32 %v2675_v42, %v2578_v49  ;;  %6052 = vmatmul.msk.f32.gmra.mxu1 %vm321_vm1, %v2885_v7  ;;  %v3065_v49 = vld [vmem:[#allocation2 + $0x120] sm:$0xff]  ;;  %v299_v7 = vld [vmem:[%s6513_s12 + $0x150] sm:$0xff] }
 0x222   : > { %v2434_v26 = vadd.f32 %v2388_v63, %v2289_v32  ;;  %6035 = vmatmul.msk.f32.gmra.mxu0 %vm321_vm1, %v2740_v28  ;;  %364 = vst.msk [vmem:[#allocation2 + $0x150] sm:$0xff] %vm321_vm1, %v299_v7 }
 0x223   : > { %6069 = vmatmul.msk.f32.gmra.mxu2 %vm321_vm1, %v3078_v56  ;;  %v2889_v56 = vld [vmem:[#allocation2 + $0xce] sm:$0xff] }
 0x224   : > { %6086 = vmatmul.msk.f32.gmra.mxu3 %vm321_vm1, %v3062_v61  ;;  %v2744_v61 = vld [vmem:[#allocation2 + $0xcd] sm:$0xff] }
 0x226   : > { %v2533_v55 = vpop.f32.mrf.mxu2  ;;  %v2391_v59 = vpop.f32.mrf.mxu1 }
 0x227   : > { %v2579_v11 = vadd.f32 %v2533_v55, %v2434_v26  ;;  %v2678_v62 = vpop.f32.mrf.mxu3  ;;  %v2246_v37 = vpop.f32.mrf.mxu0  ;;  %v3082_v26 = vld [vmem:[#allocation2 + $0x129] sm:$0xff] }
 0x228   : > { %v2290_v8 = vadd.f32 %v2246_v37, %v6995_v44 }
 0x229   : > { %v7179_v21 = vadd.f32 %v2678_v62, %v2579_v11  ;;  %6053 = vmatmul.msk.f32.gmra.mxu1 %vm321_vm1, %v2886_v52  ;;  %v3066_v11 = vld [vmem:[#allocation2 + $0x128] sm:$0xff]  ;;  %v300_v52 = vld [vmem:[%s6513_s12 + $0x158] sm:$0xff] }
 0x22a   : > { %v2435_v60 = vadd.f32 %v2391_v59, %v2290_v8  ;;  %6036 = vmatmul.msk.f32.gmra.mxu0 %vm321_vm1, %v2741_v10  ;;  %365 = vst.msk [vmem:[#allocation2 + $0x158] sm:$0xff] %vm321_vm1, %v300_v52 }
 0x22b   : > { %6070 = vmatmul.msk.f32.gmra.mxu2 %vm321_vm1, %v3079_v6  ;;  %v2890_v6 = vld [vmem:[#allocation2 + $0xd6] sm:$0xff] }
 0x22c   : > { %6087 = vmatmul.msk.f32.gmra.mxu3 %vm321_vm1, %v3063_v39  ;;  %v2745_v39 = vld [vmem:[#allocation2 + $0xd5] sm:$0xff] }
 0x22e   : > { %v2536_v25 = vpop.f32.mrf.mxu2  ;;  %v2394_v20 = vpop.f32.mrf.mxu1 }
 0x22f   : > { %v2580_v30 = vadd.f32 %v2536_v25, %v2435_v60  ;;  %v2681_v35 = vpop.f32.mrf.mxu3  ;;  %v2249_v44 = vpop.f32.mrf.mxu0  ;;  %v3083_v60 = vld [vmem:[#allocation2 + $0x131] sm:$0xff] }
 0x230   : > { %v2291_v18 = vadd.f32 %v2249_v44, %v7005_v41 }
 0x231   : > { %v7188_v24 = vadd.f32 %v2681_v35, %v2580_v30  ;;  %6054 = vmatmul.msk.f32.gmra.mxu1 %vm321_vm1, %v2887_v53  ;;  %v3067_v30 = vld [vmem:[#allocation2 + $0x130] sm:$0xff]  ;;  %v301_v53 = vld [vmem:[%s6513_s12 + $0x160] sm:$0xff] }
 0x232   : > { %v2436_v33 = vadd.f32 %v2394_v20, %v2291_v18  ;;  %6037 = vmatmul.msk.f32.gmra.mxu0 %vm321_vm1, %v2742_v51  ;;  %366 = vst.msk [vmem:[#allocation2 + $0x160] sm:$0xff] %vm321_vm1, %v301_v53 }
 0x233   : > { %6071 = vmatmul.msk.f32.gmra.mxu2 %vm321_vm1, %v3080_v46  ;;  %v2891_v46 = vld [vmem:[#allocation2 + $0xde] sm:$0xff] }
 0x234   : > { %6088 = vmatmul.msk.f32.gmra.mxu3 %vm321_vm1, %v3064_v16  ;;  %v2746_v16 = vld [vmem:[#allocation2 + $0xdd] sm:$0xff] }
 0x236   : > { %v2539_v22 = vpop.f32.mrf.mxu2  ;;  %v2397_v36 = vpop.f32.mrf.mxu1 }
 0x237   : > { %v2581_v0 = vadd.f32 %v2539_v22, %v2436_v33  ;;  %v2684_v38 = vpop.f32.mrf.mxu3  ;;  %v2252_v41 = vpop.f32.mrf.mxu0  ;;  %v3084_v33 = vld [vmem:[#allocation2 + $0x139] sm:$0xff] }
 0x238   : > { %v2292_v5 = vadd.f32 %v2252_v41, %v7015_v14 }
 0x239   : > { %v7197_v57 = vadd.f32 %v2684_v38, %v2581_v0  ;;  %6055 = vmatmul.msk.f32.gmra.mxu1 %vm321_vm1, %v2888_v43  ;;  %v3068_v0 = vld [vmem:[#allocation2 + $0x138] sm:$0xff]  ;;  %v302_v43 = vld [vmem:[%s6513_s12 + $0x168] sm:$0xff] }
 0x23a   : > { %v2437_v63 = vadd.f32 %v2397_v36, %v2292_v5  ;;  %6038 = vmatmul.msk.f32.gmra.mxu0 %vm321_vm1, %v2743_v12  ;;  %367 = vst.msk [vmem:[#allocation2 + $0x168] sm:$0xff] %vm321_vm1, %v302_v43 }
 0x23b   : > { %6072 = vmatmul.msk.f32.gmra.mxu2 %vm321_vm1, %v3081_v23  ;;  %v2892_v23 = vld [vmem:[#allocation2 + $0xe6] sm:$0xff] }
 0x23c   : > { %6089 = vmatmul.msk.f32.gmra.mxu3 %vm321_vm1, %v3065_v49  ;;  %v2747_v49 = vld [vmem:[#allocation2 + $0xe5] sm:$0xff] }
 0x23e   : > { %v2542_v42 = vpop.f32.mrf.mxu2  ;;  %v2400_v28 = vpop.f32.mrf.mxu1 }
 0x23f   : > { %v2582_v50 = vadd.f32 %v2542_v42, %v2437_v63  ;;  %v2687_v32 = vpop.f32.mrf.mxu3  ;;  %v2255_v14 = vpop.f32.mrf.mxu0  ;;  %v3085_v63 = vld [vmem:[#allocation2 + $0x141] sm:$0xff] }
 0x240   : > { %v2293_v55 = vadd.f32 %v2255_v14, %v7025_v2 }
 0x241   : > { %v7206_v47 = vadd.f32 %v2687_v32, %v2582_v50  ;;  %6056 = vmatmul.msk.f32.gmra.mxu1 %vm321_vm1, %v2889_v56  ;;  %v3069_v50 = vld [vmem:[#allocation2 + $0x140] sm:$0xff]  ;;  %v303_v56 = vld [vmem:[%s6513_s12 + $0x170] sm:$0xff] }
 0x242   : > { %v2438_v59 = vadd.f32 %v2400_v28, %v2293_v55  ;;  %6039 = vmatmul.msk.f32.gmra.mxu0 %vm321_vm1, %v2744_v61  ;;  %368 = vst.msk [vmem:[#allocation2 + $0x170] sm:$0xff] %vm321_vm1, %v303_v56 }
 0x243   : > { %6073 = vmatmul.msk.f32.gmra.mxu2 %vm321_vm1, %v3082_v26  ;;  %v2893_v26 = vld [vmem:[#allocation2 + $0xee] sm:$0xff] }
 0x244   : > { %6090 = vmatmul.msk.f32.gmra.mxu3 %vm321_vm1, %v3066_v11  ;;  %v2748_v11 = vld [vmem:[#allocation2 + $0xed] sm:$0xff] }
 0x246   : > { %v2545_v62 = vpop.f32.mrf.mxu2  ;;  %v2403_v10 = vpop.f32.mrf.mxu1 }
 0x247   : > { %v2583_v37 = vadd.f32 %v2545_v62, %v2438_v59  ;;  %v2690_v8 = vpop.f32.mrf.mxu3  ;;  %v2258_v2 = vpop.f32.mrf.mxu0  ;;  %v3086_v59 = vld [vmem:[#allocation2 + $0x149] sm:$0xff] }
 0x248   : > { %v2294_v25 = vadd.f32 %v2258_v2, %v7035_v40 }
 0x249   : > { %v7215_v58 = vadd.f32 %v2690_v8, %v2583_v37  ;;  %6057 = vmatmul.msk.f32.gmra.mxu1 %vm321_vm1, %v2890_v6  ;;  %v3070_v37 = vld [vmem:[#allocation2 + $0x148] sm:$0xff]  ;;  %v304_v6 = vld [vmem:[%s6513_s12 + $0x178] sm:$0xff] }
 0x24a   : > { %v2439_v20 = vadd.f32 %v2403_v10, %v2294_v25  ;;  %6040 = vmatmul.msk.f32.gmra.mxu0 %vm321_vm1, %v2745_v39  ;;  %369 = vst.msk [vmem:[#allocation2 + $0x178] sm:$0xff] %vm321_vm1, %v304_v6  ;;  %v3074_v6 = vld [vmem:[#allocation2 + $0x168] sm:$0xff] }
 0x24b   : > { %6074 = vmatmul.msk.f32.gmra.mxu2 %vm321_vm1, %v3083_v60  ;;  %v2894_v60 = vld [vmem:[#allocation2 + $0xf6] sm:$0xff] }
 0x24c   : > { %6091 = vmatmul.msk.f32.gmra.mxu3 %vm321_vm1, %v3067_v30  ;;  %v2749_v30 = vld [vmem:[#allocation2 + $0xf5] sm:$0xff] }
 0x24e   : > { %v2548_v35 = vpop.f32.mrf.mxu2  ;;  %v2406_v51 = vpop.f32.mrf.mxu1 }
 0x24f   : > { %v2584_v44 = vadd.f32 %v2548_v35, %v2439_v20  ;;  %v2693_v18 = vpop.f32.mrf.mxu3  ;;  %v2261_v40 = vpop.f32.mrf.mxu0  ;;  %v3087_v20 = vld [vmem:[#allocation2 + $0x151] sm:$0xff] }
 0x250   : > { %v2295_v22 = vadd.f32 %v2261_v40, %v7047_v54 }
 0x251   : > { %v7224_v15 = vadd.f32 %v2693_v18, %v2584_v44  ;;  %6058 = vmatmul.msk.f32.gmra.mxu1 %vm321_vm1, %v2891_v46  ;;  %v3071_v44 = vld [vmem:[#allocation2 + $0x150] sm:$0xff]  ;;  %v305_v46 = vld [vmem:[%s6513_s12 + $0x180] sm:$0xff] }
 0x252   : > { %v2440_v36 = vadd.f32 %v2406_v51, %v2295_v22  ;;  %6041 = vmatmul.msk.f32.gmra.mxu0 %vm321_vm1, %v2746_v16  ;;  %370 = vst.msk [vmem:[#allocation2 + $0x180] sm:$0xff] %vm321_vm1, %v305_v46 }
 0x253   : > { %6075 = vmatmul.msk.f32.gmra.mxu2 %vm321_vm1, %v3084_v33  ;;  %v2895_v33 = vld [vmem:[#allocation2 + $0xfe] sm:$0xff] }
 0x254   : > { %6092 = vmatmul.msk.f32.gmra.mxu3 %vm321_vm1, %v3068_v0 }
 0x256   : > { %v2551_v38 = vpop.f32.mrf.mxu2  ;;  %v2409_v12 = vpop.f32.mrf.mxu1 }
 0x257   : > { %v2585_v41 = vadd.f32 %v2551_v38, %v2440_v36  ;;  %v2696_v5 = vpop.f32.mrf.mxu3  ;;  %v2264_v54 = vpop.f32.mrf.mxu0  ;;  %v3088_v36 = vld [vmem:[#allocation2 + $0x159] sm:$0xff] }
 0x258   : > { %v2296_v42 = vadd.f32 %v2264_v54, %v7059_v1 }
 0x259   : > { %v7233_v7 = vadd.f32 %v2696_v5, %v2585_v41  ;;  %6059 = vmatmul.msk.f32.gmra.mxu1 %vm321_vm1, %v2892_v23  ;;  %v3072_v41 = vld [vmem:[#allocation2 + $0x158] sm:$0xff] }
 0x25a   : > { %v2441_v28 = vadd.f32 %v2409_v12, %v2296_v42  ;;  %6042 = vmatmul.msk.f32.gmra.mxu0 %vm321_vm1, %v2747_v49  ;;  %v2896_v49 = vld [vmem:[#allocation2 + $0x106] sm:$0xff] }
 0x25b   : > { %6076 = vmatmul.msk.f32.gmra.mxu2 %vm321_vm1, %v3085_v63 }
 0x25c   : > { %6093 = vmatmul.msk.f32.gmra.mxu3 %vm321_vm1, %v3069_v50  ;;  %v2751_v50 = vld [vmem:[#allocation2 + $0x105] sm:$0xff] }
 0x25e   : > { %v2554_v32 = vpop.f32.mrf.mxu2  ;;  %v2412_v61 = vpop.f32.mrf.mxu1 }
 0x25f   : > { %v2586_v14 = vadd.f32 %v2554_v32, %v2441_v28  ;;  %v2699_v55 = vpop.f32.mrf.mxu3  ;;  %v2267_v1 = vpop.f32.mrf.mxu0  ;;  %v3089_v28 = vld [vmem:[#allocation2 + $0x161] sm:$0xff] }
 0x260   : > { %v2297_v62 = vadd.f32 %v2267_v1, %v7071_v29  ;;  %v3073_v32 = vld [vmem:[#allocation2 + $0x160] sm:$0xff]  ;;  %v2897_v1 = vld [vmem:[#allocation2 + $0x10e] sm:$0xff] }
 0x261   : > { %v7242_v52 = vadd.f32 %v2699_v55, %v2586_v14  ;;  %6060 = vmatmul.msk.f32.gmra.mxu1 %vm321_vm1, %v2893_v26 }
 0x262   : > { %v2442_v10 = vadd.f32 %v2412_v61, %v2297_v62  ;;  %6043 = vmatmul.msk.f32.gmra.mxu0 %vm321_vm1, %v2748_v11  ;;  %v2752_v62 = vld [vmem:[#allocation2 + $0x10d] sm:$0xff] }
 0x263   : > { %6077 = vmatmul.msk.f32.gmra.mxu2 %vm321_vm1, %v3086_v59 }
 0x264   : > { %6094 = vmatmul.msk.f32.gmra.mxu3 %vm321_vm1, %v3070_v37  ;;  %v3090_v37 = vld [vmem:[#allocation2 + $0x169] sm:$0xff] }
 0x266   : > { %v2557_v8 = vpop.f32.mrf.mxu2  ;;  %v2415_v39 = vpop.f32.mrf.mxu1 }
 0x267   : > { %v2587_v2 = vadd.f32 %v2557_v8, %v2442_v10  ;;  %v2702_v25 = vpop.f32.mrf.mxu3  ;;  %v2270_v29 = vpop.f32.mrf.mxu0 }
 0x268   : > { %v2298_v35 = vadd.f32 %v2270_v29, %v7083_v19  ;;  %v2750_v19 = vld [vmem:[#allocation2 + $0xfd] sm:$0xff] }
 0x269   : > { %v7251_v53 = vadd.f32 %v2702_v25, %v2587_v2  ;;  %6061 = vmatmul.msk.f32.gmra.mxu1 %vm321_vm1, %v2894_v60  ;;  %v2898_v25 = vld [vmem:[#allocation2 + $0x116] sm:$0xff] }
 0x26a   : > { %v2443_v51 = vadd.f32 %v2415_v39, %v2298_v35  ;;  %6044 = vmatmul.msk.f32.gmra.mxu0 %vm321_vm1, %v2749_v30  ;;  %v3091_v35 = vld [vmem:[#allocation2 + $0x171] sm:$0xff] }
 0x26b   : > { %6078 = vmatmul.msk.f32.gmra.mxu2 %vm321_vm1, %v3087_v20  ;;  %v2753_v20 = vld [vmem:[#allocation2 + $0x115] sm:$0xff] }
 0x26c   : > { %6095 = vmatmul.msk.f32.gmra.mxu3 %vm321_vm1, %v3071_v44 }
 0x26e   : > { %v2560_v18 = vpop.f32.mrf.mxu2  ;;  %v2418_v16 = vpop.f32.mrf.mxu1 }
 0x26f   : > { %v2588_v40 = vadd.f32 %v2560_v18, %v2443_v51  ;;  %v2705_v22 = vpop.f32.mrf.mxu3  ;;  %v2273_v0 = vpop.f32.mrf.mxu0  ;;  %v3075_v51 = vld [vmem:[#allocation2 + $0x170] sm:$0xff] }
 0x270   : > { %v2299_v38 = vadd.f32 %v2273_v0, %v7093_v45 }
 0x271   : > { %v7260_v43 = vadd.f32 %v2705_v22, %v2588_v40  ;;  %6062 = vmatmul.msk.f32.gmra.mxu1 %vm321_vm1, %v2895_v33  ;;  %v2899_v33 = vld [vmem:[#allocation2 + $0x11e] sm:$0xff] }
 0x272   : > { %v2444_v12 = vadd.f32 %v2418_v16, %v2299_v38  ;;  %6045 = vmatmul.msk.f32.gmra.mxu0 %vm321_vm1, %v2750_v19  ;;  %v2754_v19 = vld [vmem:[#allocation2 + $0x11d] sm:$0xff] }
 0x273   : > { %6079 = vmatmul.msk.f32.gmra.mxu2 %vm321_vm1, %v3088_v36  ;;  %v3092_v36 = vld [vmem:[#allocation2 + $0x179] sm:$0xff] }
 0x274   : > { %6096 = vmatmul.msk.f32.gmra.mxu3 %vm321_vm1, %v3072_v41  ;;  %v3076_v41 = vld [vmem:[#allocation2 + $0x178] sm:$0xff] }
 0x276   : > { %v2563_v23 = vpop.f32.mrf.mxu2  ;;  %v2421_v54 = vpop.f32.mrf.mxu1 }
 0x277   : > { %v2589_v5 = vadd.f32 %v2563_v23, %v2444_v12  ;;  %v2708_v63 = vpop.f32.mrf.mxu3  ;;  %v2276_v42 = vpop.f32.mrf.mxu0 }
 0x278   : > { %v2300_v45 = vadd.f32 %v2276_v42, %v7103_v48 }
 0x279   : > { %v7267_v56 = vadd.f32 %v2708_v63, %v2589_v5  ;;  %6063 = vmatmul.msk.f32.gmra.mxu1 %vm321_vm1, %v2896_v49  ;;  %v3464_v49 = vld [vmem:[#allocation2 + $0x112] sm:$0xff] }
 0x27a   : > { %v2445_v14 = vadd.f32 %v2421_v54, %v2300_v45  ;;  %6046 = vmatmul.msk.f32.gmra.mxu0 %vm321_vm1, %v2751_v50  ;;  %v3609_v50 = vld [vmem:[#allocation2 + $0x113] sm:$0xff] }
 0x27b   : > { %6080 = vmatmul.msk.f32.gmra.mxu2 %vm321_vm1, %v3089_v28 }
 0x27c   : > { %6097 = vmatmul.msk.f32.gmra.mxu3 %vm321_vm1, %v3073_v32  ;;  %v6401_v32 = vld [vmem:[%s8031_s2 + $0xc] sm:$0xf] }
 0x27e   : > { %v2566_v61 = vpop.f32.mrf.mxu2  ;;  %v2424_v55 = vpop.f32.mrf.mxu1 }
 0x27f   : > { %v2590_v26 = vadd.f32 %v2566_v61, %v2445_v14  ;;  %v2711_v11 = vpop.f32.mrf.mxu3  ;;  %v2279_v59 = vpop.f32.mrf.mxu0  ;;  %v6402_v14 = vld [vmem:[%s8031_s2] sm:$0xf]  ;;  %v6404_v61 = vld [vmem:[%s8031_s2 + $0x8] sm:$0xf] }
 0x280   : > { %v2301_v48 = vadd.f32 %v2279_v59, %v7115_v3 }
 0x281   : > { %v7274_v10 = vadd.f32 %v2711_v11, %v2590_v26  ;;  %6064 = vmatmul.msk.f32.gmra.mxu1 %vm321_vm1, %v2897_v1  ;;  %v3465_v11 = vld [vmem:[#allocation2 + $0x11a] sm:$0xff] }
 0x282   : > { %v2446_v8 = vadd.f32 %v2424_v55, %v2301_v48  ;;  %6047 = vmatmul.msk.f32.gmra.mxu0 %vm321_vm1, %v2752_v62  ;;  %v6405_v55 = vld [vmem:[%s8031_s2 + $0x10] sm:$0xf] }
 0x283   : > { %6081 = vmatmul.msk.f32.gmra.mxu2 %vm321_vm1, %v3090_v37 }
 0x284   : > { %6098 = vmatmul.msk.f32.gmra.mxu3 %vm321_vm1, %v3074_v6 }
 0x286   : > { %v2569_v2 = vpop.f32.mrf.mxu2  ;;  %v2427_v60 = vpop.f32.mrf.mxu1 }
 0x287   : > { %v2591_v39 = vadd.f32 %v2569_v2, %v2446_v8  ;;  %v2714_v29 = vpop.f32.mrf.mxu3  ;;  %v2282_v30 = vpop.f32.mrf.mxu0 }
 0x288   : > { %v2302_v3 = vadd.f32 %v2282_v30, %v7130_v34 }
 0x289   : > { %v7281_v44 = vadd.f32 %v2714_v29, %v2591_v39  ;;  %6065 = vmatmul.msk.f32.gmra.mxu1 %vm321_vm1, %v2898_v25  ;;  %v3611_v29 = vld [vmem:[#allocation2 + $0x123] sm:$0xff] }
 0x28a   : > { %v2447_v46 = vadd.f32 %v2427_v60, %v2302_v3  ;;  %6048 = vmatmul.msk.f32.gmra.mxu0 %vm321_vm1, %v2753_v20  ;;  %v3466_v60 = vld [vmem:[#allocation2 + $0x122] sm:$0xff] }
 0x28b   : > { %6082 = vmatmul.msk.f32.gmra.mxu2 %vm321_vm1, %v3091_v35 }
 0x28c   : > { %6099 = vmatmul.msk.f32.gmra.mxu3 %vm321_vm1, %v3075_v51 }
 0x28e   : > { %v2572_v18 = vpop.f32.mrf.mxu2  ;;  %v2430_v16 = vpop.f32.mrf.mxu1 }
 0x28f   : > { %v2592_v40 = vadd.f32 %v2572_v18, %v2447_v46  ;;  %v2717_v22 = vpop.f32.mrf.mxu3  ;;  %v2285_v0 = vpop.f32.mrf.mxu0  ;;  %v3467_v46 = vld [vmem:[#allocation2 + $0x12a] sm:$0xff] }
 0x290   : > { %v2303_v34 = vadd.f32 %v2285_v0, %v7145_v4 }
 0x291   : > { %v7288_v38 = vadd.f32 %v2717_v22, %v2592_v40  ;;  %6066 = vmatmul.msk.f32.gmra.mxu1 %vm321_vm1, %v2899_v33  ;;  %v3612_v40 = vld [vmem:[#allocation2 + $0x12b] sm:$0xff] }
 0x292   : > { %v2448_v12 = vadd.f32 %v2430_v16, %v2303_v34  ;;  %6049 = vmatmul.msk.f32.gmra.mxu0 %vm321_vm1, %v2754_v19  ;;  %v7354_v22 = vld [vmem:[#allocation2 + $0x12c] sm:$0xff] }
 0x293   : > { %6083 = vmatmul.msk.f32.gmra.mxu2 %vm321_vm1, %v3092_v36 }
 0x294   : > { %6100 = vmatmul.msk.f32.gmra.mxu3 %vm321_vm1, %v3076_v41  ;;  %v3468_v41 = vld [vmem:[#allocation2 + $0x132] sm:$0xff] }
 0x296   : > { %v2575_v23 = vpop.f32.mrf.mxu2  ;;  %v2965_v54 = vpop.f32.mrf.mxu1 }
 0x297   : > { %v2593_v5 = vadd.f32 %v2575_v23, %v2448_v12  ;;  %v2720_v63 = vpop.f32.mrf.mxu3  ;;  %v2820_v42 = vpop.f32.mrf.mxu0  ;;  %v3613_v23 = vld [vmem:[#allocation2 + $0x133] sm:$0xff] }
 0x298   : > { %v2868_v4 = vadd.f32 %v2820_v42, %v7170_v13  ;;  %v7313_v13 = vld [vmem:[%s8032_s3] ss:$0 sm:$0xff] }
 0x299   : > { %v7295_v28 = vadd.f32 %v2720_v63, %v2593_v5  ;;  %6119 = vmatmul.msk.f32.vlgmr.msrb.gmra.mxu1 %vm321_vm1, %v3464_v49 }
 0x29a   : > { %v3013_v45 = vadd.f32 %v2965_v54, %v2868_v4  ;;  %6102 = vmatmul.msk.f32.vlgmr.msrb.gmra.mxu0 %vm321_vm1, %v7113_v9  ;;  %6254 = vmatpush.msk.msrb.mxu1 %vm500_vm0, %v6404_v61 }
 0x29b   : > { %6136 = vmatmul.msk.f32.vlgmr.msrb.gmra.mxu2 %vm321_vm1, %v3609_v50  ;;  %6237 = vmatpush.msk.msrb.mxu0 %vm500_vm0, %v6402_v14  ;;  %v3614_v14 = vld [vmem:[#allocation2 + $0x13b] sm:$0xff] }
 0x29c   : > { %6271 = vmatpush.msk.msrb.mxu2 %vm500_vm0, %v6401_v32  ;;  %v3029_v9 = vadd.f32 %v7313_v13, %v3013_v45  ;;  %6153 = vmatmul.msk.f32.vlgmr.msrb.gmra.mxu3 %vm321_vm1, %v7118_v17  ;;  %v3610_v17 = vld [vmem:[#allocation2 + $0x11b] sm:$0xff] }
 0x29d   : > { %6288 = vmatpush.msk.msrb.mxu3 %vm500_vm0, %v6405_v55  ;;  %v3469_v45 = vld [vmem:[#allocation2 + $0x13a] sm:$0xff] }
 0x29e   : > { %v3158_v26 = vpop.f32.mrf.mxu2  ;;  %3045 = vst [vmem:[%s6948_s23 + $0x80] sm:$0xff] %v3029_v9  ;;  %v2968_v1 = vpop.f32.mrf.mxu1 }
 0x29f   : > { %v3271_v59 = vpop.f32.mrf.mxu3  ;;  %v2823_v62 = vpop.f32.mrf.mxu0 }
 0x2a0   : > { %v7327_v37 = vadd.f32 %v3271_v59, %v3158_v26  ;;  %v2869_v48 = vadd.f32 %v2823_v62, %v7179_v21  ;;  %v7378_v26 = vld [vmem:[#allocation2 + $0x13c] sm:$0xff] }
 0x2a1   : > { %6120 = vmatmul.msk.f32.gmra.mxu1 %vm321_vm1, %v3465_v11  ;;  %v3470_v62 = vld [vmem:[#allocation2 + $0x142] sm:$0xff] }
 0x2a2   : > { %v3014_v6 = vadd.f32 %v2968_v1, %v2869_v48  ;;  %6103 = vmatmul.msk.f32.gmra.mxu0 %vm321_vm1, %v7128_v27  ;;  %v7342_v27 = vld [vmem:[#allocation2 + $0x124] sm:$0xff] }
 0x2a3   : > { %6137 = vmatmul.msk.f32.gmra.mxu2 %vm321_vm1, %v3610_v17  ;;  %v3615_v48 = vld [vmem:[#allocation2 + $0x143] sm:$0xff] }
 0x2a4   : > { %v3030_v8 = vadd.f32 %v7313_v13, %v3014_v6  ;;  %6154 = vmatmul.msk.f32.gmra.mxu3 %vm321_vm1, %v7133_v31 }
 0x2a6   : > { %v3161_v2 = vpop.f32.mrf.mxu2  ;;  %3046 = vst [vmem:[%s6948_s23 + $0x88] sm:$0xff] %v3030_v8  ;;  %v2971_v39 = vpop.f32.mrf.mxu1 }
 0x2a7   : > { %v3274_v25 = vpop.f32.mrf.mxu3  ;;  %v2826_v21 = vpop.f32.mrf.mxu0 }
 0x2a8   : > { %v7338_v30 = vadd.f32 %v3274_v25, %v3161_v2  ;;  %v2870_v20 = vadd.f32 %v2826_v21, %v7188_v24  ;;  %v7390_v2 = vld [vmem:[#allocation2 + $0x144] sm:$0xff] }
 0x2a9   : > { %6121 = vmatmul.msk.f32.gmra.mxu1 %vm321_vm1, %v3466_v60 }
 0x2aa   : > { %v3015_v35 = vadd.f32 %v2971_v39, %v2870_v20  ;;  %6104 = vmatmul.msk.f32.gmra.mxu0 %vm321_vm1, %v3464_v49  ;;  %v7366_v49 = vld [vmem:[#allocation2 + $0x134] sm:$0xff] }
 0x2ab   : > { %6138 = vmatmul.msk.f32.gmra.mxu2 %vm321_vm1, %v3611_v29  ;;  %v3471_v29 = vld [vmem:[#allocation2 + $0x14a] sm:$0xff] }
 0x2ac   : > { %v3031_v31 = vadd.f32 %v7313_v13, %v3015_v35  ;;  %6155 = vmatmul.msk.f32.gmra.mxu3 %vm321_vm1, %v7342_v27  ;;  %v3616_v35 = vld [vmem:[#allocation2 + $0x14b] sm:$0xff] }
 0x2ae   : > { %v3164_v3 = vpop.f32.mrf.mxu2  ;;  %3047 = vst [vmem:[%s6948_s23 + $0x90] sm:$0xff] %v3031_v31  ;;  %v2974_v51 = vpop.f32.mrf.mxu1 }
 0x2af   : > { %v3277_v24 = vpop.f32.mrf.mxu3  ;;  %v2829_v18 = vpop.f32.mrf.mxu0 }
 0x2b0   : > { %v7350_v16 = vadd.f32 %v3277_v24, %v3164_v3  ;;  %v2871_v33 = vadd.f32 %v2829_v18, %v7197_v57 }
 0x2b1   : > { %6122 = vmatmul.msk.f32.gmra.mxu1 %vm321_vm1, %v3467_v46 }
 0x2b2   : > { %v3016_v0 = vadd.f32 %v2974_v51, %v2871_v33  ;;  %6105 = vmatmul.msk.f32.gmra.mxu0 %vm321_vm1, %v3465_v11  ;;  %v7402_v51 = vld [vmem:[#allocation2 + $0x14c] sm:$0xff] }
 0x2b3   : > { %6139 = vmatmul.msk.f32.gmra.mxu2 %vm321_vm1, %v3612_v40  ;;  %v3472_v33 = vld [vmem:[#allocation2 + $0x152] sm:$0xff] }
 0x2b4   : > { %v3032_v19 = vadd.f32 %v7313_v13, %v3016_v0  ;;  %6156 = vmatmul.msk.f32.gmra.mxu3 %vm321_vm1, %v7354_v22 }
 0x2b6   : > { %v3167_v36 = vpop.f32.mrf.mxu2  ;;  %3048 = vst [vmem:[%s6948_s23 + $0x98] sm:$0xff] %v3032_v19  ;;  %v2977_v34 = vpop.f32.mrf.mxu1  ;;  %v3617_v19 = vld [vmem:[#allocation2 + $0x153] sm:$0xff] }
 0x2b7   : > { %v3280_v57 = vpop.f32.mrf.mxu3  ;;  %v2832_v12 = vpop.f32.mrf.mxu0 }
 0x2b8   : > { %v7362_v5 = vadd.f32 %v3280_v57, %v3167_v36  ;;  %v2872_v54 = vadd.f32 %v2832_v12, %v7206_v47 }
 0x2b9   : > { %6123 = vmatmul.msk.f32.gmra.mxu1 %vm321_vm1, %v3468_v41 }
 0x2ba   : > { %v3017_v63 = vadd.f32 %v2977_v34, %v2872_v54  ;;  %6106 = vmatmul.msk.f32.gmra.mxu0 %vm321_vm1, %v3466_v60 }
 0x2bb   : > { %6140 = vmatmul.msk.f32.gmra.mxu2 %vm321_vm1, %v3613_v23 }
 0x2bc   : > { %v3033_v42 = vadd.f32 %v7313_v13, %v3017_v63  ;;  %6157 = vmatmul.msk.f32.gmra.mxu3 %vm321_vm1, %v7366_v49  ;;  %v3473_v63 = vld [vmem:[#allocation2 + $0x15a] sm:$0xff] }
 0x2be   : > { %v3170_v50 = vpop.f32.mrf.mxu2  ;;  %3049 = vst [vmem:[%s6948_s23 + $0xa0] sm:$0xff] %v3033_v42  ;;  %v2980_v4 = vpop.f32.mrf.mxu1 }
 0x2bf   : > { %v3283_v47 = vpop.f32.mrf.mxu3  ;;  %v2835_v32 = vpop.f32.mrf.mxu0 }
 0x2c0   : > { %v7374_v9 = vadd.f32 %v3283_v47, %v3170_v50  ;;  %v2873_v61 = vadd.f32 %v2835_v32, %v7215_v58  ;;  %v3618_v50 = vld [vmem:[#allocation2 + $0x15b] sm:$0xff] }
 0x2c1   : > { %6124 = vmatmul.msk.f32.gmra.mxu1 %vm321_vm1, %v3469_v45  ;;  %v7426_v47 = vld [vmem:[#allocation2 + $0x15c] sm:$0xff] }
 0x2c2   : > { %v3018_v55 = vadd.f32 %v2980_v4, %v2873_v61  ;;  %6107 = vmatmul.msk.f32.gmra.mxu0 %vm321_vm1, %v3467_v46 }
 0x2c3   : > { %6141 = vmatmul.msk.f32.gmra.mxu2 %vm321_vm1, %v3614_v14  ;;  %v306_v14 = vld [vmem:[%s6513_s12 + $0x188] sm:$0xff] }
 0x2c4   : > { %v3034_v1 = vadd.f32 %v7313_v13, %v3018_v55  ;;  %6158 = vmatmul.msk.f32.gmra.mxu3 %vm321_vm1, %v7378_v26  ;;  %371 = vst.msk [vmem:[#allocation2 + $0x188] sm:$0xff] %vm321_vm1, %v306_v14 }
 0x2c6   : > { %v3173_v11 = vpop.f32.mrf.mxu2  ;;  %3050 = vst [vmem:[%s6948_s23 + $0xa8] sm:$0xff] %v3034_v1  ;;  %v2983_v59 = vpop.f32.mrf.mxu1  ;;  %v3474_v1 = vld [vmem:[#allocation2 + $0x162] sm:$0xff] }
 0x2c7   : > { %v3286_v58 = vpop.f32.mrf.mxu3  ;;  %v2838_v17 = vpop.f32.mrf.mxu0 }
 0x2c8   : > { %v7386_v6 = vadd.f32 %v3286_v58, %v3173_v11  ;;  %v2874_v8 = vadd.f32 %v2838_v17, %v7224_v15 }
 0x2c9   : > { %6125 = vmatmul.msk.f32.gmra.mxu1 %vm321_vm1, %v3470_v62 }
 0x2ca   : > { %v3019_v39 = vadd.f32 %v2983_v59, %v2874_v8  ;;  %6108 = vmatmul.msk.f32.gmra.mxu0 %vm321_vm1, %v3468_v41  ;;  %v7414_v41 = vld [vmem:[#allocation2 + $0x154] sm:$0xff] }
 0x2cb   : > { %6142 = vmatmul.msk.f32.gmra.mxu2 %vm321_vm1, %v3615_v48  ;;  %v7440_v48 = vld [vmem:[#allocation2 + $0x164] sm:$0xff] }
 0x2cc   : > { %v3035_v60 = vadd.f32 %v7313_v13, %v3019_v39  ;;  %6159 = vmatmul.msk.f32.gmra.mxu3 %vm321_vm1, %v7390_v2  ;;  %v307_v39 = vld [vmem:[%s6513_s12 + $0x190] sm:$0xff] }
 0x2cd   : > { %372 = vst.msk [vmem:[#allocation2 + $0x190] sm:$0xff] %vm321_vm1, %v307_v39 }
 0x2ce   : > { %v3176_v25 = vpop.f32.mrf.mxu2  ;;  %3051 = vst [vmem:[%s6948_s23 + $0xb0] sm:$0xff] %v3035_v60  ;;  %v2986_v21 = vpop.f32.mrf.mxu1 }
 0x2cf   : > { %v3289_v15 = vpop.f32.mrf.mxu3  ;;  %v2841_v20 = vpop.f32.mrf.mxu0 }
 0x2d0   : > { %v7398_v31 = vadd.f32 %v3289_v15, %v3176_v25  ;;  %v2875_v3 = vadd.f32 %v2841_v20, %v7233_v7  ;;  %v3620_v20 = vld [vmem:[#allocation2 + $0x16b] sm:$0xff] }
 0x2d1   : > { %6126 = vmatmul.msk.f32.gmra.mxu1 %vm321_vm1, %v3471_v29 }
 0x2d2   : > { %v3020_v46 = vadd.f32 %v2986_v21, %v2875_v3  ;;  %6109 = vmatmul.msk.f32.gmra.mxu0 %vm321_vm1, %v3469_v45  ;;  %v3475_v21 = vld [vmem:[#allocation2 + $0x16a] sm:$0xff] }
 0x2d3   : > { %6143 = vmatmul.msk.f32.gmra.mxu2 %vm321_vm1, %v3616_v35 }
 0x2d4   : > { %v3036_v24 = vadd.f32 %v7313_v13, %v3020_v46  ;;  %6160 = vmatmul.msk.f32.gmra.mxu3 %vm321_vm1, %v7402_v51  ;;  %v7454_v46 = vld [vmem:[#allocation2 + $0x16c] sm:$0xff] }
 0x2d6   : > { %v3179_v18 = vpop.f32.mrf.mxu2  ;;  %3052 = vst [vmem:[%s6948_s23 + $0xb8] sm:$0xff] %v3036_v24  ;;  %v2989_v40 = vpop.f32.mrf.mxu1 }
 0x2d7   : > { %v3292_v7 = vpop.f32.mrf.mxu3  ;;  %v2844_v0 = vpop.f32.mrf.mxu0 }
 0x2d8   : > { %v7410_v36 = vadd.f32 %v3292_v7, %v3179_v18  ;;  %v2876_v34 = vadd.f32 %v2844_v0, %v7242_v52  ;;  %v3476_v7 = vld [vmem:[#allocation2 + $0x172] sm:$0xff] }
 0x2d9   : > { %6127 = vmatmul.msk.f32.gmra.mxu1 %vm321_vm1, %v3472_v33 }
 0x2da   : > { %v3021_v57 = vadd.f32 %v2989_v40, %v2876_v34  ;;  %6110 = vmatmul.msk.f32.gmra.mxu0 %vm321_vm1, %v3470_v62  ;;  %v3619_v62 = vld [vmem:[#allocation2 + $0x163] sm:$0xff] }
 0x2db   : > { %6144 = vmatmul.msk.f32.gmra.mxu2 %vm321_vm1, %v3617_v19  ;;  %v3621_v19 = vld [vmem:[#allocation2 + $0x173] sm:$0xff] }
 0x2dc   : > { %v3037_v12 = vadd.f32 %v7313_v13, %v3021_v57  ;;  %6161 = vmatmul.msk.f32.gmra.mxu3 %vm321_vm1, %v7414_v41 }
 0x2de   : > { %v3182_v23 = vpop.f32.mrf.mxu2  ;;  %3053 = vst [vmem:[%s6948_s23 + $0xc0] sm:$0xff] %v3037_v12  ;;  %v2992_v54 = vpop.f32.mrf.mxu1  ;;  %v7466_v12 = vld [vmem:[#allocation2 + $0x174] sm:$0xff] }
 0x2df   : > { %v3295_v52 = vpop.f32.mrf.mxu3  ;;  %v2847_v42 = vpop.f32.mrf.mxu0 }
 0x2e0   : > { %v7422_v4 = vadd.f32 %v3295_v52, %v3182_v23  ;;  %v2877_v45 = vadd.f32 %v2847_v42, %v7251_v53 }
 0x2e1   : > { %6128 = vmatmul.msk.f32.gmra.mxu1 %vm321_vm1, %v3473_v63 }
 0x2e2   : > { %v3022_v32 = vadd.f32 %v2992_v54, %v2877_v45  ;;  %6111 = vmatmul.msk.f32.gmra.mxu0 %vm321_vm1, %v3471_v29  ;;  %v3622_v45 = vld [vmem:[#allocation2 + $0x17b] sm:$0xff] }
 0x2e3   : > { %6145 = vmatmul.msk.f32.gmra.mxu2 %vm321_vm1, %v3618_v50 }
 0x2e4   : > { %v3038_v61 = vadd.f32 %v7313_v13, %v3022_v32  ;;  %6162 = vmatmul.msk.f32.gmra.mxu3 %vm321_vm1, %v7426_v47 }
 0x2e6   : > { %v3185_v55 = vpop.f32.mrf.mxu2  ;;  %3054 = vst [vmem:[%s6948_s23 + $0xc8] sm:$0xff] %v3038_v61  ;;  %v2995_v53 = vpop.f32.mrf.mxu1  ;;  %v7478_v61 = vld [vmem:[#allocation2 + $0x17c] sm:$0xff] }
 0x2e7   : > { %v3298_v11 = vpop.f32.mrf.mxu3  ;;  %v2850_v59 = vpop.f32.mrf.mxu0 }
 0x2e8   : > { %v7436_v58 = vadd.f32 %v3298_v11, %v3185_v55  ;;  %v2878_v17 = vadd.f32 %v2850_v59, %v7260_v43  ;;  %v308_v11 = vld [vmem:[%s6513_s12 + $0x198] sm:$0xff] }
 0x2e9   : > { %6129 = vmatmul.msk.f32.gmra.mxu1 %vm321_vm1, %v3474_v1  ;;  %373 = vst.msk [vmem:[#allocation2 + $0x198] sm:$0xff] %vm321_vm1, %v308_v11 }
 0x2ea   : > { %v3023_v8 = vadd.f32 %v2995_v53, %v2878_v17  ;;  %6112 = vmatmul.msk.f32.gmra.mxu0 %vm321_vm1, %v3472_v33 }
 0x2eb   : > { %6146 = vmatmul.msk.f32.gmra.mxu2 %vm321_vm1, %v3619_v62 }
 0x2ec   : > { %v3039_v60 = vadd.f32 %v7313_v13, %v3023_v8  ;;  %6163 = vmatmul.msk.f32.gmra.mxu3 %vm321_vm1, %v7440_v48  ;;  %v3623_v8 = vld [vmem:[#allocation2 + $0x183] sm:$0xff] }
 0x2ee   : > { %v3188_v25 = vpop.f32.mrf.mxu2  ;;  %3055 = vst [vmem:[%s6948_s23 + $0xd0] sm:$0xff] %v3039_v60  ;;  %v2998_v43 = vpop.f32.mrf.mxu1 }
 0x2ef   : > { %v3301_v29 = vpop.f32.mrf.mxu3  ;;  %v2853_v15 = vpop.f32.mrf.mxu0 }
 0x2f0   : > { %v7450_v35 = vadd.f32 %v3301_v29, %v3188_v25  ;;  %v2879_v3 = vadd.f32 %v2853_v15, %v7267_v56  ;;  %v7495_v25 = vld [vmem:[#allocation2 + $0x184] sm:$0xff] }
 0x2f1   : > { %6130 = vmatmul.msk.f32.gmra.mxu1 %vm321_vm1, %v3475_v21  ;;  %v309_v15 = vld [vmem:[%s6513_s12 + $0x1a0] sm:$0xff] }
 0x2f2   : > { %v3024_v24 = vadd.f32 %v2998_v43, %v2879_v3  ;;  %6113 = vmatmul.msk.f32.gmra.mxu0 %vm321_vm1, %v3473_v63  ;;  %374 = vst.msk [vmem:[#allocation2 + $0x1a0] sm:$0xff] %vm321_vm1, %v309_v15 }
 0x2f3   : > { %6147 = vmatmul.msk.f32.gmra.mxu2 %vm321_vm1, %v3620_v20 }
 0x2f4   : > { %v3040_v18 = vadd.f32 %v7313_v13, %v3024_v24  ;;  %6164 = vmatmul.msk.f32.gmra.mxu3 %vm321_vm1, %v7454_v46 }
 0x2f6   : > { %v3191_v40 = vpop.f32.mrf.mxu2  ;;  %3056 = vst [vmem:[%s6948_s23 + $0xd8] sm:$0xff] %v3040_v18  ;;  %v3001_v33 = vpop.f32.mrf.mxu1  ;;  %v3624_v18 = vld [vmem:[#allocation2 + $0x18b] sm:$0xff] }
 0x2f7   : > { %v3304_v56 = vpop.f32.mrf.mxu3  ;;  %v2856_v0 = vpop.f32.mrf.mxu0 }
 0x2f8   : > { %v7462_v34 = vadd.f32 %v3304_v56, %v3191_v40  ;;  %v2880_v57 = vadd.f32 %v2856_v0, %v7274_v10  ;;  %v3477_v10 = vld [vmem:[#allocation2 + $0x17a] sm:$0xff] }
 0x2f9   : > { %6131 = vmatmul.msk.f32.gmra.mxu1 %vm321_vm1, %v3476_v7 }
 0x2fa   : > { %v3025_v23 = vadd.f32 %v3001_v33, %v2880_v57  ;;  %6114 = vmatmul.msk.f32.gmra.mxu0 %vm321_vm1, %v3474_v1  ;;  %v310_v57 = vld [vmem:[%s6513_s12 + $0x1a8] sm:$0xff] }
 0x2fb   : > { %6148 = vmatmul.msk.f32.gmra.mxu2 %vm321_vm1, %v3621_v19  ;;  %375 = vst.msk [vmem:[#allocation2 + $0x1a8] sm:$0xff] %vm321_vm1, %v310_v57 }
 0x2fc   : > { %v3041_v54 = vadd.f32 %v7313_v13, %v3025_v23  ;;  %6165 = vmatmul.msk.f32.gmra.mxu3 %vm321_vm1, %v7466_v12 }
 0x2fe   : > { %v3194_v63 = vpop.f32.mrf.mxu2  ;;  %3057 = vst [vmem:[%s6948_s23 + $0xe0] sm:$0xff] %v3041_v54  ;;  %v3004_v52 = vpop.f32.mrf.mxu1 }
 0x2ff   : > { %v3307_v42 = vpop.f32.mrf.mxu3  ;;  %v2859_v50 = vpop.f32.mrf.mxu0 }
 0x300   : > { %v7474_v32 = vadd.f32 %v3307_v42, %v3194_v63  ;;  %v2881_v14 = vadd.f32 %v2859_v50, %v7281_v44  ;;  %v7487_v44 = vld [vmem:[#allocation2 + $0x182] sm:$0xff] }
 0x301   : > { %6132 = vmatmul.msk.f32.gmra.mxu1 %vm321_vm1, %v3477_v10 }
 0x302   : > { %v3026_v55 = vadd.f32 %v3004_v52, %v2881_v14  ;;  %6115 = vmatmul.msk.f32.gmra.mxu0 %vm321_vm1, %v3475_v21  ;;  %v4189_v52 = vld [vmem:[#allocation2 + $0x126] sm:$0xff]  ;;  %v6407_v14 = vld [vmem:[%s8031_s2 + $0x14] sm:$0xf] }
 0x303   : > { %6149 = vmatmul.msk.f32.gmra.mxu2 %vm321_vm1, %v3622_v45  ;;  %v6406_v45 = vld [vmem:[%s8031_s2 + $0x1c] sm:$0xf] }
 0x304   : > { %v3042_v53 = vadd.f32 %v7313_v13, %v3026_v55  ;;  %6166 = vmatmul.msk.f32.gmra.mxu3 %vm321_vm1, %v7478_v61  ;;  %v311_v55 = vld [vmem:[%s6513_s12 + $0x1b0] sm:$0xff] }
 0x305   : > { %376 = vst.msk [vmem:[#allocation2 + $0x1b0] sm:$0xff] %vm321_vm1, %v311_v55 }
 0x306   : > { %v3197_v1 = vpop.f32.mrf.mxu2  ;;  %3058 = vst [vmem:[%s6948_s23 + $0xe8] sm:$0xff] %v3042_v53  ;;  %v3007_v59 = vpop.f32.mrf.mxu1  ;;  %v6409_v53 = vld [vmem:[%s8031_s2 + $0x20] sm:$0xf] }
 0x307   : > { %v3310_v62 = vpop.f32.mrf.mxu3  ;;  %v2862_v17 = vpop.f32.mrf.mxu0 }
 0x308   : > { %v7490_v39 = vadd.f32 %v3310_v62, %v3197_v1  ;;  %v2882_v60 = vadd.f32 %v2862_v17, %v7288_v38  ;;  %v7504_v38 = vld [vmem:[#allocation2 + $0x18a] sm:$0xff] }
 0x309   : > { %6133 = vmatmul.msk.f32.gmra.mxu1 %vm321_vm1, %v7487_v44 }
 0x30a   : > { %v3027_v43 = vadd.f32 %v3007_v59, %v2882_v60  ;;  %6116 = vmatmul.msk.f32.gmra.mxu0 %vm321_vm1, %v3476_v7  ;;  %v7512_v7 = vld [vmem:[#allocation2 + $0x18c] sm:$0xff] }
 0x30b   : > { %6150 = vmatmul.msk.f32.gmra.mxu2 %vm321_vm1, %v3623_v8  ;;  %v4045_v59 = vld [vmem:[#allocation2 + $0x12d] sm:$0xff] }
 0x30c   : > { %v3043_v21 = vadd.f32 %v7313_v13, %v3027_v43  ;;  %6167 = vmatmul.msk.f32.gmra.mxu3 %vm321_vm1, %v7495_v25  ;;  %v4190_v8 = vld [vmem:[#allocation2 + $0x12e] sm:$0xff] }
 0x30e   : > { %v3200_v29 = vpop.f32.mrf.mxu2  ;;  %3059 = vst [vmem:[%s6948_s23 + $0xf0] sm:$0xff] %v3043_v21  ;;  %v3010_v20 = vpop.f32.mrf.mxu1  ;;  %v4383_v21 = vld [vmem:[#allocation2 + $0x189] sm:$0xff] }
 0x30f   : > { %v3313_v3 = vpop.f32.mrf.mxu3  ;;  %v2865_v24 = vpop.f32.mrf.mxu0 }
 0x310   : > { %v7507_v40 = vadd.f32 %v3313_v3, %v3200_v29  ;;  %v2883_v33 = vadd.f32 %v2865_v24, %v7295_v28  ;;  %v4044_v28 = vld [vmem:[#allocation2 + $0x125] sm:$0xff] }
 0x311   : > { %6134 = vmatmul.msk.f32.gmra.mxu1 %vm321_vm1, %v7504_v38 }
 0x312   : > { %v3028_v56 = vadd.f32 %v3010_v20, %v2883_v33  ;;  %6117 = vmatmul.msk.f32.gmra.mxu0 %vm321_vm1, %v3477_v10  ;;  %v312_v20 = vld [vmem:[%s6513_s12 + $0x1b8] sm:$0xff] }
 0x313   : > { %6151 = vmatmul.msk.f32.gmra.mxu2 %vm321_vm1, %v3624_v18  ;;  %v4046_v18 = vld [vmem:[#allocation2 + $0x135] sm:$0xff]  ;;  %377 = vst.msk [vmem:[#allocation2 + $0x1b8] sm:$0xff] %vm321_vm1, %v312_v20  ;;  %v4049_v20 = vld [vmem:[#allocation2 + $0x14d] sm:$0xff] }
 0x314   : > { %v3044_v0 = vadd.f32 %v7313_v13, %v3028_v56  ;;  %6168 = vmatmul.msk.f32.gmra.mxu3 %vm321_vm1, %v7512_v7  ;;  %v4382_v13 = vld [vmem:[#allocation2 + $0x181] sm:$0xff]  ;;  %v4191_v56 = vld [vmem:[#allocation2 + $0x136] sm:$0xff] }
 0x316   : > { %v3203_v19 = vpop.f32.mrf.mxu2  ;;  %3060 = vst [vmem:[%s6948_s23 + $0xf8] sm:$0xff] %v3044_v0  ;;  %v3545_v23 = vpop.f32.mrf.mxu1 }
 0x317   : > { %v3316_v54 = vpop.f32.mrf.mxu3  ;;  %v3400_v63 = vpop.f32.mrf.mxu0 }
 0x318   : > { %v7522_v42 = vadd.f32 %v3316_v54, %v3203_v19  ;;  %v3448_v10 = vadd.f32 %v3400_v63, %v7327_v37  ;;  %v6408_v37 = vld [vmem:[%s8031_s2 + $0x18] sm:$0xf] }
 0x319   : > { %6187 = vmatmul.msk.f32.vlgmr.msra.gmra.mxu1 %vm321_vm1, %v4044_v28  ;;  %v313_v28 = vld [vmem:[%s6513_s12 + $0x1c0] sm:$0xff] }
 0x31a   : > { %v3593_v50 = vadd.f32 %v3545_v23, %v3448_v10  ;;  %6170 = vmatmul.msk.f32.vlgmr.msra.gmra.mxu0 %vm321_vm1, %v7342_v27  ;;  %6322 = vmatpush.msk.msra.mxu1 %vm500_vm0, %v6408_v37  ;;  %378 = vst.msk [vmem:[#allocation2 + $0x1c0] sm:$0xff] %vm321_vm1, %v313_v28 }
 0x31b   : > { %6204 = vmatmul.msk.f32.vlgmr.msra.gmra.mxu2 %vm321_vm1, %v4189_v52  ;;  %6305 = vmatpush.msk.msra.mxu0 %vm500_vm0, %v6407_v14  ;;  %v4047_v52 = vld [vmem:[#allocation2 + $0x13d] sm:$0xff] }
 0x31c   : > { %6339 = vmatpush.msk.msra.mxu2 %vm500_vm0, %v6406_v45  ;;  %6221 = vmatmul.msk.f32.vlgmr.msra.gmra.mxu3 %vm321_vm1, %v4382_v13  ;;  %v4192_v13 = vld [vmem:[#allocation2 + $0x13e] sm:$0xff] }
 0x31d   : > { %6356 = vmatpush.msk.msra.mxu3 %vm500_vm0, %v6409_v53 }
 0x31e   : > { %v3690_v27 = vpop.f32.mrf.mxu2  ;;  %v3548_v11 = vpop.f32.mrf.mxu1 }
 0x31f   : > { %v3738_v1 = vadd.f32 %v3690_v27, %v3593_v50  ;;  %v3403_v62 = vpop.f32.mrf.mxu0  ;;  %v3835_v17 = vpop.f32.mrf.mxu3  ;;  %v314_v27 = vld [vmem:[%s6513_s12 + $0x1c8] sm:$0xff] }
 0x320   : > { %v3449_v60 = vadd.f32 %v3403_v62, %v7338_v30  ;;  %379 = vst.msk [vmem:[#allocation2 + $0x1c8] sm:$0xff] %vm321_vm1, %v314_v27  ;;  %v4196_v27 = vld [vmem:[#allocation2 + $0x15e] sm:$0xff] }
 0x321   : > { %v7549_v43 = vadd.f32 %v3835_v17, %v3738_v1  ;;  %6188 = vmatmul.msk.f32.gmra.mxu1 %vm321_vm1, %v4045_v59  ;;  %v4048_v1 = vld [vmem:[#allocation2 + $0x145] sm:$0xff] }
 0x322   : > { %v3594_v29 = vadd.f32 %v3548_v11, %v3449_v60  ;;  %6171 = vmatmul.msk.f32.gmra.mxu0 %vm321_vm1, %v7354_v22  ;;  %v4384_v22 = vld [vmem:[#allocation2 + $0x191] sm:$0xff]  ;;  %v4193_v59 = vld [vmem:[#allocation2 + $0x146] sm:$0xff] }
 0x323   : > { %6205 = vmatmul.msk.f32.gmra.mxu2 %vm321_vm1, %v4190_v8 }
 0x324   : > { %6222 = vmatmul.msk.f32.gmra.mxu3 %vm321_vm1, %v4383_v21  ;;  %v315_v21 = vld [vmem:[%s6513_s12 + $0x1d0] sm:$0xff] }
 0x325   : > { %380 = vst.msk [vmem:[#allocation2 + $0x1d0] sm:$0xff] %vm321_vm1, %v315_v21 }
 0x326   : > { %v3693_v15 = vpop.f32.mrf.mxu2  ;;  %v3551_v24 = vpop.f32.mrf.mxu1 }
 0x327   : > { %v3739_v3 = vadd.f32 %v3693_v15, %v3594_v29  ;;  %v3406_v30 = vpop.f32.mrf.mxu0  ;;  %v3838_v33 = vpop.f32.mrf.mxu3 }
 0x328   : > { %v3450_v0 = vadd.f32 %v3406_v30, %v7350_v16 }
 0x329   : > { %v7559_v19 = vadd.f32 %v3838_v33, %v3739_v3  ;;  %6189 = vmatmul.msk.f32.gmra.mxu1 %vm321_vm1, %v4046_v18 }
 0x32a   : > { %v3595_v57 = vadd.f32 %v3551_v24, %v3450_v0  ;;  %6172 = vmatmul.msk.f32.gmra.mxu0 %vm321_vm1, %v7366_v49  ;;  %v4385_v49 = vld [vmem:[#allocation2 + $0x199] sm:$0xff]  ;;  %v4194_v24 = vld [vmem:[#allocation2 + $0x14e] sm:$0xff] }
 0x32b   : > { %6206 = vmatmul.msk.f32.gmra.mxu2 %vm321_vm1, %v4191_v56  ;;  %v316_v0 = vld [vmem:[%s6513_s12 + $0x1d8] sm:$0xff] }
 0x32c   : > { %6223 = vmatmul.msk.f32.gmra.mxu3 %vm321_vm1, %v4384_v22  ;;  %381 = vst.msk [vmem:[#allocation2 + $0x1d8] sm:$0xff] %vm321_vm1, %v316_v0  ;;  %v4391_v0 = vld [vmem:[#allocation2 + $0x1c9] sm:$0xff] }
 0x32e   : > { %v3696_v23 = vpop.f32.mrf.mxu2  ;;  %v3554_v63 = vpop.f32.mrf.mxu1 }
 0x32f   : > { %v3740_v54 = vadd.f32 %v3696_v23, %v3595_v57  ;;  %v3409_v16 = vpop.f32.mrf.mxu0  ;;  %v3841_v10 = vpop.f32.mrf.mxu3  ;;  %v4050_v23 = vld [vmem:[#allocation2 + $0x155] sm:$0xff] }
 0x330   : > { %v3451_v50 = vadd.f32 %v3409_v16, %v7362_v5 }
 0x331   : > { %v7569_v45 = vadd.f32 %v3841_v10, %v3740_v54  ;;  %6190 = vmatmul.msk.f32.gmra.mxu1 %vm321_vm1, %v4047_v52  ;;  %v4195_v54 = vld [vmem:[#allocation2 + $0x156] sm:$0xff] }
 0x332   : > { %v3596_v14 = vadd.f32 %v3554_v63, %v3451_v50  ;;  %6173 = vmatmul.msk.f32.gmra.mxu0 %vm321_vm1, %v7378_v26  ;;  %v4386_v26 = vld [vmem:[#allocation2 + $0x1a1] sm:$0xff] }
 0x333   : > { %6207 = vmatmul.msk.f32.gmra.mxu2 %vm321_vm1, %v4192_v13  ;;  %v317_v13 = vld [vmem:[%s6513_s12 + $0x1e0] sm:$0xff] }
 0x334   : > { %6224 = vmatmul.msk.f32.gmra.mxu3 %vm321_vm1, %v4385_v49  ;;  %382 = vst.msk [vmem:[#allocation2 + $0x1e0] sm:$0xff] %vm321_vm1, %v317_v13 }
 0x336   : > { %v3699_v37 = vpop.f32.mrf.mxu2  ;;  %v3557_v53 = vpop.f32.mrf.mxu1 }
 0x337   : > { %v3741_v55 = vadd.f32 %v3699_v37, %v3596_v14  ;;  %v3412_v5 = vpop.f32.mrf.mxu0  ;;  %v3844_v11 = vpop.f32.mrf.mxu3  ;;  %v4051_v14 = vld [vmem:[#allocation2 + $0x15d] sm:$0xff] }
 0x338   : > { %v3452_v62 = vadd.f32 %v3412_v5, %v7374_v9 }
 0x339   : > { %v7579_v17 = vadd.f32 %v3844_v11, %v3741_v55  ;;  %6191 = vmatmul.msk.f32.gmra.mxu1 %vm321_vm1, %v4048_v1  ;;  %v318_v11 = vld [vmem:[%s6513_s12 + $0x1e8] sm:$0xff] }
 0x33a   : > { %v3597_v8 = vadd.f32 %v3557_v53, %v3452_v62  ;;  %6174 = vmatmul.msk.f32.gmra.mxu0 %vm321_vm1, %v7390_v2  ;;  %v4387_v2 = vld [vmem:[#allocation2 + $0x1a9] sm:$0xff]  ;;  %383 = vst.msk [vmem:[#allocation2 + $0x1e8] sm:$0xff] %vm321_vm1, %v318_v11 }
 0x33b   : > { %6208 = vmatmul.msk.f32.gmra.mxu2 %vm321_vm1, %v4193_v59 }
 0x33c   : > { %6225 = vmatmul.msk.f32.gmra.mxu3 %vm321_vm1, %v4386_v26 }
 0x33e   : > { %v3702_v60 = vpop.f32.mrf.mxu2  ;;  %v3560_v15 = vpop.f32.mrf.mxu1 }
 0x33f   : > { %v3742_v29 = vadd.f32 %v3702_v60, %v3597_v8  ;;  %v3415_v9 = vpop.f32.mrf.mxu0  ;;  %v3847_v3 = vpop.f32.mrf.mxu3  ;;  %v4197_v60 = vld [vmem:[#allocation2 + $0x166] sm:$0xff] }
 0x340   : > { %v3453_v18 = vadd.f32 %v3415_v9, %v7386_v6  ;;  %v319_v9 = vld [vmem:[%s6513_s12 + $0x1f0] sm:$0xff] }
 0x341   : > { %v7589_v30 = vadd.f32 %v3847_v3, %v3742_v29  ;;  %6192 = vmatmul.msk.f32.gmra.mxu1 %vm321_vm1, %v4049_v20  ;;  %384 = vst.msk [vmem:[#allocation2 + $0x1f0] sm:$0xff] %vm321_vm1, %v319_v9 }
 0x342   : > { %v3598_v33 = vadd.f32 %v3560_v15, %v3453_v18  ;;  %6175 = vmatmul.msk.f32.gmra.mxu0 %vm321_vm1, %v7402_v51  ;;  %v4388_v51 = vld [vmem:[#allocation2 + $0x1b1] sm:$0xff] }
 0x343   : > { %6209 = vmatmul.msk.f32.gmra.mxu2 %vm321_vm1, %v4194_v24  ;;  %v4053_v18 = vld [vmem:[#allocation2 + $0x16d] sm:$0xff] }
 0x344   : > { %6226 = vmatmul.msk.f32.gmra.mxu3 %vm321_vm1, %v4387_v2 }
 0x346   : > { %v3705_v56 = vpop.f32.mrf.mxu2  ;;  %v3563_v57 = vpop.f32.mrf.mxu1 }
 0x347   : > { %v3743_v22 = vadd.f32 %v3705_v56, %v3598_v33  ;;  %v3418_v6 = vpop.f32.mrf.mxu0  ;;  %v3850_v28 = vpop.f32.mrf.mxu3  ;;  %v4198_v33 = vld [vmem:[#allocation2 + $0x16e] sm:$0xff] }
 0x348   : > { %v3454_v63 = vadd.f32 %v3418_v6, %v7398_v31 }
 0x349   : > { %v7599_v52 = vadd.f32 %v3850_v28, %v3743_v22  ;;  %6193 = vmatmul.msk.f32.gmra.mxu1 %vm321_vm1, %v4050_v23  ;;  %v320_v23 = vld [vmem:[%s6513_s12 + $0x1f8] sm:$0xff] }
 0x34a   : > { %v3599_v16 = vadd.f32 %v3563_v57, %v3454_v63  ;;  %6176 = vmatmul.msk.f32.gmra.mxu0 %vm321_vm1, %v7414_v41  ;;  %v4389_v41 = vld [vmem:[#allocation2 + $0x1b9] sm:$0xff]  ;;  %385 = vst.msk [vmem:[#allocation2 + $0x1f8] sm:$0xff] %vm321_vm1, %v320_v23 }
 0x34b   : > { %6210 = vmatmul.msk.f32.gmra.mxu2 %vm321_vm1, %v4195_v54  ;;  %v4054_v54 = vld [vmem:[#allocation2 + $0x175] sm:$0xff] }
 0x34c   : > { %6227 = vmatmul.msk.f32.gmra.mxu3 %vm321_vm1, %v4388_v51  ;;  %v4199_v51 = vld [vmem:[#allocation2 + $0x176] sm:$0xff] }
 0x34e   : > { %v3708_v10 = vpop.f32.mrf.mxu2  ;;  %v3566_v49 = vpop.f32.mrf.mxu1 }
 0x34f   : > { %v3744_v50 = vadd.f32 %v3708_v10, %v3599_v16  ;;  %v3421_v31 = vpop.f32.mrf.mxu0  ;;  %v3853_v37 = vpop.f32.mrf.mxu3 }
 0x350   : > { %v3455_v55 = vadd.f32 %v3421_v31, %v7410_v36  ;;  %v4052_v36 = vld [vmem:[#allocation2 + $0x165] sm:$0xff]  ;;  %v4055_v31 = vld [vmem:[#allocation2 + $0x17d] sm:$0xff] }
 0x351   : > { %v7609_v53 = vadd.f32 %v3853_v37, %v3744_v50  ;;  %6194 = vmatmul.msk.f32.gmra.mxu1 %vm321_vm1, %v4051_v14  ;;  %v386_v50 = vld [vmem:[%s7649_s13] sm:$0xff] }
 0x352   : > { %v3600_v1 = vadd.f32 %v3566_v49, %v3455_v55  ;;  %6177 = vmatmul.msk.f32.gmra.mxu0 %vm321_vm1, %v7426_v47  ;;  %v4390_v47 = vld [vmem:[#allocation2 + $0x1c1] sm:$0xff]  ;;  %394 = vst.msk [vmem:[#allocation2 + $0x200] sm:$0xff] %vm321_vm1, %v386_v50 }
 0x353   : > { %6211 = vmatmul.msk.f32.gmra.mxu2 %vm321_vm1, %v4196_v27 }
 0x354   : > { %6228 = vmatmul.msk.f32.gmra.mxu3 %vm321_vm1, %v4389_v41 }
 0x356   : > { %v3711_v5 = vpop.f32.mrf.mxu2  ;;  %v3569_v62 = vpop.f32.mrf.mxu1 }
 0x357   : > { %v3745_v59 = vadd.f32 %v3711_v5, %v3600_v1  ;;  %v3424_v26 = vpop.f32.mrf.mxu0  ;;  %v3856_v8 = vpop.f32.mrf.mxu3  ;;  %v4393_v1 = vld [vmem:[#allocation2 + $0x1d9] sm:$0xff] }
 0x358   : > { %v3456_v21 = vadd.f32 %v3424_v26, %v7422_v4 }
 0x359   : > { %v7619_v29 = vadd.f32 %v3856_v8, %v3745_v59  ;;  %6195 = vmatmul.msk.f32.gmra.mxu1 %vm321_vm1, %v4052_v36  ;;  %v4056_v36 = vld [vmem:[#allocation2 + $0x185] sm:$0xff] }
 0x35a   : > { %v3601_v15 = vadd.f32 %v3569_v62, %v3456_v21  ;;  %6178 = vmatmul.msk.f32.gmra.mxu0 %vm321_vm1, %v7440_v48 }
 0x35b   : > { %6212 = vmatmul.msk.f32.gmra.mxu2 %vm321_vm1, %v4197_v60 }
 0x35c   : > { %6229 = vmatmul.msk.f32.gmra.mxu3 %vm321_vm1, %v4390_v47  ;;  %v4394_v47 = vld [vmem:[#allocation2 + $0x1e1] sm:$0xff] }
 0x35e   : > { %v3714_v20 = vpop.f32.mrf.mxu2  ;;  %v3572_v24 = vpop.f32.mrf.mxu1 }
 0x35f   : > { %v3746_v3 = vadd.f32 %v3714_v20, %v3601_v15  ;;  %v3427_v4 = vpop.f32.mrf.mxu0  ;;  %v3859_v2 = vpop.f32.mrf.mxu3 }
 0x360   : > { %v3457_v56 = vadd.f32 %v3427_v4, %v7436_v58 }
 0x361   : > { %v7630_v48 = vadd.f32 %v3859_v2, %v3746_v3  ;;  %6196 = vmatmul.msk.f32.gmra.mxu1 %vm321_vm1, %v4053_v18  ;;  %v4057_v3 = vld [vmem:[#allocation2 + $0x18d] sm:$0xff] }
 0x362   : > { %v3602_v22 = vadd.f32 %v3572_v24, %v3457_v56  ;;  %6179 = vmatmul.msk.f32.gmra.mxu0 %vm321_vm1, %v7454_v46  ;;  %v4392_v46 = vld [vmem:[#allocation2 + $0x1d1] sm:$0xff] }
 0x363   : > { %6213 = vmatmul.msk.f32.gmra.mxu2 %vm321_vm1, %v4198_v33  ;;  %v4395_v33 = vld [vmem:[#allocation2 + $0x1e9] sm:$0xff] }
 0x364   : > { %6230 = vmatmul.msk.f32.gmra.mxu3 %vm321_vm1, %v4391_v0 }
 0x366   : > { %v3717_v57 = vpop.f32.mrf.mxu2  ;;  %v3575_v28 = vpop.f32.mrf.mxu1 }
 0x367   : > { %v3747_v6 = vadd.f32 %v3717_v57, %v3602_v22  ;;  %v3430_v58 = vpop.f32.mrf.mxu0  ;;  %v3862_v63 = vpop.f32.mrf.mxu3  ;;  %v4058_v57 = vld [vmem:[#allocation2 + $0x195] sm:$0xff] }
 0x368   : > { %v3458_v16 = vadd.f32 %v3430_v58, %v7450_v35 }
 0x369   : > { %v7640_v10 = vadd.f32 %v3862_v63, %v3747_v6  ;;  %6197 = vmatmul.msk.f32.gmra.mxu1 %vm321_vm1, %v4054_v54 }
 0x36a   : > { %v3603_v13 = vadd.f32 %v3575_v28, %v3458_v16  ;;  %6180 = vmatmul.msk.f32.gmra.mxu0 %vm321_vm1, %v7466_v12  ;;  %v4200_v12 = vld [vmem:[#allocation2 + $0x17e] sm:$0xff]  ;;  %v4203_v28 = vld [vmem:[#allocation2 + $0x196] sm:$0xff] }
 0x36b   : > { %6214 = vmatmul.msk.f32.gmra.mxu2 %vm321_vm1, %v4199_v51 }
 0x36c   : > { %6231 = vmatmul.msk.f32.gmra.mxu3 %vm321_vm1, %v4392_v46 }
 0x36e   : > { %v3720_v35 = vpop.f32.mrf.mxu2  ;;  %v3578_v14 = vpop.f32.mrf.mxu1 }
 0x36f   : > { %v3748_v49 = vadd.f32 %v3720_v35, %v3603_v13  ;;  %v3433_v37 = vpop.f32.mrf.mxu0  ;;  %v3865_v27 = vpop.f32.mrf.mxu3  ;;  %v4059_v13 = vld [vmem:[#allocation2 + $0x19d] sm:$0xff] }
 0x370   : > { %v3459_v55 = vadd.f32 %v3433_v37, %v7462_v34  ;;  %v4201_v34 = vld [vmem:[#allocation2 + $0x186] sm:$0xff]  ;;  %v4397_v37 = vld [vmem:[#allocation2 + $0x1f9] sm:$0xff] }
 0x371   : > { %v7655_v41 = vadd.f32 %v3865_v27, %v3748_v49  ;;  %6198 = vmatmul.msk.f32.gmra.mxu1 %vm321_vm1, %v4055_v31  ;;  %v4204_v49 = vld [vmem:[#allocation2 + $0x19e] sm:$0xff] }
 0x372   : > { %v3604_v5 = vadd.f32 %v3578_v14, %v3459_v55  ;;  %6181 = vmatmul.msk.f32.gmra.mxu0 %vm321_vm1, %v7478_v61 }
 0x373   : > { %6215 = vmatmul.msk.f32.gmra.mxu2 %vm321_vm1, %v4200_v12 }
 0x374   : > { %6232 = vmatmul.msk.f32.gmra.mxu3 %vm321_vm1, %v4393_v1 }
 0x376   : > { %v3723_v11 = vpop.f32.mrf.mxu2  ;;  %v3581_v62 = vpop.f32.mrf.mxu1 }
 0x377   : > { %v3749_v59 = vadd.f32 %v3723_v11, %v3604_v5  ;;  %v3436_v26 = vpop.f32.mrf.mxu0  ;;  %v3868_v8 = vpop.f32.mrf.mxu3 }
 0x378   : > { %v3460_v60 = vadd.f32 %v3436_v26, %v7474_v32  ;;  %v4202_v32 = vld [vmem:[#allocation2 + $0x18e] sm:$0xff] }
 0x379   : > { %v7663_v21 = vadd.f32 %v3868_v8, %v3749_v59  ;;  %6199 = vmatmul.msk.f32.gmra.mxu1 %vm321_vm1, %v4056_v36  ;;  %v4366_v59 = vld [vmem:[#allocation2 + $0x180] sm:$0xff]  ;;  %v4914_v26 = vld [vmem:[#allocation2 + $0x193] sm:$0xff] }
 0x37a   : > { %v3605_v15 = vadd.f32 %v3581_v62, %v3460_v60  ;;  %6182 = vmatmul.msk.f32.gmra.mxu0 %vm321_vm1, %v7495_v25 }
 0x37b   : > { %6216 = vmatmul.msk.f32.gmra.mxu2 %vm321_vm1, %v4201_v34 }
 0x37c   : > { %6233 = vmatmul.msk.f32.gmra.mxu3 %vm321_vm1, %v4394_v47 }
 0x37e   : > { %v3726_v61 = vpop.f32.mrf.mxu2  ;;  %v3584_v9 = vpop.f32.mrf.mxu1 }
 0x37f   : > { %v3750_v20 = vadd.f32 %v3726_v61, %v3605_v15  ;;  %v3439_v24 = vpop.f32.mrf.mxu0  ;;  %v3871_v18 = vpop.f32.mrf.mxu3 }
 0x380   : > { %v3461_v4 = vadd.f32 %v3439_v24, %v7490_v39  ;;  %v7678_v39 = vld [vmem:[#allocation2 + $0x194] sm:$0xff] }
 0x381   : > { %v7671_v2 = vadd.f32 %v3871_v18, %v3750_v20  ;;  %6200 = vmatmul.msk.f32.gmra.mxu1 %vm321_vm1, %v4057_v3  ;;  %v4367_v20 = vld [vmem:[#allocation2 + $0x188] sm:$0xff]  ;;  %v4915_v24 = vld [vmem:[#allocation2 + $0x19b] sm:$0xff] }
 0x382   : > { %v3606_v56 = vadd.f32 %v3584_v9, %v3461_v4  ;;  %6183 = vmatmul.msk.f32.gmra.mxu0 %vm321_vm1, %v7512_v7  ;;  %v4396_v7 = vld [vmem:[#allocation2 + $0x1f1] sm:$0xff] }
 0x383   : > { %6217 = vmatmul.msk.f32.gmra.mxu2 %vm321_vm1, %v4202_v32 }
 0x384   : > { %6234 = vmatmul.msk.f32.gmra.mxu3 %vm321_vm1, %v4395_v33 }
 0x386   : > { %v3729_v25 = vpop.f32.mrf.mxu2  ;;  %v3587_v22 = vpop.f32.mrf.mxu1 }
 0x387   : > { %v3751_v0 = vadd.f32 %v3729_v25, %v3606_v56  ;;  %v3442_v23 = vpop.f32.mrf.mxu0  ;;  %v3874_v6 = vpop.f32.mrf.mxu3 }
 0x388   : > { %v3462_v54 = vadd.f32 %v3442_v23, %v7507_v40  ;;  %v7688_v40 = vld [vmem:[#allocation2 + $0x19c] sm:$0xff] }
 0x389   : > { %v7681_v58 = vadd.f32 %v3874_v6, %v3751_v0  ;;  %6201 = vmatmul.msk.f32.gmra.mxu1 %vm321_vm1, %v4058_v57  ;;  %v4771_v0 = vld [vmem:[#allocation2 + $0x1a2] sm:$0xff] }
 0x38a   : > { %v3607_v63 = vadd.f32 %v3587_v22, %v3462_v54  ;;  %6184 = vmatmul.msk.f32.gmra.mxu0 %vm321_vm1, %v7678_v39  ;;  %v4916_v57 = vld [vmem:[#allocation2 + $0x1a3] sm:$0xff] }
 0x38b   : > { %6218 = vmatmul.msk.f32.gmra.mxu2 %vm321_vm1, %v4203_v28 }
 0x38c   : > { %6235 = vmatmul.msk.f32.gmra.mxu3 %vm321_vm1, %v4396_v7 }
 0x38e   : > { %v3732_v51 = vpop.f32.mrf.mxu2  ;;  %v3590_v46 = vpop.f32.mrf.mxu1 }
 0x38f   : > { %v3752_v16 = vadd.f32 %v3732_v51, %v3607_v63  ;;  %v3445_v35 = vpop.f32.mrf.mxu0  ;;  %v3877_v50 = vpop.f32.mrf.mxu3  ;;  %v4369_v51 = vld [vmem:[#allocation2 + $0x198] sm:$0xff] }
 0x390   : > { %v3463_v14 = vadd.f32 %v3445_v35, %v7522_v42  ;;  %v4769_v42 = vld [vmem:[#allocation2 + $0x192] sm:$0xff] }
 0x391   : > { %v7691_v31 = vadd.f32 %v3877_v50, %v3752_v16  ;;  %6202 = vmatmul.msk.f32.gmra.mxu1 %vm321_vm1, %v4059_v13  ;;  %v4917_v13 = vld [vmem:[#allocation2 + $0x1ab] sm:$0xff] }
 0x392   : > { %v3608_v27 = vadd.f32 %v3590_v46, %v3463_v14  ;;  %6185 = vmatmul.msk.f32.gmra.mxu0 %vm321_vm1, %v7688_v40 }
 0x393   : > { %6219 = vmatmul.msk.f32.gmra.mxu2 %vm321_vm1, %v4204_v49 }
 0x394   : > { %6236 = vmatmul.msk.f32.gmra.mxu3 %vm321_vm1, %v4397_v37 }
 0x396   : > { %v3735_v12 = vpop.f32.mrf.mxu2  ;;  %v4125_v1 = vpop.f32.mrf.mxu1 }
 0x397   : > { %v3753_v55 = vadd.f32 %v3735_v12, %v3608_v27  ;;  %v3880_v5 = vpop.f32.mrf.mxu3  ;;  %v3980_v11 = vpop.f32.mrf.mxu0  ;;  %v4370_v12 = vld [vmem:[#allocation2 + $0x1a0] sm:$0xff] }
 0x398   : > { %v4028_v36 = vadd.f32 %v3980_v11, %v7549_v43  ;;  %v4770_v43 = vld [vmem:[#allocation2 + $0x19a] sm:$0xff] }
 0x399   : > { %v7698_v62 = vadd.f32 %v3880_v5, %v3753_v55  ;;  %6255 = vmatmul.msk.f32.vlgmr.msrb.gmra.mxu1 %vm321_vm1, %v7487_v44  ;;  %v7711_v44 = vld [vmem:[%s8032_s3] ss:$0 sm:$0xff]  ;;  %v4918_v5 = vld [vmem:[#allocation2 + $0x1b3] sm:$0xff] }
 0x39a   : > { %6238 = vmatmul.msk.f32.vlgmr.msrb.gmra.mxu0 %vm321_vm1, %v4366_v59  ;;  %v4173_v8 = vadd.f32 %v4125_v1, %v4028_v36 }
 0x39b   : > { %6272 = vmatmul.msk.f32.vlgmr.msrb.gmra.mxu2 %vm321_vm1, %v4769_v42 }
 0x39c   : > { %6289 = vmatmul.msk.f32.vlgmr.msrb.gmra.mxu3 %vm321_vm1, %v4914_v26 }
 0x39e   : > { %v4270_v34 = vpop.f32.mrf.mxu2  ;;  %v4128_v47 = vpop.f32.mrf.mxu1 }
 0x39f   : > { %v4318_v60 = vadd.f32 %v4270_v34, %v4173_v8  ;;  %v3983_v15 = vpop.f32.mrf.mxu0  ;;  %v7706_v61 = vpop.f32.mrf.mxu3  ;;  %v4371_v34 = vld [vmem:[#allocation2 + $0x1a8] sm:$0xff] }
 0x3a0   : > { %v4029_v3 = vadd.f32 %v3983_v15, %v7559_v19  ;;  %v4368_v19 = vld [vmem:[#allocation2 + $0x190] sm:$0xff]  ;;  %v4919_v15 = vld [vmem:[#allocation2 + $0x1bb] sm:$0xff] }
 0x3a1   : > { %v4334_v9 = vadd.f32 %v7711_v44, %v4318_v60  ;;  %6256 = vmatmul.msk.f32.gmra.mxu1 %vm321_vm1, %v7504_v38 }
 0x3a2   : > { %6239 = vmatmul.msk.f32.gmra.mxu0 %vm321_vm1, %v4367_v20  ;;  %v4174_v18 = vadd.f32 %v4128_v47, %v4029_v3 }
 0x3a3   : > { %4350 = vst [vmem:[%s6948_s23 + $0x100] sm:$0xff] %v4334_v9  ;;  %6273 = vmatmul.msk.f32.gmra.mxu2 %vm321_vm1, %v4770_v43 }
 0x3a4   : > { %6290 = vmatmul.msk.f32.gmra.mxu3 %vm321_vm1, %v4915_v24 }
 0x3a6   : > { %v4273_v32 = vpop.f32.mrf.mxu2  ;;  %v4131_v33 = vpop.f32.mrf.mxu1 }
 0x3a7   : > { %v4319_v4 = vadd.f32 %v4273_v32, %v4174_v18  ;;  %v3986_v56 = vpop.f32.mrf.mxu0  ;;  %v7721_v25 = vpop.f32.mrf.mxu3  ;;  %v4372_v32 = vld [vmem:[#allocation2 + $0x1b0] sm:$0xff] }
 0x3a8   : > { %v4030_v22 = vadd.f32 %v3986_v56, %v7569_v45  ;;  %v4772_v45 = vld [vmem:[#allocation2 + $0x1aa] sm:$0xff] }
 0x3a9   : > { %v4335_v38 = vadd.f32 %v7711_v44, %v4319_v4  ;;  %6257 = vmatmul.msk.f32.gmra.mxu1 %vm321_vm1, %v4769_v42  ;;  %v4920_v56 = vld [vmem:[#allocation2 + $0x1c3] sm:$0xff] }
 0x3aa   : > { %6240 = vmatmul.msk.f32.gmra.mxu0 %vm321_vm1, %v4368_v19  ;;  %v4175_v23 = vadd.f32 %v4131_v33, %v4030_v22 }
 0x3ab   : > { %4351 = vst [vmem:[%s6948_s23 + $0x108] sm:$0xff] %v4335_v38  ;;  %6274 = vmatmul.msk.f32.gmra.mxu2 %vm321_vm1, %v4771_v0 }
 0x3ac   : > { %6291 = vmatmul.msk.f32.gmra.mxu3 %vm321_vm1, %v4916_v57 }
 0x3ae   : > { %v4276_v6 = vpop.f32.mrf.mxu2  ;;  %v4134_v54 = vpop.f32.mrf.mxu1 }
 0x3af   : > { %v4320_v28 = vadd.f32 %v4276_v6, %v4175_v23  ;;  %v3989_v7 = vpop.f32.mrf.mxu0  ;;  %v7730_v63 = vpop.f32.mrf.mxu3  ;;  %v4373_v6 = vld [vmem:[#allocation2 + $0x1b8] sm:$0xff] }
 0x3b0   : > { %v4031_v46 = vadd.f32 %v3989_v7, %v7579_v17  ;;  %v4773_v17 = vld [vmem:[#allocation2 + $0x1b2] sm:$0xff] }
 0x3b1   : > { %v4336_v16 = vadd.f32 %v7711_v44, %v4320_v28  ;;  %6258 = vmatmul.msk.f32.gmra.mxu1 %vm321_vm1, %v4770_v43  ;;  %v4921_v7 = vld [vmem:[#allocation2 + $0x1cb] sm:$0xff] }
 0x3b2   : > { %6241 = vmatmul.msk.f32.gmra.mxu0 %vm321_vm1, %v4369_v51  ;;  %v4176_v35 = vadd.f32 %v4134_v54, %v4031_v46 }
 0x3b3   : > { %4352 = vst [vmem:[%s6948_s23 + $0x110] sm:$0xff] %v4336_v16  ;;  %6275 = vmatmul.msk.f32.gmra.mxu2 %vm321_vm1, %v4772_v45 }
 0x3b4   : > { %6292 = vmatmul.msk.f32.gmra.mxu3 %vm321_vm1, %v4917_v13 }
 0x3b6   : > { %v4279_v50 = vpop.f32.mrf.mxu2  ;;  %v4137_v14 = vpop.f32.mrf.mxu1 }
 0x3b7   : > { %v4321_v49 = vadd.f32 %v4279_v50, %v4176_v35  ;;  %v3992_v37 = vpop.f32.mrf.mxu0  ;;  %v7739_v27 = vpop.f32.mrf.mxu3  ;;  %v4374_v50 = vld [vmem:[#allocation2 + $0x1c0] sm:$0xff] }
 0x3b8   : > { %v4032_v1 = vadd.f32 %v3992_v37, %v7589_v30  ;;  %v4774_v30 = vld [vmem:[#allocation2 + $0x1ba] sm:$0xff] }
 0x3b9   : > { %v4337_v55 = vadd.f32 %v7711_v44, %v4321_v49  ;;  %6259 = vmatmul.msk.f32.gmra.mxu1 %vm321_vm1, %v4771_v0  ;;  %v4922_v37 = vld [vmem:[#allocation2 + $0x1d3] sm:$0xff] }
 0x3ba   : > { %6242 = vmatmul.msk.f32.gmra.mxu0 %vm321_vm1, %v4370_v12  ;;  %v4177_v11 = vadd.f32 %v4137_v14, %v4032_v1 }
 0x3bb   : > { %4353 = vst [vmem:[%s6948_s23 + $0x118] sm:$0xff] %v4337_v55  ;;  %6276 = vmatmul.msk.f32.gmra.mxu2 %vm321_vm1, %v4773_v17 }
 0x3bc   : > { %6293 = vmatmul.msk.f32.gmra.mxu3 %vm321_vm1, %v4918_v5 }
 0x3be   : > { %v4282_v59 = vpop.f32.mrf.mxu2  ;;  %v4140_v36 = vpop.f32.mrf.mxu1 }
 0x3bf   : > { %v4322_v42 = vadd.f32 %v4282_v59, %v4177_v11  ;;  %v3995_v26 = vpop.f32.mrf.mxu0  ;;  %v7748_v8 = vpop.f32.mrf.mxu3  ;;  %v4778_v59 = vld [vmem:[#allocation2 + $0x1da] sm:$0xff] }
 0x3c0   : > { %v4033_v47 = vadd.f32 %v3995_v26, %v7599_v52  ;;  %v4775_v52 = vld [vmem:[#allocation2 + $0x1c2] sm:$0xff] }
 0x3c1   : > { %v4338_v60 = vadd.f32 %v7711_v44, %v4322_v42  ;;  %6260 = vmatmul.msk.f32.gmra.mxu1 %vm321_vm1, %v4772_v45  ;;  %v4923_v26 = vld [vmem:[#allocation2 + $0x1db] sm:$0xff] }
 0x3c2   : > { %6243 = vmatmul.msk.f32.gmra.mxu0 %vm321_vm1, %v4371_v34  ;;  %v4178_v20 = vadd.f32 %v4140_v36, %v4033_v47  ;;  %v387_v34 = vld [vmem:[%s7649_s13 + $0x8] sm:$0xff] }
 0x3c3   : > { %4354 = vst [vmem:[%s6948_s23 + $0x120] sm:$0xff] %v4338_v60  ;;  %6277 = vmatmul.msk.f32.gmra.mxu2 %vm321_vm1, %v4774_v30 }
 0x3c4   : > { %6294 = vmatmul.msk.f32.gmra.mxu3 %vm321_vm1, %v4919_v15  ;;  %395 = vst.msk [vmem:[#allocation2 + $0x208] sm:$0xff] %vm321_vm1, %v387_v34 }
 0x3c6   : > { %v4285_v43 = vpop.f32.mrf.mxu2  ;;  %v4143_v3 = vpop.f32.mrf.mxu1 }
 0x3c7   : > { %v4323_v9 = vadd.f32 %v4285_v43, %v4178_v20  ;;  %v3998_v24 = vpop.f32.mrf.mxu0  ;;  %v7757_v18 = vpop.f32.mrf.mxu3  ;;  %v4376_v43 = vld [vmem:[#allocation2 + $0x1d0] sm:$0xff] }
 0x3c8   : > { %v4034_v33 = vadd.f32 %v3998_v24, %v7609_v53  ;;  %v4776_v53 = vld [vmem:[#allocation2 + $0x1ca] sm:$0xff] }
 0x3c9   : > { %v4339_v4 = vadd.f32 %v7711_v44, %v4323_v9  ;;  %6261 = vmatmul.msk.f32.gmra.mxu1 %vm321_vm1, %v4773_v17  ;;  %v4779_v9 = vld [vmem:[#allocation2 + $0x1e2] sm:$0xff] }
 0x3ca   : > { %6244 = vmatmul.msk.f32.gmra.mxu0 %vm321_vm1, %v4372_v32  ;;  %v4179_v19 = vadd.f32 %v4143_v3, %v4034_v33  ;;  %v4924_v32 = vld [vmem:[#allocation2 + $0x1e3] sm:$0xff] }
 0x3cb   : > { %4355 = vst [vmem:[%s6948_s23 + $0x128] sm:$0xff] %v4339_v4  ;;  %6278 = vmatmul.msk.f32.gmra.mxu2 %vm321_vm1, %v4775_v52 }
 0x3cc   : > { %6295 = vmatmul.msk.f32.gmra.mxu3 %vm321_vm1, %v4920_v56 }
 0x3ce   : > { %v4288_v0 = vpop.f32.mrf.mxu2  ;;  %v4146_v22 = vpop.f32.mrf.mxu1 }
 0x3cf   : > { %v4324_v38 = vadd.f32 %v4288_v0, %v4179_v19  ;;  %v4001_v57 = vpop.f32.mrf.mxu0  ;;  %v7766_v23 = vpop.f32.mrf.mxu3 }
 0x3d0   : > { %v4035_v54 = vadd.f32 %v4001_v57, %v7619_v29  ;;  %v4777_v29 = vld [vmem:[#allocation2 + $0x1d2] sm:$0xff] }
 0x3d1   : > { %v4340_v28 = vadd.f32 %v7711_v44, %v4324_v38  ;;  %6262 = vmatmul.msk.f32.gmra.mxu1 %vm321_vm1, %v4774_v30  ;;  %v4377_v38 = vld [vmem:[#allocation2 + $0x1d8] sm:$0xff] }
 0x3d2   : > { %6245 = vmatmul.msk.f32.gmra.mxu0 %vm321_vm1, %v4373_v6  ;;  %v4180_v51 = vadd.f32 %v4146_v22, %v4035_v54  ;;  %v4780_v22 = vld [vmem:[#allocation2 + $0x1ea] sm:$0xff] }
 0x3d3   : > { %4356 = vst [vmem:[%s6948_s23 + $0x130] sm:$0xff] %v4340_v28  ;;  %6279 = vmatmul.msk.f32.gmra.mxu2 %vm321_vm1, %v4776_v53 }
 0x3d4   : > { %6296 = vmatmul.msk.f32.gmra.mxu3 %vm321_vm1, %v4921_v7 }
 0x3d6   : > { %v4291_v45 = vpop.f32.mrf.mxu2  ;;  %v4149_v46 = vpop.f32.mrf.mxu1 }
 0x3d7   : > { %v4325_v16 = vadd.f32 %v4291_v45, %v4180_v51  ;;  %v4004_v13 = vpop.f32.mrf.mxu0  ;;  %v7775_v35 = vpop.f32.mrf.mxu3 }
 0x3d8   : > { %v4036_v14 = vadd.f32 %v4004_v13, %v7630_v48  ;;  %v4375_v48 = vld [vmem:[#allocation2 + $0x1c8] sm:$0xff] }
 0x3d9   : > { %v4341_v49 = vadd.f32 %v7711_v44, %v4325_v16  ;;  %6263 = vmatmul.msk.f32.gmra.mxu1 %vm321_vm1, %v4775_v52  ;;  %v388_v52 = vld [vmem:[%s7649_s13 + $0x10] sm:$0xff] }
 0x3da   : > { %6246 = vmatmul.msk.f32.gmra.mxu0 %vm321_vm1, %v4374_v50  ;;  %v4181_v12 = vadd.f32 %v4149_v46, %v4036_v14  ;;  %396 = vst.msk [vmem:[#allocation2 + $0x210] sm:$0xff] %vm321_vm1, %v388_v52  ;;  %v4378_v46 = vld [vmem:[#allocation2 + $0x1e0] sm:$0xff] }
 0x3db   : > { %4357 = vst [vmem:[%s6948_s23 + $0x138] sm:$0xff] %v4341_v49  ;;  %6280 = vmatmul.msk.f32.gmra.mxu2 %vm321_vm1, %v4777_v29 }
 0x3dc   : > { %6297 = vmatmul.msk.f32.gmra.mxu3 %vm321_vm1, %v4922_v37 }
 0x3de   : > { %v4294_v17 = vpop.f32.mrf.mxu2  ;;  %v4152_v1 = vpop.f32.mrf.mxu1 }
 0x3df   : > { %v4326_v55 = vadd.f32 %v4294_v17, %v4181_v12  ;;  %v4007_v5 = vpop.f32.mrf.mxu0  ;;  %v7784_v11 = vpop.f32.mrf.mxu3 }
 0x3e0   : > { %v4037_v36 = vadd.f32 %v4007_v5, %v7640_v10 }
 0x3e1   : > { %v4342_v42 = vadd.f32 %v7711_v44, %v4326_v55  ;;  %6264 = vmatmul.msk.f32.gmra.mxu1 %vm321_vm1, %v4776_v53  ;;  %v4925_v53 = vld [vmem:[#allocation2 + $0x1eb] sm:$0xff] }
 0x3e2   : > { %6247 = vmatmul.msk.f32.gmra.mxu0 %vm321_vm1, %v4375_v48  ;;  %v4182_v30 = vadd.f32 %v4152_v1, %v4037_v36  ;;  %v4379_v1 = vld [vmem:[#allocation2 + $0x1e8] sm:$0xff] }
 0x3e3   : > { %4358 = vst [vmem:[%s6948_s23 + $0x140] sm:$0xff] %v4342_v42  ;;  %6281 = vmatmul.msk.f32.gmra.mxu2 %vm321_vm1, %v4778_v59 }
 0x3e4   : > { %6298 = vmatmul.msk.f32.gmra.mxu3 %vm321_vm1, %v4923_v26 }
 0x3e6   : > { %v4297_v60 = vpop.f32.mrf.mxu2  ;;  %v4155_v15 = vpop.f32.mrf.mxu1 }
 0x3e7   : > { %v4327_v47 = vadd.f32 %v4297_v60, %v4182_v30  ;;  %v4010_v10 = vpop.f32.mrf.mxu0  ;;  %v7795_v20 = vpop.f32.mrf.mxu3 }
 0x3e8   : > { %v4038_v24 = vadd.f32 %v4010_v10, %v7655_v41 }
 0x3e9   : > { %v4343_v3 = vadd.f32 %v7711_v44, %v4327_v47  ;;  %6265 = vmatmul.msk.f32.gmra.mxu1 %vm321_vm1, %v4777_v29  ;;  %v4926_v29 = vld [vmem:[#allocation2 + $0x1f3] sm:$0xff] }
 0x3ea   : > { %6248 = vmatmul.msk.f32.gmra.mxu0 %vm321_vm1, %v4376_v43  ;;  %v4183_v4 = vadd.f32 %v4155_v15, %v4038_v24  ;;  %v4380_v47 = vld [vmem:[#allocation2 + $0x1f0] sm:$0xff]  ;;  %v4928_v43 = vld [vmem:[#allocation2 + $0x203] sm:$0xff] }
 0x3eb   : > { %4359 = vst [vmem:[%s6948_s23 + $0x148] sm:$0xff] %v4343_v3  ;;  %6282 = vmatmul.msk.f32.gmra.mxu2 %vm321_vm1, %v4779_v9 }
 0x3ec   : > { %6299 = vmatmul.msk.f32.gmra.mxu3 %vm321_vm1, %v4924_v32 }
 0x3ee   : > { %v4300_v33 = vpop.f32.mrf.mxu2  ;;  %v4158_v19 = vpop.f32.mrf.mxu1 }
 0x3ef   : > { %v4328_v56 = vadd.f32 %v4300_v33, %v4183_v4  ;;  %v4013_v0 = vpop.f32.mrf.mxu0  ;;  %v7806_v41 = vpop.f32.mrf.mxu3  ;;  %v4381_v33 = vld [vmem:[#allocation2 + $0x1f8] sm:$0xff] }
 0x3f0   : > { %v4039_v6 = vadd.f32 %v4013_v0, %v7663_v21  ;;  %v4781_v21 = vld [vmem:[#allocation2 + $0x1f2] sm:$0xff] }
 0x3f1   : > { %v4344_v57 = vadd.f32 %v7711_v44, %v4328_v56  ;;  %6266 = vmatmul.msk.f32.gmra.mxu1 %vm321_vm1, %v4778_v59  ;;  %v4927_v59 = vld [vmem:[#allocation2 + $0x1fb] sm:$0xff]  ;;  %v4929_v0 = vld [vmem:[#allocation2 + $0x20b] sm:$0xff] }
 0x3f2   : > { %6249 = vmatmul.msk.f32.gmra.mxu0 %vm321_vm1, %v4377_v38  ;;  %v4184_v28 = vadd.f32 %v4158_v19, %v4039_v6 }
 0x3f3   : > { %4360 = vst [vmem:[%s6948_s23 + $0x150] sm:$0xff] %v4344_v57  ;;  %6283 = vmatmul.msk.f32.gmra.mxu2 %vm321_vm1, %v4780_v22 }
 0x3f4   : > { %6300 = vmatmul.msk.f32.gmra.mxu3 %vm321_vm1, %v4925_v53  ;;  %v5204_v53 = vld [vmem:[#allocation2 + $0x1a4] sm:$0xff] }
 0x3f6   : > { %v4303_v54 = vpop.f32.mrf.mxu2  ;;  %v4161_v51 = vpop.f32.mrf.mxu1 }
 0x3f7   : > { %v4329_v7 = vadd.f32 %v4303_v54, %v4184_v28  ;;  %v4016_v45 = vpop.f32.mrf.mxu0  ;;  %v7815_v16 = vpop.f32.mrf.mxu3 }
 0x3f8   : > { %v4040_v50 = vadd.f32 %v4016_v45, %v7671_v2  ;;  %v4782_v2 = vld [vmem:[#allocation2 + $0x1fa] sm:$0xff]  ;;  %v5494_v45 = vld [vmem:[#allocation2 + $0x1a6] sm:$0xff] }
 0x3f9   : > { %v4345_v13 = vadd.f32 %v7711_v44, %v4329_v7  ;;  %6267 = vmatmul.msk.f32.gmra.mxu1 %vm321_vm1, %v4779_v9 }
 0x3fa   : > { %6250 = vmatmul.msk.f32.gmra.mxu0 %vm321_vm1, %v4378_v46  ;;  %v4185_v49 = vadd.f32 %v4161_v51, %v4040_v50 }
 0x3fb   : > { %4361 = vst [vmem:[%s6948_s23 + $0x158] sm:$0xff] %v4345_v13  ;;  %6284 = vmatmul.msk.f32.gmra.mxu2 %vm321_vm1, %v4781_v21 }
 0x3fc   : > { %6301 = vmatmul.msk.f32.gmra.mxu3 %vm321_vm1, %v4926_v29  ;;  %v5205_v29 = vld [vmem:[#allocation2 + $0x1ac] sm:$0xff] }
 0x3fe   : > { %v4306_v14 = vpop.f32.mrf.mxu2  ;;  %v4164_v12 = vpop.f32.mrf.mxu1 }
 0x3ff   : > { %v4330_v37 = vadd.f32 %v4306_v14, %v4185_v49  ;;  %v4019_v17 = vpop.f32.mrf.mxu0  ;;  %v7824_v55 = vpop.f32.mrf.mxu3 }
 0x400   : > { %v4041_v48 = vadd.f32 %v4019_v17, %v7681_v58  ;;  %v4783_v58 = vld [vmem:[#allocation2 + $0x202] sm:$0xff]  ;;  %v5495_v17 = vld [vmem:[#allocation2 + $0x1ae] sm:$0xff] }
 0x401   : > { %v4346_v5 = vadd.f32 %v7711_v44, %v4330_v37  ;;  %6268 = vmatmul.msk.f32.gmra.mxu1 %vm321_vm1, %v4780_v22  ;;  %v5350_v37 = vld [vmem:[#allocation2 + $0x1ad] sm:$0xff] }
 0x402   : > { %6251 = vmatmul.msk.f32.gmra.mxu0 %vm321_vm1, %v4379_v1  ;;  %v4186_v42 = vadd.f32 %v4164_v12, %v4041_v48  ;;  %v5206_v48 = vld [vmem:[#allocation2 + $0x1b4] sm:$0xff] }
 0x403   : > { %4362 = vst [vmem:[%s6948_s23 + $0x160] sm:$0xff] %v4346_v5  ;;  %6285 = vmatmul.msk.f32.gmra.mxu2 %vm321_vm1, %v4782_v2 }
 0x404   : > { %6302 = vmatmul.msk.f32.gmra.mxu3 %vm321_vm1, %v4927_v59 }
 0x406   : > { %v4309_v36 = vpop.f32.mrf.mxu2  ;;  %v4167_v34 = vpop.f32.mrf.mxu1 }
 0x407   : > { %v4331_v26 = vadd.f32 %v4309_v36, %v4186_v42  ;;  %v4022_v30 = vpop.f32.mrf.mxu0  ;;  %v7833_v60 = vpop.f32.mrf.mxu3 }
 0x408   : > { %v4042_v10 = vadd.f32 %v4022_v30, %v7691_v31  ;;  %v4784_v31 = vld [vmem:[#allocation2 + $0x20a] sm:$0xff] }
 0x409   : > { %v4347_v15 = vadd.f32 %v7711_v44, %v4331_v26  ;;  %6269 = vmatmul.msk.f32.gmra.mxu1 %vm321_vm1, %v4781_v21 }
 0x40a   : > { %6252 = vmatmul.msk.f32.gmra.mxu0 %vm321_vm1, %v4380_v47  ;;  %v4187_v9 = vadd.f32 %v4167_v34, %v4042_v10  ;;  %v5496_v34 = vld [vmem:[#allocation2 + $0x1b6] sm:$0xff] }
 0x40b   : > { %4363 = vst [vmem:[%s6948_s23 + $0x168] sm:$0xff] %v4347_v15  ;;  %6286 = vmatmul.msk.f32.gmra.mxu2 %vm321_vm1, %v4783_v58  ;;  %v5207_v15 = vld [vmem:[#allocation2 + $0x1bc] sm:$0xff] }
 0x40c   : > { %6303 = vmatmul.msk.f32.gmra.mxu3 %vm321_vm1, %v4928_v43 }
 0x40e   : > { %v4312_v3 = vpop.f32.mrf.mxu2  ;;  %v4170_v32 = vpop.f32.mrf.mxu1 }
 0x40f   : > { %v4332_v24 = vadd.f32 %v4312_v3, %v4187_v9  ;;  %v4025_v52 = vpop.f32.mrf.mxu0  ;;  %v7842_v4 = vpop.f32.mrf.mxu3  ;;  %v5352_v9 = vld [vmem:[#allocation2 + $0x1bd] sm:$0xff] }
 0x410   : > { %v4043_v19 = vadd.f32 %v4025_v52, %v7698_v62  ;;  %v5349_v62 = vld [vmem:[#allocation2 + $0x1a5] sm:$0xff] }
 0x411   : > { %v4348_v56 = vadd.f32 %v7711_v44, %v4332_v24  ;;  %6270 = vmatmul.msk.f32.gmra.mxu1 %vm321_vm1, %v4782_v2  ;;  %v5497_v24 = vld [vmem:[#allocation2 + $0x1be] sm:$0xff] }
 0x412   : > { %6253 = vmatmul.msk.f32.gmra.mxu0 %vm321_vm1, %v4381_v33  ;;  %v4188_v38 = vadd.f32 %v4170_v32, %v4043_v19 }
 0x413   : > { %4364 = vst [vmem:[%s6948_s23 + $0x170] sm:$0xff] %v4348_v56  ;;  %6287 = vmatmul.msk.f32.gmra.mxu2 %vm321_vm1, %v4784_v31  ;;  %v5208_v56 = vld [vmem:[#allocation2 + $0x1c4] sm:$0xff] }
 0x414   : > { %6304 = vmatmul.msk.f32.gmra.mxu3 %vm321_vm1, %v4929_v0 }
 0x416   : > { %v4315_v22 = vpop.f32.mrf.mxu2  ;;  %v4705_v6 = vpop.f32.mrf.mxu1 }
 0x417   : > { %v4333_v57 = vadd.f32 %v4315_v22, %v4188_v38  ;;  %v7851_v28 = vpop.f32.mrf.mxu3  ;;  %v4576_v54 = vpop.f32.mrf.mxu0  ;;  %v5353_v38 = vld [vmem:[#allocation2 + $0x1c5] sm:$0xff] }
 0x418   : > { %v4577_v51 = vadd.f32 %v4576_v54, %v7706_v61 }
 0x419   : > { %v4349_v7 = vadd.f32 %v7711_v44, %v4333_v57  ;;  %6323 = vmatmul.msk.f32.vlgmr.msra.gmra.mxu1 %vm321_vm1, %v5204_v53  ;;  %v5498_v57 = vld [vmem:[#allocation2 + $0x1c6] sm:$0xff] }
 0x41a   : > { %6306 = vmatmul.msk.f32.vlgmr.msra.gmra.mxu0 %vm321_vm1, %v7678_v39  ;;  %v4753_v46 = vadd.f32 %v4705_v6, %v4577_v51 }
 0x41b   : > { %4365 = vst [vmem:[%s6948_s23 + $0x178] sm:$0xff] %v4349_v7  ;;  %6340 = vmatmul.msk.f32.vlgmr.msra.gmra.mxu2 %vm321_vm1, %v5349_v62  ;;  %v5209_v7 = vld [vmem:[#allocation2 + $0x1cc] sm:$0xff] }
 0x41c   : > { %6357 = vmatmul.msk.f32.vlgmr.msra.gmra.mxu3 %vm321_vm1, %v5494_v45 }
 0x41e   : > { %v4850_v21 = vpop.f32.mrf.mxu2  ;;  %v4708_v50 = vpop.f32.mrf.mxu1 }
 0x41f   : > { %v4898_v13 = vadd.f32 %v4850_v21, %v4753_v46  ;;  %v4579_v49 = vpop.f32.mrf.mxu0  ;;  %v4995_v14 = vpop.f32.mrf.mxu3  ;;  %v5354_v46 = vld [vmem:[#allocation2 + $0x1cd] sm:$0xff] }
 0x420   : > { %v4580_v61 = vadd.f32 %v4579_v49, %v7721_v25  ;;  %v5351_v25 = vld [vmem:[#allocation2 + $0x1b5] sm:$0xff] }
 0x421   : > { %v7862_v12 = vadd.f32 %v4995_v14, %v4898_v13  ;;  %6324 = vmatmul.msk.f32.gmra.mxu1 %vm321_vm1, %v5205_v29  ;;  %v5499_v13 = vld [vmem:[#allocation2 + $0x1ce] sm:$0xff] }
 0x422   : > { %6307 = vmatmul.msk.f32.gmra.mxu0 %vm321_vm1, %v7688_v40  ;;  %v4754_v39 = vadd.f32 %v4708_v50, %v4580_v61 }
 0x423   : > { %6341 = vmatmul.msk.f32.gmra.mxu2 %vm321_vm1, %v5350_v37  ;;  %v5210_v37 = vld [vmem:[#allocation2 + $0x1d4] sm:$0xff] }
 0x424   : > { %6358 = vmatmul.msk.f32.gmra.mxu3 %vm321_vm1, %v5495_v17 }
 0x426   : > { %v4853_v1 = vpop.f32.mrf.mxu2  ;;  %v4711_v5 = vpop.f32.mrf.mxu1 }
 0x427   : > { %v4899_v2 = vadd.f32 %v4853_v1, %v4754_v39  ;;  %v4582_v59 = vpop.f32.mrf.mxu0  ;;  %v4998_v42 = vpop.f32.mrf.mxu3  ;;  %v5355_v39 = vld [vmem:[#allocation2 + $0x1d5] sm:$0xff] }
 0x428   : > { %v4583_v36 = vadd.f32 %v4582_v59, %v7730_v63 }
 0x429   : > { %v7870_v26 = vadd.f32 %v4998_v42, %v4899_v2  ;;  %6325 = vmatmul.msk.f32.gmra.mxu1 %vm321_vm1, %v5206_v48  ;;  %v5500_v2 = vld [vmem:[#allocation2 + $0x1d6] sm:$0xff] }
 0x42a   : > { %6308 = vmatmul.msk.f32.gmra.mxu0 %vm321_vm1, %v5204_v53  ;;  %v4755_v40 = vadd.f32 %v4711_v5, %v4583_v36 }
 0x42b   : > { %6342 = vmatmul.msk.f32.gmra.mxu2 %vm321_vm1, %v5351_v25  ;;  %v5211_v25 = vld [vmem:[#allocation2 + $0x1dc] sm:$0xff] }
 0x42c   : > { %6359 = vmatmul.msk.f32.gmra.mxu3 %vm321_vm1, %v5496_v34 }
 0x42e   : > { %v4856_v30 = vpop.f32.mrf.mxu2  ;;  %v4714_v58 = vpop.f32.mrf.mxu1 }
 0x42f   : > { %v4900_v47 = vadd.f32 %v4856_v30, %v4755_v40  ;;  %v4585_v10 = vpop.f32.mrf.mxu0  ;;  %v5001_v43 = vpop.f32.mrf.mxu3  ;;  %v5356_v40 = vld [vmem:[#allocation2 + $0x1dd] sm:$0xff] }
 0x430   : > { %v4586_v63 = vadd.f32 %v4585_v10, %v7739_v27 }
 0x431   : > { %v7877_v3 = vadd.f32 %v5001_v43, %v4900_v47  ;;  %6326 = vmatmul.msk.f32.gmra.mxu1 %vm321_vm1, %v5207_v15  ;;  %v5501_v47 = vld [vmem:[#allocation2 + $0x1de] sm:$0xff] }
 0x432   : > { %6309 = vmatmul.msk.f32.gmra.mxu0 %vm321_vm1, %v5205_v29  ;;  %v4756_v32 = vadd.f32 %v4714_v58, %v4586_v63 }
 0x433   : > { %6343 = vmatmul.msk.f32.gmra.mxu2 %vm321_vm1, %v5352_v9  ;;  %v5212_v9 = vld [vmem:[#allocation2 + $0x1e4] sm:$0xff] }
 0x434   : > { %6360 = vmatmul.msk.f32.gmra.mxu3 %vm321_vm1, %v5497_v24 }
 0x436   : > { %v4859_v52 = vpop.f32.mrf.mxu2  ;;  %v4717_v31 = vpop.f32.mrf.mxu1 }
 0x437   : > { %v4901_v33 = vadd.f32 %v4859_v52, %v4756_v32  ;;  %v4588_v19 = vpop.f32.mrf.mxu0  ;;  %v5004_v0 = vpop.f32.mrf.mxu3  ;;  %v5357_v32 = vld [vmem:[#allocation2 + $0x1e5] sm:$0xff] }
 0x438   : > { %v4589_v27 = vadd.f32 %v4588_v19, %v7748_v8 }
 0x439   : > { %v7884_v22 = vadd.f32 %v5004_v0, %v4901_v33  ;;  %6327 = vmatmul.msk.f32.gmra.mxu1 %vm321_vm1, %v5208_v56  ;;  %v5502_v33 = vld [vmem:[#allocation2 + $0x1e6] sm:$0xff] }
 0x43a   : > { %6310 = vmatmul.msk.f32.gmra.mxu0 %vm321_vm1, %v5206_v48  ;;  %v4757_v6 = vadd.f32 %v4717_v31, %v4589_v27 }
 0x43b   : > { %6344 = vmatmul.msk.f32.gmra.mxu2 %vm321_vm1, %v5353_v38  ;;  %v5213_v38 = vld [vmem:[#allocation2 + $0x1ec] sm:$0xff] }
 0x43c   : > { %6361 = vmatmul.msk.f32.gmra.mxu3 %vm321_vm1, %v5498_v57 }
 0x43e   : > { %v4862_v53 = vpop.f32.mrf.mxu2  ;;  %v4720_v62 = vpop.f32.mrf.mxu1 }
 0x43f   : > { %v4902_v54 = vadd.f32 %v4862_v53, %v4757_v6  ;;  %v4591_v51 = vpop.f32.mrf.mxu0  ;;  %v5007_v45 = vpop.f32.mrf.mxu3 }
 0x440   : > { %v4592_v8 = vadd.f32 %v4591_v51, %v7757_v18 }
 0x441   : > { %v7891_v21 = vadd.f32 %v5007_v45, %v4902_v54  ;;  %6328 = vmatmul.msk.f32.gmra.mxu1 %vm321_vm1, %v5209_v7  ;;  %v5503_v54 = vld [vmem:[#allocation2 + $0x1ee] sm:$0xff] }
 0x442   : > { %6311 = vmatmul.msk.f32.gmra.mxu0 %vm321_vm1, %v5207_v15  ;;  %v4758_v50 = vadd.f32 %v4720_v62, %v4592_v8 }
 0x443   : > { %6345 = vmatmul.msk.f32.gmra.mxu2 %vm321_vm1, %v5354_v46 }
 0x444   : > { %6362 = vmatmul.msk.f32.gmra.mxu3 %vm321_vm1, %v5499_v13 }
 0x446   : > { %v4865_v29 = vpop.f32.mrf.mxu2  ;;  %v4723_v14 = vpop.f32.mrf.mxu1 }
 0x447   : > { %v4903_v49 = vadd.f32 %v4865_v29, %v4758_v50  ;;  %v4594_v61 = vpop.f32.mrf.mxu0  ;;  %v5010_v17 = vpop.f32.mrf.mxu3  ;;  %v5359_v50 = vld [vmem:[#allocation2 + $0x1f5] sm:$0xff] }
 0x448   : > { %v4595_v18 = vadd.f32 %v4594_v61, %v7766_v23  ;;  %v390_v61 = vld [vmem:[%s7649_s13 + $0x20] sm:$0xff] }
 0x449   : > { %v7898_v1 = vadd.f32 %v5010_v17, %v4903_v49  ;;  %6329 = vmatmul.msk.f32.gmra.mxu1 %vm321_vm1, %v5210_v37  ;;  %398 = vst.msk [vmem:[#allocation2 + $0x220] sm:$0xff] %vm321_vm1, %v390_v61 }
 0x44a   : > { %6312 = vmatmul.msk.f32.gmra.mxu0 %vm321_vm1, %v5208_v56  ;;  %v4759_v5 = vadd.f32 %v4723_v14, %v4595_v18  ;;  %v5504_v14 = vld [vmem:[#allocation2 + $0x1f6] sm:$0xff] }
 0x44b   : > { %6346 = vmatmul.msk.f32.gmra.mxu2 %vm321_vm1, %v5355_v39 }
 0x44c   : > { %6363 = vmatmul.msk.f32.gmra.mxu3 %vm321_vm1, %v5500_v2  ;;  %v5215_v2 = vld [vmem:[#allocation2 + $0x1fc] sm:$0xff] }
 0x44e   : > { %v4868_v48 = vpop.f32.mrf.mxu2  ;;  %v4726_v42 = vpop.f32.mrf.mxu1 }
 0x44f   : > { %v4904_v59 = vadd.f32 %v4868_v48, %v4759_v5  ;;  %v4597_v36 = vpop.f32.mrf.mxu0  ;;  %v5013_v34 = vpop.f32.mrf.mxu3  ;;  %v5360_v48 = vld [vmem:[#allocation2 + $0x1fd] sm:$0xff] }
 0x450   : > { %v4598_v23 = vadd.f32 %v4597_v36, %v7775_v35 }
 0x451   : > { %v7905_v30 = vadd.f32 %v5013_v34, %v4904_v59  ;;  %6330 = vmatmul.msk.f32.gmra.mxu1 %vm321_vm1, %v5211_v25 }
 0x452   : > { %6313 = vmatmul.msk.f32.gmra.mxu0 %vm321_vm1, %v5209_v7  ;;  %v4760_v58 = vadd.f32 %v4726_v42, %v4598_v23  ;;  %v389_v7 = vld [vmem:[%s7649_s13 + $0x18] sm:$0xff] }
 0x453   : > { %6347 = vmatmul.msk.f32.gmra.mxu2 %vm321_vm1, %v5356_v40  ;;  %397 = vst.msk [vmem:[#allocation2 + $0x218] sm:$0xff] %vm321_vm1, %v389_v7 }
 0x454   : > { %6364 = vmatmul.msk.f32.gmra.mxu3 %vm321_vm1, %v5501_v47  ;;  %v5216_v47 = vld [vmem:[#allocation2 + $0x204] sm:$0xff] }
 0x456   : > { %v4871_v15 = vpop.f32.mrf.mxu2  ;;  %v4729_v43 = vpop.f32.mrf.mxu1 }
 0x457   : > { %v4905_v10 = vadd.f32 %v4871_v15, %v4760_v58  ;;  %v4600_v63 = vpop.f32.mrf.mxu0  ;;  %v5016_v24 = vpop.f32.mrf.mxu3 }
 0x458   : > { %v4601_v35 = vadd.f32 %v4600_v63, %v7784_v11  ;;  %v5358_v11 = vld [vmem:[#allocation2 + $0x1ed] sm:$0xff] }
 0x459   : > { %v7912_v52 = vadd.f32 %v5016_v24, %v4905_v10  ;;  %6331 = vmatmul.msk.f32.gmra.mxu1 %vm321_vm1, %v5212_v9  ;;  %v5361_v10 = vld [vmem:[#allocation2 + $0x205] sm:$0xff] }
 0x45a   : > { %v4761_v31 = vadd.f32 %v4729_v43, %v4601_v35  ;;  %6314 = vmatmul.msk.f32.gmra.mxu0 %vm321_vm1, %v5210_v37  ;;  %v5364_v61 = vld [vmem:[#allocation2 + $0x21d] sm:$0xff] }
 0x45b   : > { %6348 = vmatmul.msk.f32.gmra.mxu2 %vm321_vm1, %v5357_v32 }
 0x45c   : > { %6365 = vmatmul.msk.f32.gmra.mxu3 %vm321_vm1, %v5502_v33  ;;  %v5217_v33 = vld [vmem:[#allocation2 + $0x20c] sm:$0xff] }
 0x45e   : > { %v4874_v56 = vpop.f32.mrf.mxu2  ;;  %v4732_v0 = vpop.f32.mrf.mxu1 }
 0x45f   : > { %v4906_v19 = vadd.f32 %v4874_v56, %v4761_v31  ;;  %v4603_v27 = vpop.f32.mrf.mxu0  ;;  %v5019_v57 = vpop.f32.mrf.mxu3 }
 0x460   : > { %v4604_v6 = vadd.f32 %v4603_v27, %v7795_v20  ;;  %v5214_v20 = vld [vmem:[#allocation2 + $0x1f4] sm:$0xff] }
 0x461   : > { %v7919_v53 = vadd.f32 %v5019_v57, %v4906_v19  ;;  %6332 = vmatmul.msk.f32.gmra.mxu1 %vm321_vm1, %v5213_v38  ;;  %v5362_v19 = vld [vmem:[#allocation2 + $0x20d] sm:$0xff] }
 0x462   : > { %v4762_v62 = vadd.f32 %v4732_v0, %v4604_v6  ;;  %6315 = vmatmul.msk.f32.gmra.mxu0 %vm321_vm1, %v5211_v25  ;;  %v5505_v25 = vld [vmem:[#allocation2 + $0x1fe] sm:$0xff] }
 0x463   : > { %6349 = vmatmul.msk.f32.gmra.mxu2 %vm321_vm1, %v5358_v11 }
 0x464   : > { %6366 = vmatmul.msk.f32.gmra.mxu3 %vm321_vm1, %v5503_v54  ;;  %v5218_v54 = vld [vmem:[#allocation2 + $0x214] sm:$0xff] }
 0x466   : > { %v4877_v51 = vpop.f32.mrf.mxu2  ;;  %v4735_v46 = vpop.f32.mrf.mxu1 }
 0x467   : > { %v4907_v45 = vadd.f32 %v4877_v51, %v4762_v62  ;;  %v4606_v8 = vpop.f32.mrf.mxu0  ;;  %v5022_v13 = vpop.f32.mrf.mxu3  ;;  %v5363_v51 = vld [vmem:[#allocation2 + $0x215] sm:$0xff] }
 0x468   : > { %v4607_v29 = vadd.f32 %v4606_v8, %v7806_v41 }
 0x469   : > { %v7928_v49 = vadd.f32 %v5022_v13, %v4907_v45  ;;  %6333 = vmatmul.msk.f32.gmra.mxu1 %vm321_vm1, %v5214_v20 }
 0x46a   : > { %v4763_v37 = vadd.f32 %v4735_v46, %v4607_v29  ;;  %6316 = vmatmul.msk.f32.gmra.mxu0 %vm321_vm1, %v5212_v9  ;;  %v5506_v9 = vld [vmem:[#allocation2 + $0x206] sm:$0xff]  ;;  %v5508_v46 = vld [vmem:[#allocation2 + $0x216] sm:$0xff] }
 0x46b   : > { %6350 = vmatmul.msk.f32.gmra.mxu2 %vm321_vm1, %v5359_v50  ;;  %v5219_v29 = vld [vmem:[#allocation2 + $0x21c] sm:$0xff] }
 0x46c   : > { %6367 = vmatmul.msk.f32.gmra.mxu3 %vm321_vm1, %v5504_v14 }
 0x46e   : > { %v4880_v17 = vpop.f32.mrf.mxu2  ;;  %v4738_v18 = vpop.f32.mrf.mxu1 }
 0x46f   : > { %v4908_v39 = vadd.f32 %v4880_v17, %v4763_v37  ;;  %v4609_v41 = vpop.f32.mrf.mxu0  ;;  %v5025_v5 = vpop.f32.mrf.mxu3 }
 0x470   : > { %v4610_v59 = vadd.f32 %v4609_v41, %v7815_v16 }
 0x471   : > { %v7937_v42 = vadd.f32 %v5025_v5, %v4908_v39  ;;  %6334 = vmatmul.msk.f32.gmra.mxu1 %vm321_vm1, %v5215_v2  ;;  %v5509_v39 = vld [vmem:[#allocation2 + $0x21e] sm:$0xff] }
 0x472   : > { %v4764_v36 = vadd.f32 %v4738_v18, %v4610_v59  ;;  %6317 = vmatmul.msk.f32.gmra.mxu0 %vm321_vm1, %v5213_v38  ;;  %v5507_v38 = vld [vmem:[#allocation2 + $0x20e] sm:$0xff] }
 0x473   : > { %6351 = vmatmul.msk.f32.gmra.mxu2 %vm321_vm1, %v5360_v48 }
 0x474   : > { %6368 = vmatmul.msk.f32.gmra.mxu3 %vm321_vm1, %v5505_v25 }
 0x476   : > { %v4883_v34 = vpop.f32.mrf.mxu2  ;;  %v4741_v23 = vpop.f32.mrf.mxu1 }
 0x477   : > { %v4909_v40 = vadd.f32 %v4883_v34, %v4764_v36  ;;  %v4612_v58 = vpop.f32.mrf.mxu0  ;;  %v5028_v15 = vpop.f32.mrf.mxu3 }
 0x478   : > { %v4613_v16 = vadd.f32 %v4612_v58, %v7824_v55 }
 0x479   : > { %v7944_v43 = vadd.f32 %v5028_v15, %v4909_v40  ;;  %6335 = vmatmul.msk.f32.gmra.mxu1 %vm321_vm1, %v5216_v47 }
 0x47a   : > { %v4765_v63 = vadd.f32 %v4741_v23, %v4613_v16  ;;  %6318 = vmatmul.msk.f32.gmra.mxu0 %vm321_vm1, %v5214_v20 }
 0x47b   : > { %6352 = vmatmul.msk.f32.gmra.mxu2 %vm321_vm1, %v5361_v10 }
 0x47c   : > { %6369 = vmatmul.msk.f32.gmra.mxu3 %vm321_vm1, %v5506_v9 }
 0x47e   : > { %v4886_v24 = vpop.f32.mrf.mxu2  ;;  %v4744_v35 = vpop.f32.mrf.mxu1 }
 0x47f   : > { %v4910_v32 = vadd.f32 %v4886_v24, %v4765_v63  ;;  %v4615_v31 = vpop.f32.mrf.mxu0  ;;  %v5031_v56 = vpop.f32.mrf.mxu3 }
 0x480   : > { %v4616_v55 = vadd.f32 %v4615_v31, %v7833_v60 }
 0x481   : > { %v7951_v0 = vadd.f32 %v5031_v56, %v4910_v32  ;;  %6336 = vmatmul.msk.f32.gmra.mxu1 %vm321_vm1, %v5217_v33 }
 0x482   : > { %v4766_v27 = vadd.f32 %v4744_v35, %v4616_v55  ;;  %6319 = vmatmul.msk.f32.gmra.mxu0 %vm321_vm1, %v5215_v2 }
 0x483   : > { %6353 = vmatmul.msk.f32.gmra.mxu2 %vm321_vm1, %v5362_v19 }
 0x484   : > { %6370 = vmatmul.msk.f32.gmra.mxu3 %vm321_vm1, %v5507_v38 }
 0x486   : > { %v4889_v57 = vpop.f32.mrf.mxu2  ;;  %v4747_v6 = vpop.f32.mrf.mxu1 }
 0x487   : > { %v4911_v11 = vadd.f32 %v4889_v57, %v4766_v27  ;;  %v4618_v62 = vpop.f32.mrf.mxu0  ;;  %v5034_v7 = vpop.f32.mrf.mxu3 }
 0x488   : > { %v4619_v60 = vadd.f32 %v4618_v62, %v7842_v4 }
 0x489   : > { %v7958_v45 = vadd.f32 %v5034_v7, %v4911_v11  ;;  %6337 = vmatmul.msk.f32.gmra.mxu1 %vm321_vm1, %v5218_v54  ;;  %v7984_v54 = vld [vmem:[%s8032_s3] ss:$0 sm:$0xff] }
 0x48a   : > { %v4767_v20 = vadd.f32 %v4747_v6, %v4619_v60  ;;  %6320 = vmatmul.msk.f32.gmra.mxu0 %vm321_vm1, %v5216_v47 }
 0x48b   : > { %6354 = vmatmul.msk.f32.gmra.mxu2 %vm321_vm1, %v5363_v51 }
 0x48c   : > { %6371 = vmatmul.msk.f32.gmra.mxu3 %vm321_vm1, %v5508_v46 }
 0x48e   : > { %v4892_v8 = vpop.f32.mrf.mxu2  ;;  %v4750_v50 = vpop.f32.mrf.mxu1 }
 0x48f   : > { %v4912_v13 = vadd.f32 %v4892_v8, %v4767_v20  ;;  %v4621_v14 = vpop.f32.mrf.mxu0  ;;  %v5037_v37 = vpop.f32.mrf.mxu3 }
 0x490   : > { %v4622_v4 = vadd.f32 %v4621_v14, %v7851_v28 }
 0x491   : > { %v7965_v17 = vadd.f32 %v5037_v37, %v4912_v13  ;;  %6338 = vmatmul.msk.f32.gmra.mxu1 %vm321_vm1, %v5219_v29 }
 0x492   : > { %v4768_v18 = vadd.f32 %v4750_v50, %v4622_v4  ;;  %6321 = vmatmul.msk.f32.gmra.mxu0 %vm321_vm1, %v5217_v33 }
 0x493   : > { %6355 = vmatmul.msk.f32.gmra.mxu2 %vm321_vm1, %v5364_v61 }
 0x494   : > { %6372 = vmatmul.msk.f32.gmra.mxu3 %vm321_vm1, %v5509_v39 }
 0x496   : > { %v4895_v2 = vpop.f32.mrf.mxu2  ;;  %v5285_v5 = vpop.f32.mrf.mxu1 }
 0x497   : > { %v4913_v41 = vadd.f32 %v4895_v2, %v4768_v18  ;;  %v5040_v48 = vpop.f32.mrf.mxu3  ;;  %v5140_v59 = vpop.f32.mrf.mxu0 }
 0x498   : > { %v5188_v28 = vadd.f32 %v5140_v59, %v7862_v12 }
 0x499   : > { %v7971_v25 = vadd.f32 %v5040_v48, %v4913_v41 }
 0x49a   : > { %v5333_v36 = vadd.f32 %v5285_v5, %v5188_v28 }
 0x49e   : > { %v5430_v34 = vpop.f32.mrf.mxu2  ;;  %v5288_v23 = vpop.f32.mrf.mxu1 }
 0x49f   : > { %v5478_v40 = vadd.f32 %v5430_v34, %v5333_v36  ;;  %v5143_v47 = vpop.f32.mrf.mxu0  ;;  %v5575_v58 = vpop.f32.mrf.mxu3 }
 0x4a0   : > { %v5189_v15 = vadd.f32 %v5143_v47, %v7870_v26 }
 0x4a1   : > { %v5623_v10 = vadd.f32 %v5575_v58, %v5478_v40 }
 0x4a2   : > { %v5334_v9 = vadd.f32 %v5288_v23, %v5189_v15 }
 0x4a3   : > { %v5639_v16 = vadd.f32 %v7711_v44, %v5623_v10 }
 0x4a5   : > { %5655 = vst [vmem:[%s6948_s23 + $0x180] sm:$0xff] %v5639_v16 }
 0x4a6   : > { %v5433_v63 = vpop.f32.mrf.mxu2  ;;  %v5291_v32 = vpop.f32.mrf.mxu1 }
 0x4a7   : > { %v5479_v24 = vadd.f32 %v5433_v63, %v5334_v9  ;;  %v5146_v35 = vpop.f32.mrf.mxu0  ;;  %v5578_v12 = vpop.f32.mrf.mxu3 }
 0x4a8   : > { %v5190_v33 = vadd.f32 %v5146_v35, %v7877_v3 }
 0x4a9   : > { %v5624_v31 = vadd.f32 %v5578_v12, %v5479_v24 }
 0x4aa   : > { %v5335_v19 = vadd.f32 %v5291_v32, %v5190_v33 }
 0x4ab   : > { %v5640_v56 = vadd.f32 %v7711_v44, %v5624_v31 }
 0x4ad   : > { %5656 = vst [vmem:[%s6948_s23 + $0x188] sm:$0xff] %v5640_v56 }
 0x4ae   : > { %v5436_v55 = vpop.f32.mrf.mxu2  ;;  %v5294_v38 = vpop.f32.mrf.mxu1 }
 0x4af   : > { %v5480_v26 = vadd.f32 %v5436_v55, %v5335_v19  ;;  %v5149_v27 = vpop.f32.mrf.mxu0  ;;  %v5581_v57 = vpop.f32.mrf.mxu3 }
 0x4b0   : > { %v5191_v11 = vadd.f32 %v5149_v27, %v7884_v22 }
 0x4b1   : > { %v5625_v6 = vadd.f32 %v5581_v57, %v5480_v26 }
 0x4b2   : > { %v5336_v44 = vadd.f32 %v5294_v38, %v5191_v11 }
 0x4b3   : > { %v5641_v3 = vadd.f32 %v7984_v54, %v5625_v6 }
 0x4b5   : > { %5657 = vst [vmem:[%s6948_s23 + $0x190] sm:$0xff] %v5641_v3 }
 0x4b6   : > { %v5439_v62 = vpop.f32.mrf.mxu2  ;;  %v5297_v51 = vpop.f32.mrf.mxu1 }
 0x4b7   : > { %v5481_v7 = vadd.f32 %v5439_v62, %v5336_v44  ;;  %v5152_v60 = vpop.f32.mrf.mxu0  ;;  %v5584_v46 = vpop.f32.mrf.mxu3 }
 0x4b8   : > { %v5192_v20 = vadd.f32 %v5152_v60, %v7891_v21 }
 0x4b9   : > { %v5626_v8 = vadd.f32 %v5584_v46, %v5481_v7 }
 0x4ba   : > { %v5337_v13 = vadd.f32 %v5297_v51, %v5192_v20 }
 0x4bb   : > { %v5642_v22 = vadd.f32 %v7984_v54, %v5626_v8 }
 0x4bd   : > { %5658 = vst [vmem:[%s6948_s23 + $0x198] sm:$0xff] %v5642_v22 }
 0x4be   : > { %v5442_v50 = vpop.f32.mrf.mxu2  ;;  %v5300_v14 = vpop.f32.mrf.mxu1 }
 0x4bf   : > { %v5482_v29 = vadd.f32 %v5442_v50, %v5337_v13  ;;  %v5155_v37 = vpop.f32.mrf.mxu0  ;;  %v5587_v61 = vpop.f32.mrf.mxu3 }
 0x4c0   : > { %v5193_v4 = vadd.f32 %v5155_v37, %v7898_v1 }
 0x4c1   : > { %v5627_v39 = vadd.f32 %v5587_v61, %v5482_v29 }
 0x4c2   : > { %v5338_v2 = vadd.f32 %v5300_v14, %v5193_v4 }
 0x4c3   : > { %v5643_v18 = vadd.f32 %v7984_v54, %v5627_v39 }
 0x4c5   : > { %5659 = vst [vmem:[%s6948_s23 + $0x1a0] sm:$0xff] %v5643_v18 }
 0x4c6   : > { %v5445_v41 = vpop.f32.mrf.mxu2  ;;  %v5303_v5 = vpop.f32.mrf.mxu1 }
 0x4c7   : > { %v5483_v21 = vadd.f32 %v5445_v41, %v5338_v2  ;;  %v5158_v48 = vpop.f32.mrf.mxu0  ;;  %v5590_v59 = vpop.f32.mrf.mxu3 }
 0x4c8   : > { %v5194_v28 = vadd.f32 %v5158_v48, %v7905_v30 }
 0x4c9   : > { %v5628_v36 = vadd.f32 %v5590_v59, %v5483_v21 }
 0x4ca   : > { %v5339_v40 = vadd.f32 %v5303_v5, %v5194_v28 }
 0x4cb   : > { %v5644_v34 = vadd.f32 %v7984_v54, %v5628_v36 }
 0x4cd   : > { %5660 = vst [vmem:[%s6948_s23 + $0x1a8] sm:$0xff] %v5644_v34 }
 0x4ce   : > { %v5448_v23 = vpop.f32.mrf.mxu2  ;;  %v5306_v47 = vpop.f32.mrf.mxu1 }
 0x4cf   : > { %v5484_v1 = vadd.f32 %v5448_v23, %v5339_v40  ;;  %v5161_v58 = vpop.f32.mrf.mxu0  ;;  %v5593_v15 = vpop.f32.mrf.mxu3 }
 0x4d0   : > { %v5195_v10 = vadd.f32 %v5161_v58, %v7912_v52 }
 0x4d1   : > { %v5629_v16 = vadd.f32 %v5593_v15, %v5484_v1 }
 0x4d2   : > { %v5340_v63 = vadd.f32 %v5306_v47, %v5195_v10 }
 0x4d3   : > { %v5645_v9 = vadd.f32 %v7984_v54, %v5629_v16 }
 0x4d5   : > { %5661 = vst [vmem:[%s6948_s23 + $0x1b0] sm:$0xff] %v5645_v9 }
 0x4d6   : > { %v5451_v24 = vpop.f32.mrf.mxu2  ;;  %v5309_v32 = vpop.f32.mrf.mxu1 }
 0x4d7   : > { %v5485_v30 = vadd.f32 %v5451_v24, %v5340_v63  ;;  %v5164_v35 = vpop.f32.mrf.mxu0  ;;  %v5596_v12 = vpop.f32.mrf.mxu3 }
 0x4d8   : > { %v5196_v33 = vadd.f32 %v5164_v35, %v7919_v53 }
 0x4d9   : > { %v5630_v31 = vadd.f32 %v5596_v12, %v5485_v30 }
 0x4da   : > { %v5341_v19 = vadd.f32 %v5309_v32, %v5196_v33 }
 0x4db   : > { %v5646_v56 = vadd.f32 %v7984_v54, %v5630_v31 }
 0x4dd   : > { %5662 = vst [vmem:[%s6948_s23 + $0x1b8] sm:$0xff] %v5646_v56 }
 0x4de   : > { %v5454_v55 = vpop.f32.mrf.mxu2  ;;  %v5312_v26 = vpop.f32.mrf.mxu1 }
 0x4df   : > { %v5486_v52 = vadd.f32 %v5454_v55, %v5341_v19  ;;  %v5167_v38 = vpop.f32.mrf.mxu0  ;;  %v5599_v27 = vpop.f32.mrf.mxu3 }
 0x4e0   : > { %v5197_v57 = vadd.f32 %v5167_v38, %v7928_v49 }
 0x4e1   : > { %v5631_v11 = vadd.f32 %v5599_v27, %v5486_v52 }
 0x4e2   : > { %v5342_v3 = vadd.f32 %v5312_v26, %v5197_v57 }
 0x4e3   : > { %v5647_v6 = vadd.f32 %v7984_v54, %v5631_v11 }
 0x4e5   : > { %5663 = vst [vmem:[%s6948_s23 + $0x1c0] sm:$0xff] %v5647_v6 }
 0x4e6   : > { %v5457_v44 = vpop.f32.mrf.mxu2  ;;  %v5315_v62 = vpop.f32.mrf.mxu1 }
 0x4e7   : > { %v5487_v53 = vadd.f32 %v5457_v44, %v5342_v3  ;;  %v5170_v7 = vpop.f32.mrf.mxu0  ;;  %v5602_v51 = vpop.f32.mrf.mxu3 }
 0x4e8   : > { %v5198_v60 = vadd.f32 %v5170_v7, %v7937_v42 }
 0x4e9   : > { %v5632_v46 = vadd.f32 %v5602_v51, %v5487_v53 }
 0x4ea   : > { %v5343_v8 = vadd.f32 %v5315_v62, %v5198_v60 }
 0x4eb   : > { %v5648_v20 = vadd.f32 %v7984_v54, %v5632_v46 }
 0x4ed   : > { %5664 = vst [vmem:[%s6948_s23 + $0x1c8] sm:$0xff] %v5648_v20 }
 0x4ee   : > { %v5460_v22 = vpop.f32.mrf.mxu2  ;;  %v5318_v13 = vpop.f32.mrf.mxu1 }
 0x4ef   : > { %v5488_v49 = vadd.f32 %v5460_v22, %v5343_v8  ;;  %v5173_v50 = vpop.f32.mrf.mxu0  ;;  %v5605_v29 = vpop.f32.mrf.mxu3 }
 0x4f0   : > { %v5199_v14 = vadd.f32 %v5173_v50, %v7944_v43 }
 0x4f1   : > { %v5633_v37 = vadd.f32 %v5605_v29, %v5488_v49 }
 0x4f2   : > { %v5344_v4 = vadd.f32 %v5318_v13, %v5199_v14 }
 0x4f3   : > { %v5649_v61 = vadd.f32 %v7984_v54, %v5633_v37 }
 0x4f5   : > { %5665 = vst [vmem:[%s6948_s23 + $0x1d0] sm:$0xff] %v5649_v61 }
 0x4f6   : > { %v5463_v39 = vpop.f32.mrf.mxu2  ;;  %v5321_v18 = vpop.f32.mrf.mxu1 }
 0x4f7   : > { %v5489_v42 = vadd.f32 %v5463_v39, %v5344_v4  ;;  %v5176_v2 = vpop.f32.mrf.mxu0  ;;  %v5608_v41 = vpop.f32.mrf.mxu3 }
 0x4f8   : > { %v5200_v21 = vadd.f32 %v5176_v2, %v7951_v0 }
 0x4f9   : > { %v5634_v5 = vadd.f32 %v5608_v41, %v5489_v42 }
 0x4fa   : > { %v5345_v59 = vadd.f32 %v5321_v18, %v5200_v21 }
 0x4fb   : > { %v5650_v48 = vadd.f32 %v7984_v54, %v5634_v5 }
 0x4fd   : > { %5666 = vst [vmem:[%s6948_s23 + $0x1d8] sm:$0xff] %v5650_v48 }
 0x4fe   : > { %v5466_v28 = vpop.f32.mrf.mxu2  ;;  %v5324_v36 = vpop.f32.mrf.mxu1 }
 0x4ff   : > { %v5490_v43 = vadd.f32 %v5466_v28, %v5345_v59  ;;  %v5179_v34 = vpop.f32.mrf.mxu0  ;;  %v5611_v40 = vpop.f32.mrf.mxu3 }
 0x500   : > { %v5201_v23 = vadd.f32 %v5179_v34, %v7958_v45 }
 0x501   : > { %v5635_v1 = vadd.f32 %v5611_v40, %v5490_v43 }
 0x502   : > { %v5346_v58 = vadd.f32 %v5324_v36, %v5201_v23 }
 0x503   : > { %v5651_v47 = vadd.f32 %v7984_v54, %v5635_v1 }
 0x505   : > { %5667 = vst [vmem:[%s6948_s23 + $0x1e0] sm:$0xff] %v5651_v47 }
 0x506   : > { %v5469_v15 = vpop.f32.mrf.mxu2  ;;  %v5327_v10 = vpop.f32.mrf.mxu1 }
 0x507   : > { %v5491_v0 = vadd.f32 %v5469_v15, %v5346_v58  ;;  %v5182_v16 = vpop.f32.mrf.mxu0  ;;  %v5614_v9 = vpop.f32.mrf.mxu3 }
 0x508   : > { %v5202_v63 = vadd.f32 %v5182_v16, %v7965_v17 }
 0x509   : > { %v5636_v24 = vadd.f32 %v5614_v9, %v5491_v0 }
 0x50a   : > { %v5347_v32 = vadd.f32 %v5327_v10, %v5202_v63 }
 0x50b   : > { %v5652_v30 = vadd.f32 %v7984_v54, %v5636_v24 }
 0x50d   : > { %5668 = vst [vmem:[%s6948_s23 + $0x1e8] sm:$0xff] %v5652_v30 }
 0x50e   : > { %v5472_v45 = vpop.f32.mrf.mxu2  ;;  %v5330_v19 = vpop.f32.mrf.mxu1 }
 0x50f   : > { %v5492_v35 = vadd.f32 %v5472_v45, %v5347_v32  ;;  %v5185_v12 = vpop.f32.mrf.mxu0  ;;  %v5617_v33 = vpop.f32.mrf.mxu3 }
 0x510   : > { %v5203_v31 = vadd.f32 %v5185_v12, %v7971_v25 }
 0x511   : > { %v5637_v56 = vadd.f32 %v5617_v33, %v5492_v35 }
 0x512   : > { %v5348_v52 = vadd.f32 %v5330_v19, %v5203_v31 }
 0x513   : > { %v5653_v55 = vadd.f32 %v7984_v54, %v5637_v56 }
 0x515   : > { %5669 = vst [vmem:[%s6948_s23 + $0x1f0] sm:$0xff] %v5653_v55 }
 0x516   : > { %v5475_v26 = vpop.f32.mrf.mxu2 }
 0x517   : > { %v5493_v17 = vadd.f32 %v5475_v26, %v5348_v52  ;;  %v5620_v38 = vpop.f32.mrf.mxu3 }
 0x519   : > { %v5638_v27 = vadd.f32 %v5620_v38, %v5493_v17 }
 0x51b   : > { %v5654_v57 = vadd.f32 %v7984_v54, %v5638_v27 }
 0x51d   : > { %5670 = vst [vmem:[%s6948_s23 + $0x1f8] sm:$0xff] %v5654_v57 }
 0x51e PF: > { %s14_s15 = sadd.s32 1, %s6418_s15  }
 0x51f   : > { %p11_p6 = scmp.ge.s32.totalorder %s14_s15, 4  }
 0x521   :  { %13 = sbr.rel (!%p11_p6) target bundleno = 1 (0x1), region = 77 }

</bundles_post_ra>
